<compile_context>
chip_gen: v6e
topology: v6e:2x2x1
jax: 0.10.0
libtpu: 0.0.40
codegen_flags: <defaults>
</compile_context>

<pallas_src>
import jax
import jax.numpy as jnp
from jax.experimental import pallas as pl
from jax.experimental.pallas import tpu as pltpu

NUM_CLASSES = 10          # args.num_classes (CIFAR-10)
_CONV_BATCH_TILE = 32     # images per conv grid step (well under VMEM limits)
_FC_BATCH_TILE = 128      # rows per fused-MLP grid step


def _pick_batch_tile(batch, target, sublane_aligned=False):
    """Largest tile <= target that divides batch (optionally 8-aligned)."""
    if batch <= target:
        return batch
    for bt in range(target, 0, -1):
        if batch % bt == 0 and (not sublane_aligned or bt % 8 == 0):
            return bt
    return batch


# ---------------------------------------------------------------------------
# Pallas kernels
# ---------------------------------------------------------------------------
def _conv_pool_relu_kernel(p_ref, w_ref, b_ref, o_ref):
    """Fused 3x3 conv (K-fused taps) + bias + ReLU + 2x2 maxpool.

    p_ref: (Bt, 4, S, K) bf16 im2col patches, quadrant q = ph*2+pw of the 2x2
           pool window, S = pooled spatial size, K = 9*Cin ordered (kh, kw, cin)
    w_ref: (K, Cout) bf16
    b_ref: (1, Cout) f32
    o_ref: (Bt, S, Cout) bf16
    """
    bt, q, s, k = p_ref.shape
    cout = w_ref.shape[1]
    # One MXU matmul: batch/quadrant/spatial all folded into M. (row-merge
    # reshape keeps the lane dim K intact -> layout preserving.)
    p = p_ref[...].reshape(bt * q * s, k)
    z = jnp.dot(p, w_ref[...], preferred_element_type=jnp.float32)
    z = z.reshape(bt, q, s, cout)
    # MaxPool2d(2, 2): elementwise max over the 4 pool quadrants.
    z = jnp.maximum(jnp.maximum(z[:, 0], z[:, 1]), jnp.maximum(z[:, 2], z[:, 3]))
    # bias + ReLU in f32 (commutes with the max above).
    z = jnp.maximum(z + b_ref[...], 0.0)
    o_ref[...] = z.astype(o_ref.dtype)


def _mlp_head_kernel(x_ref, w1_ref, b1_ref, w2_ref, b2_ref, w3_ref, b3_ref, o_ref):
    """Fused fc1+ReLU -> fc2+ReLU -> fc3+log_softmax; intermediates stay on-chip."""
    h = jnp.dot(x_ref[...], w1_ref[...], preferred_element_type=jnp.float32)
    h = jnp.maximum(h + b1_ref[...], 0.0)
    # TODO(synk): dropout(p=0.5) identity (inference mode)
    h = jnp.dot(h.astype(w2_ref.dtype), w2_ref[...], preferred_element_type=jnp.float32)
    h = jnp.maximum(h + b2_ref[...], 0.0)
    # TODO(synk): dropout(p=0.5) identity (inference mode)
    z = jnp.dot(h.astype(w3_ref.dtype), w3_ref[...], preferred_element_type=jnp.float32)
    z = z + b3_ref[...]
    m = jnp.max(z, axis=-1, keepdims=True)
    s = z - m
    lse = jnp.log(jnp.sum(jnp.exp(s), axis=-1, keepdims=True))
    o_ref[...] = (s - lse).astype(o_ref.dtype)


# ---------------------------------------------------------------------------
# Layer wrappers
# ---------------------------------------------------------------------------
def conv3x3_relu_pool(x_nhwc, w2d, b2):
    """x: (B,H,W,Cin) bf16, w2d: (9*Cin,Cout) bf16, b2: (1,Cout) f32
    -> pool(relu(conv3x3_pad1(x))) as (B, H//2, W//2, Cout) bf16."""
    B, H, W, Cin = x_nhwc.shape
    K, Cout = w2d.shape
    Ho, Wo = H // 2, W // 2
    S = Ho * Wo

    # Host-side im2col at pooled output positions, grouped by pool quadrant:
    # patches[b, ph*2+pw, hp*Wo+wp, (kh*3+kw)*Cin+cin] =
    #     x_pad[b, 2*hp+ph+kh, 2*wp+pw+kw, cin]
    xp = jnp.pad(x_nhwc, ((0, 0), (1, 1), (1, 1), (0, 0)))
    quads = []
    for ph in range(2):
        for pw in range(2):
            taps = [xp[:, ph + kh:ph + kh + H:2, pw + kw:pw + kw + W:2, :]
                    for kh in range(3) for kw in range(3)]
            quads.append(jnp.concatenate(taps, axis=-1).reshape(B, S, K))
    patches = jnp.stack(quads, axis=1)  # (B, 4, S, K) bf16

    Bt = _pick_batch_tile(B, _CONV_BATCH_TILE)
    out = pl.pallas_call(
        _conv_pool_relu_kernel,
        out_shape=jax.ShapeDtypeStruct((B, S, Cout), jnp.bfloat16),
        grid=(B // Bt,),
        in_specs=[
            pl.BlockSpec((Bt, 4, S, K), lambda i: (i, 0, 0, 0)),
            pl.BlockSpec((K, Cout), lambda i: (0, 0)),
            pl.BlockSpec((1, Cout), lambda i: (0, 0)),
        ],
        out_specs=pl.BlockSpec((Bt, S, Cout), lambda i: (i, 0, 0)),
        compiler_params=pltpu.CompilerParams(dimension_semantics=("parallel",)),
    )(patches, w2d, b2)
    return out.reshape(B, Ho, Wo, Cout)


def mlp_head(x, w1, b1, w2, b2, w3, b3):
    """x: (B, 1024) bf16 -> (B, num_classes) f32 log-probabilities."""
    B, D = x.shape
    N = w3.shape[1]
    Bt = _pick_batch_tile(B, _FC_BATCH_TILE, sublane_aligned=True)
    return pl.pallas_call(
        _mlp_head_kernel,
        out_shape=jax.ShapeDtypeStruct((B, N), jnp.float32),
        grid=(B // Bt,),
        in_specs=[
            pl.BlockSpec((Bt, D), lambda i: (i, 0)),
            pl.BlockSpec(w1.shape, lambda i: (0, 0)),
            pl.BlockSpec(b1.shape, lambda i: (0, 0)),
            pl.BlockSpec(w2.shape, lambda i: (0, 0)),
            pl.BlockSpec(b2.shape, lambda i: (0, 0)),
            pl.BlockSpec(w3.shape, lambda i: (0, 0)),
            pl.BlockSpec(b3.shape, lambda i: (0, 0)),
        ],
        out_specs=pl.BlockSpec((Bt, N), lambda i: (i, 0)),
        compiler_params=pltpu.CompilerParams(dimension_semantics=("parallel",)),
    )(x, w1, b1, w2, b2, w3, b3)


# ---------------------------------------------------------------------------
# Parameter preparation (PyTorch layouts -> kernel layouts)
# ---------------------------------------------------------------------------
def _prep_conv(w_oihw, b):
    """(Cout,Cin,3,3) OIHW -> (9*Cin, Cout) bf16 with K ordered (kh, kw, cin)."""
    Cout, Cin, _, _ = w_oihw.shape
    w2d = jnp.transpose(w_oihw, (2, 3, 1, 0)).reshape(9 * Cin, Cout)
    return w2d.astype(jnp.bfloat16), b.reshape(1, Cout).astype(jnp.float32)


def _prep_fc1(w, b):
    """fc1.weight (512, 1024) expects CHW-flattened input (c*16+h*4+w); the
    kernel feeds HWC-flattened activations, so permute the rows once here."""
    wt = w.T.reshape(64, 4, 4, w.shape[0])              # (c, h, w, out)
    wt = jnp.transpose(wt, (1, 2, 0, 3)).reshape(64 * 4 * 4, w.shape[0])
    return wt.astype(jnp.bfloat16), b.reshape(1, -1).astype(jnp.float32)


def _prep_fc(w, b):
    return w.T.astype(jnp.bfloat16), b.reshape(1, -1).astype(jnp.float32)


# ---------------------------------------------------------------------------
# Model
# ---------------------------------------------------------------------------
def cnn_cifar_v2_forward(params, x_nchw):
    w1, b1 = _prep_conv(params["conv1.weight"], params["conv1.bias"])
    w2, b2 = _prep_conv(params["conv2.weight"], params["conv2.bias"])
    w3, b3 = _prep_conv(params["conv3.weight"], params["conv3.bias"])
    wf1, bf1 = _prep_fc1(params["fc1.weight"], params["fc1.bias"])
    wf2, bf2 = _prep_fc(params["fc2.weight"], params["fc2.bias"])
    wf3, bf3 = _prep_fc(params["fc3.weight"], params["fc3.bias"])

    x = jnp.transpose(x_nchw, (0, 2, 3, 1)).astype(jnp.bfloat16)  # NCHW -> NHWC
    x = conv3x3_relu_pool(x, w1, b1)        # (B, 16, 16, 16)
    x = conv3x3_relu_pool(x, w2, b2)        # (B,  8,  8, 32)
    x = conv3x3_relu_pool(x, w3, b3)        # (B,  4,  4, 64)
    B = x.shape[0]
    x = x.reshape(B, 64 * 4 * 4)            # HWC flatten; fc1 rows pre-permuted
    return mlp_head(x, wf1, bf1, wf2, bf2, wf3, bf3)   # (B, 10) f32 log-probs


def init_params(key):
    """PyTorch-layout params with default-ish init (uniform +-1/sqrt(fan_in))."""

    def u(k, shape, fan_in):
        bound = 1.0 / jnp.sqrt(jnp.float32(fan_in))
        return jax.random.uniform(k, shape, jnp.float32, -bound, bound)

    ks = jax.random.split(key, 12)
    p = {}
    p["conv1.weight"] = u(ks[0], (16, 3, 3, 3), 3 * 9)
    p["conv1.bias"] = u(ks[1], (16,), 3 * 9)
    p["conv2.weight"] = u(ks[2], (32, 16, 3, 3), 16 * 9)
    p["conv2.bias"] = u(ks[3], (32,), 16 * 9)
    p["conv3.weight"] = u(ks[4], (64, 32, 3, 3), 32 * 9)
    p["conv3.bias"] = u(ks[5], (64,), 32 * 9)
    p["fc1.weight"] = u(ks[6], (512, 64 * 4 * 4), 64 * 4 * 4)
    p["fc1.bias"] = u(ks[7], (512,), 64 * 4 * 4)
    p["fc2.weight"] = u(ks[8], (64, 512), 512)
    p["fc2.bias"] = u(ks[9], (64,), 512)
    p["fc3.weight"] = u(ks[10], (NUM_CLASSES, 64), 64)
    p["fc3.bias"] = u(ks[11], (NUM_CLASSES,), 64)
    return p


if __name__ == "__main__":
    key = jax.random.PRNGKey(0)
    pkey, xkey = jax.random.split(key)
    params = init_params(pkey)
    # Input must be 32x32 spatially: 3 pool-by-2 stages -> 4x4, matching 64*4*4.
    x = jax.random.normal(xkey, (2, 3, 32, 32), jnp.float32)  # NCHW like PyTorch

    fwd = jax.jit(cnn_cifar_v2_forward)
    out = fwd(params, x)
    jax.block_until_ready(out)

    assert out.shape == (2, NUM_CLASSES), out.shape
    # log_softmax rows should exponentiate-and-sum to 1.
    assert jnp.allclose(jnp.sum(jnp.exp(out), axis=1), 1.0, atol=1e-4)
    print("KERNEL_OK")
</pallas_src>

<mosaic_0001>
module attributes {stable_mosaic.version = 11 : i64} {
  func.func @_conv_pool_relu_kernel(%arg0: i32, %arg1: memref<2x4x256x27xbf16, #tpu.memory_space<vmem>>, %arg2: memref<27x16xbf16, #tpu.memory_space<vmem>>, %arg3: memref<1x16xf32, #tpu.memory_space<vmem>>, %arg4: memref<2x256x16xbf16, #tpu.memory_space<vmem>>) attributes {dimension_semantics = [#tpu.dimension_semantics<parallel>], iteration_bounds = array<i64: 1>, scalar_prefetch = 0 : i64, scratch_operands = 0 : i64, tpu.core_type = #tpu.core_type<tc>, window_params = [{transform_indices = @transform_0, window_bounds = array<i64: 2, 4, 256, 27>}, {pipeline_mode = #tpu.pipeline_mode<synchronous>, transform_indices = @transform_1, window_bounds = array<i64: 27, 16>}, {pipeline_mode = #tpu.pipeline_mode<synchronous>, transform_indices = @transform_2, window_bounds = array<i64: 1, 16>}, {transform_indices = @transform_3, window_bounds = array<i64: 2, 256, 16>}]} {
    %c0 = arith.constant 0 : index
    %c0_0 = arith.constant 0 : index
    %c0_1 = arith.constant 0 : index
    %c0_2 = arith.constant 0 : index
    %0 = vector.load %arg1[%c0, %c0_0, %c0_1, %c0_2] : memref<2x4x256x27xbf16, #tpu.memory_space<vmem>>, vector<2x4x256x27xbf16>
    %1 = vector.shape_cast %0 : vector<2x4x256x27xbf16> to vector<2048x27xbf16>
    %c0_3 = arith.constant 0 : index
    %c0_4 = arith.constant 0 : index
    %2 = vector.load %arg2[%c0_3, %c0_4] : memref<27x16xbf16, #tpu.memory_space<vmem>>, vector<27x16xbf16>
    %cst = arith.constant dense<0.000000e+00> : vector<2048x16xf32>
    %3 = tpu.matmul %1, %2, %cst {dimension_numbers = #tpu.dot_dimension_numbers<[1], [0], [0], [1], [0, 0, 1, 1], [], []>} : vector<2048x27xbf16>, vector<27x16xbf16>, vector<2048x16xf32> -> vector<2048x16xf32>
    %4 = vector.shape_cast %3 : vector<2048x16xf32> to vector<2x4x256x16xf32>
    %5 = vector.extract_strided_slice %4 {offsets = [0, 0, 0, 0], sizes = [2, 1, 256, 16], strides = [1, 1, 1, 1]} : vector<2x4x256x16xf32> to vector<2x1x256x16xf32>
    %6 = vector.shape_cast %5 : vector<2x1x256x16xf32> to vector<2x256x16xf32>
    %7 = vector.extract_strided_slice %4 {offsets = [0, 1, 0, 0], sizes = [2, 1, 256, 16], strides = [1, 1, 1, 1]} : vector<2x4x256x16xf32> to vector<2x1x256x16xf32>
    %8 = vector.shape_cast %7 : vector<2x1x256x16xf32> to vector<2x256x16xf32>
    %9 = arith.maximumf %6, %8 : vector<2x256x16xf32>
    %10 = vector.extract_strided_slice %4 {offsets = [0, 2, 0, 0], sizes = [2, 1, 256, 16], strides = [1, 1, 1, 1]} : vector<2x4x256x16xf32> to vector<2x1x256x16xf32>
    %11 = vector.shape_cast %10 : vector<2x1x256x16xf32> to vector<2x256x16xf32>
    %12 = vector.extract_strided_slice %4 {offsets = [0, 3, 0, 0], sizes = [2, 1, 256, 16], strides = [1, 1, 1, 1]} : vector<2x4x256x16xf32> to vector<2x1x256x16xf32>
    %13 = vector.shape_cast %12 : vector<2x1x256x16xf32> to vector<2x256x16xf32>
    %14 = arith.maximumf %11, %13 : vector<2x256x16xf32>
    %15 = arith.maximumf %9, %14 : vector<2x256x16xf32>
    %c0_5 = arith.constant 0 : index
    %c0_6 = arith.constant 0 : index
    %16 = vector.load %arg3[%c0_5, %c0_6] : memref<1x16xf32, #tpu.memory_space<vmem>>, vector<1x16xf32>
    %17 = vector.shape_cast %16 : vector<1x16xf32> to vector<1x1x16xf32>
    %18 = vector.broadcast %17 : vector<1x1x16xf32> to vector<2x256x16xf32>
    %19 = arith.addf %15, %18 : vector<2x256x16xf32>
    %cst_7 = arith.constant 0.000000e+00 : f32
    %20 = vector.broadcast %cst_7 : f32 to vector<2x256x16xf32>
    %21 = arith.maximumf %19, %20 : vector<2x256x16xf32>
    %22 = arith.truncf %21 : vector<2x256x16xf32> to vector<2x256x16xbf16>
    %c0_8 = arith.constant 0 : index
    %c0_9 = arith.constant 0 : index
    %c0_10 = arith.constant 0 : index
    %23 = vector.load %arg4[%c0_8, %c0_9, %c0_10] : memref<2x256x16xbf16, #tpu.memory_space<vmem>>, vector<2x256x16xbf16>
    tpu.vector_store %arg4[%c0_8, %c0_9, %c0_10], %22 {strides = array<i32>} : memref<2x256x16xbf16, #tpu.memory_space<vmem>>, vector<2x256x16xbf16>,
    return
  }
  func.func @transform_0(%arg0: i32) -> (i32, i32, i32, i32) {
    %c0_i32 = arith.constant 0 : i32
    %c0_i32_0 = arith.constant 0 : i32
    %c0_i32_1 = arith.constant 0 : i32
    %c0_i32_2 = arith.constant 0 : i32
    return %arg0, %c0_i32, %c0_i32_0, %c0_i32_1 : i32, i32, i32, i32
  }
  func.func @transform_1(%arg0: i32) -> (i32, i32) {
    %c0_i32 = arith.constant 0 : i32
    %c0_i32_0 = arith.constant 0 : i32
    %c0_i32_1 = arith.constant 0 : i32
    return %c0_i32, %c0_i32_0 : i32, i32
  }
  func.func @transform_2(%arg0: i32) -> (i32, i32) {
    %c0_i32 = arith.constant 0 : i32
    %c0_i32_0 = arith.constant 0 : i32
    %c0_i32_1 = arith.constant 0 : i32
    return %c0_i32, %c0_i32_0 : i32, i32
  }
  func.func @transform_3(%arg0: i32) -> (i32, i32, i32) {
    %c0_i32 = arith.constant 0 : i32
    %c0_i32_0 = arith.constant 0 : i32
    %c0_i32_1 = arith.constant 0 : i32
    return %arg0, %c0_i32, %c0_i32_0 : i32, i32, i32
  }
}

module attributes {stable_mosaic.version = 11 : i64} {
  func.func @_conv_pool_relu_kernel(%arg0: i32, %arg1: memref<2x4x64x144xbf16, #tpu.memory_space<vmem>>, %arg2: memref<144x32xbf16, #tpu.memory_space<vmem>>, %arg3: memref<1x32xf32, #tpu.memory_space<vmem>>, %arg4: memref<2x64x32xbf16, #tpu.memory_space<vmem>>) attributes {dimension_semantics = [#tpu.dimension_semantics<parallel>], iteration_bounds = array<i64: 1>, scalar_prefetch = 0 : i64, scratch_operands = 0 : i64, tpu.core_type = #tpu.core_type<tc>, window_params = [{transform_indices = @transform_0, window_bounds = array<i64: 2, 4, 64, 144>}, {pipeline_mode = #tpu.pipeline_mode<synchronous>, transform_indices = @transform_1, window_bounds = array<i64: 144, 32>}, {pipeline_mode = #tpu.pipeline_mode<synchronous>, transform_indices = @transform_2, window_bounds = array<i64: 1, 32>}, {transform_indices = @transform_3, window_bounds = array<i64: 2, 64, 32>}]} {
    %c0 = arith.constant 0 : index
    %c0_0 = arith.constant 0 : index
    %c0_1 = arith.constant 0 : index
    %c0_2 = arith.constant 0 : index
    %0 = vector.load %arg1[%c0, %c0_0, %c0_1, %c0_2] : memref<2x4x64x144xbf16, #tpu.memory_space<vmem>>, vector<2x4x64x144xbf16>
    %1 = vector.shape_cast %0 : vector<2x4x64x144xbf16> to vector<512x144xbf16>
    %c0_3 = arith.constant 0 : index
    %c0_4 = arith.constant 0 : index
    %2 = vector.load %arg2[%c0_3, %c0_4] : memref<144x32xbf16, #tpu.memory_space<vmem>>, vector<144x32xbf16>
    %cst = arith.constant dense<0.000000e+00> : vector<512x32xf32>
    %3 = tpu.matmul %1, %2, %cst {dimension_numbers = #tpu.dot_dimension_numbers<[1], [0], [0], [1], [0, 0, 1, 1], [], []>} : vector<512x144xbf16>, vector<144x32xbf16>, vector<512x32xf32> -> vector<512x32xf32>
    %4 = vector.shape_cast %3 : vector<512x32xf32> to vector<2x4x64x32xf32>
    %5 = vector.extract_strided_slice %4 {offsets = [0, 0, 0, 0], sizes = [2, 1, 64, 32], strides = [1, 1, 1, 1]} : vector<2x4x64x32xf32> to vector<2x1x64x32xf32>
    %6 = vector.shape_cast %5 : vector<2x1x64x32xf32> to vector<2x64x32xf32>
    %7 = vector.extract_strided_slice %4 {offsets = [0, 1, 0, 0], sizes = [2, 1, 64, 32], strides = [1, 1, 1, 1]} : vector<2x4x64x32xf32> to vector<2x1x64x32xf32>
    %8 = vector.shape_cast %7 : vector<2x1x64x32xf32> to vector<2x64x32xf32>
    %9 = arith.maximumf %6, %8 : vector<2x64x32xf32>
    %10 = vector.extract_strided_slice %4 {offsets = [0, 2, 0, 0], sizes = [2, 1, 64, 32], strides = [1, 1, 1, 1]} : vector<2x4x64x32xf32> to vector<2x1x64x32xf32>
    %11 = vector.shape_cast %10 : vector<2x1x64x32xf32> to vector<2x64x32xf32>
    %12 = vector.extract_strided_slice %4 {offsets = [0, 3, 0, 0], sizes = [2, 1, 64, 32], strides = [1, 1, 1, 1]} : vector<2x4x64x32xf32> to vector<2x1x64x32xf32>
    %13 = vector.shape_cast %12 : vector<2x1x64x32xf32> to vector<2x64x32xf32>
    %14 = arith.maximumf %11, %13 : vector<2x64x32xf32>
    %15 = arith.maximumf %9, %14 : vector<2x64x32xf32>
    %c0_5 = arith.constant 0 : index
    %c0_6 = arith.constant 0 : index
    %16 = vector.load %arg3[%c0_5, %c0_6] : memref<1x32xf32, #tpu.memory_space<vmem>>, vector<1x32xf32>
    %17 = vector.shape_cast %16 : vector<1x32xf32> to vector<1x1x32xf32>
    %18 = vector.broadcast %17 : vector<1x1x32xf32> to vector<2x64x32xf32>
    %19 = arith.addf %15, %18 : vector<2x64x32xf32>
    %cst_7 = arith.constant 0.000000e+00 : f32
    %20 = vector.broadcast %cst_7 : f32 to vector<2x64x32xf32>
    %21 = arith.maximumf %19, %20 : vector<2x64x32xf32>
    %22 = arith.truncf %21 : vector<2x64x32xf32> to vector<2x64x32xbf16>
    %c0_8 = arith.constant 0 : index
    %c0_9 = arith.constant 0 : index
    %c0_10 = arith.constant 0 : index
    %23 = vector.load %arg4[%c0_8, %c0_9, %c0_10] : memref<2x64x32xbf16, #tpu.memory_space<vmem>>, vector<2x64x32xbf16>
    tpu.vector_store %arg4[%c0_8, %c0_9, %c0_10], %22 {strides = array<i32>} : memref<2x64x32xbf16, #tpu.memory_space<vmem>>, vector<2x64x32xbf16>,
    return
  }
  func.func @transform_0(%arg0: i32) -> (i32, i32, i32, i32) {
    %c0_i32 = arith.constant 0 : i32
    %c0_i32_0 = arith.constant 0 : i32
    %c0_i32_1 = arith.constant 0 : i32
    %c0_i32_2 = arith.constant 0 : i32
    return %arg0, %c0_i32, %c0_i32_0, %c0_i32_1 : i32, i32, i32, i32
  }
  func.func @transform_1(%arg0: i32) -> (i32, i32) {
    %c0_i32 = arith.constant 0 : i32
    %c0_i32_0 = arith.constant 0 : i32
    %c0_i32_1 = arith.constant 0 : i32
    return %c0_i32, %c0_i32_0 : i32, i32
  }
  func.func @transform_2(%arg0: i32) -> (i32, i32) {
    %c0_i32 = arith.constant 0 : i32
    %c0_i32_0 = arith.constant 0 : i32
    %c0_i32_1 = arith.constant 0 : i32
    return %c0_i32, %c0_i32_0 : i32, i32
  }
  func.func @transform_3(%arg0: i32) -> (i32, i32, i32) {
    %c0_i32 = arith.constant 0 : i32
    %c0_i32_0 = arith.constant 0 : i32
    %c0_i32_1 = arith.constant 0 : i32
    return %arg0, %c0_i32, %c0_i32_0 : i32, i32, i32
  }
}

module attributes {stable_mosaic.version = 11 : i64} {
  func.func @_conv_pool_relu_kernel(%arg0: i32, %arg1: memref<2x4x16x288xbf16, #tpu.memory_space<vmem>>, %arg2: memref<288x64xbf16, #tpu.memory_space<vmem>>, %arg3: memref<1x64xf32, #tpu.memory_space<vmem>>, %arg4: memref<2x16x64xbf16, #tpu.memory_space<vmem>>) attributes {dimension_semantics = [#tpu.dimension_semantics<parallel>], iteration_bounds = array<i64: 1>, scalar_prefetch = 0 : i64, scratch_operands = 0 : i64, tpu.core_type = #tpu.core_type<tc>, window_params = [{transform_indices = @transform_0, window_bounds = array<i64: 2, 4, 16, 288>}, {pipeline_mode = #tpu.pipeline_mode<synchronous>, transform_indices = @transform_1, window_bounds = array<i64: 288, 64>}, {pipeline_mode = #tpu.pipeline_mode<synchronous>, transform_indices = @transform_2, window_bounds = array<i64: 1, 64>}, {transform_indices = @transform_3, window_bounds = array<i64: 2, 16, 64>}]} {
    %c0 = arith.constant 0 : index
    %c0_0 = arith.constant 0 : index
    %c0_1 = arith.constant 0 : index
    %c0_2 = arith.constant 0 : index
    %0 = vector.load %arg1[%c0, %c0_0, %c0_1, %c0_2] : memref<2x4x16x288xbf16, #tpu.memory_space<vmem>>, vector<2x4x16x288xbf16>
    %1 = vector.shape_cast %0 : vector<2x4x16x288xbf16> to vector<128x288xbf16>
    %c0_3 = arith.constant 0 : index
    %c0_4 = arith.constant 0 : index
    %2 = vector.load %arg2[%c0_3, %c0_4] : memref<288x64xbf16, #tpu.memory_space<vmem>>, vector<288x64xbf16>
    %cst = arith.constant dense<0.000000e+00> : vector<128x64xf32>
    %3 = tpu.matmul %1, %2, %cst {dimension_numbers = #tpu.dot_dimension_numbers<[1], [0], [0], [1], [0, 0, 1, 1], [], []>} : vector<128x288xbf16>, vector<288x64xbf16>, vector<128x64xf32> -> vector<128x64xf32>
    %4 = vector.shape_cast %3 : vector<128x64xf32> to vector<2x4x16x64xf32>
    %5 = vector.extract_strided_slice %4 {offsets = [0, 0, 0, 0], sizes = [2, 1, 16, 64], strides = [1, 1, 1, 1]} : vector<2x4x16x64xf32> to vector<2x1x16x64xf32>
    %6 = vector.shape_cast %5 : vector<2x1x16x64xf32> to vector<2x16x64xf32>
    %7 = vector.extract_strided_slice %4 {offsets = [0, 1, 0, 0], sizes = [2, 1, 16, 64], strides = [1, 1, 1, 1]} : vector<2x4x16x64xf32> to vector<2x1x16x64xf32>
    %8 = vector.shape_cast %7 : vector<2x1x16x64xf32> to vector<2x16x64xf32>
    %9 = arith.maximumf %6, %8 : vector<2x16x64xf32>
    %10 = vector.extract_strided_slice %4 {offsets = [0, 2, 0, 0], sizes = [2, 1, 16, 64], strides = [1, 1, 1, 1]} : vector<2x4x16x64xf32> to vector<2x1x16x64xf32>
    %11 = vector.shape_cast %10 : vector<2x1x16x64xf32> to vector<2x16x64xf32>
    %12 = vector.extract_strided_slice %4 {offsets = [0, 3, 0, 0], sizes = [2, 1, 16, 64], strides = [1, 1, 1, 1]} : vector<2x4x16x64xf32> to vector<2x1x16x64xf32>
    %13 = vector.shape_cast %12 : vector<2x1x16x64xf32> to vector<2x16x64xf32>
    %14 = arith.maximumf %11, %13 : vector<2x16x64xf32>
    %15 = arith.maximumf %9, %14 : vector<2x16x64xf32>
    %c0_5 = arith.constant 0 : index
    %c0_6 = arith.constant 0 : index
    %16 = vector.load %arg3[%c0_5, %c0_6] : memref<1x64xf32, #tpu.memory_space<vmem>>, vector<1x64xf32>
    %17 = vector.shape_cast %16 : vector<1x64xf32> to vector<1x1x64xf32>
    %18 = vector.broadcast %17 : vector<1x1x64xf32> to vector<2x16x64xf32>
    %19 = arith.addf %15, %18 : vector<2x16x64xf32>
    %cst_7 = arith.constant 0.000000e+00 : f32
    %20 = vector.broadcast %cst_7 : f32 to vector<2x16x64xf32>
    %21 = arith.maximumf %19, %20 : vector<2x16x64xf32>
    %22 = arith.truncf %21 : vector<2x16x64xf32> to vector<2x16x64xbf16>
    %c0_8 = arith.constant 0 : index
    %c0_9 = arith.constant 0 : index
    %c0_10 = arith.constant 0 : index
    %23 = vector.load %arg4[%c0_8, %c0_9, %c0_10] : memref<2x16x64xbf16, #tpu.memory_space<vmem>>, vector<2x16x64xbf16>
    tpu.vector_store %arg4[%c0_8, %c0_9, %c0_10], %22 {strides = array<i32>} : memref<2x16x64xbf16, #tpu.memory_space<vmem>>, vector<2x16x64xbf16>,
    return
  }
  func.func @transform_0(%arg0: i32) -> (i32, i32, i32, i32) {
    %c0_i32 = arith.constant 0 : i32
    %c0_i32_0 = arith.constant 0 : i32
    %c0_i32_1 = arith.constant 0 : i32
    %c0_i32_2 = arith.constant 0 : i32
    return %arg0, %c0_i32, %c0_i32_0, %c0_i32_1 : i32, i32, i32, i32
  }
  func.func @transform_1(%arg0: i32) -> (i32, i32) {
    %c0_i32 = arith.constant 0 : i32
    %c0_i32_0 = arith.constant 0 : i32
    %c0_i32_1 = arith.constant 0 : i32
    return %c0_i32, %c0_i32_0 : i32, i32
  }
  func.func @transform_2(%arg0: i32) -> (i32, i32) {
    %c0_i32 = arith.constant 0 : i32
    %c0_i32_0 = arith.constant 0 : i32
    %c0_i32_1 = arith.constant 0 : i32
    return %c0_i32, %c0_i32_0 : i32, i32
  }
  func.func @transform_3(%arg0: i32) -> (i32, i32, i32) {
    %c0_i32 = arith.constant 0 : i32
    %c0_i32_0 = arith.constant 0 : i32
    %c0_i32_1 = arith.constant 0 : i32
    return %arg0, %c0_i32, %c0_i32_0 : i32, i32, i32
  }
}

module attributes {stable_mosaic.version = 11 : i64} {
  func.func @_mlp_head_kernel(%arg0: i32, %arg1: memref<2x1024xbf16, #tpu.memory_space<vmem>>, %arg2: memref<1024x512xbf16, #tpu.memory_space<vmem>>, %arg3: memref<1x512xf32, #tpu.memory_space<vmem>>, %arg4: memref<512x64xbf16, #tpu.memory_space<vmem>>, %arg5: memref<1x64xf32, #tpu.memory_space<vmem>>, %arg6: memref<64x10xbf16, #tpu.memory_space<vmem>>, %arg7: memref<1x10xf32, #tpu.memory_space<vmem>>, %arg8: memref<2x10xf32, #tpu.memory_space<vmem>>) attributes {dimension_semantics = [#tpu.dimension_semantics<parallel>], iteration_bounds = array<i64: 1>, scalar_prefetch = 0 : i64, scratch_operands = 0 : i64, tpu.core_type = #tpu.core_type<tc>, window_params = [{transform_indices = @transform_0, window_bounds = array<i64: 2, 1024>}, {pipeline_mode = #tpu.pipeline_mode<synchronous>, transform_indices = @transform_1, window_bounds = array<i64: 1024, 512>}, {pipeline_mode = #tpu.pipeline_mode<synchronous>, transform_indices = @transform_2, window_bounds = array<i64: 1, 512>}, {pipeline_mode = #tpu.pipeline_mode<synchronous>, transform_indices = @transform_3, window_bounds = array<i64: 512, 64>}, {pipeline_mode = #tpu.pipeline_mode<synchronous>, transform_indices = @transform_4, window_bounds = array<i64: 1, 64>}, {pipeline_mode = #tpu.pipeline_mode<synchronous>, transform_indices = @transform_5, window_bounds = array<i64: 64, 10>}, {pipeline_mode = #tpu.pipeline_mode<synchronous>, transform_indices = @transform_6, window_bounds = array<i64: 1, 10>}, {transform_indices = @transform_7, window_bounds = array<i64: 2, 10>}]} {
    %c0 = arith.constant 0 : index
    %c0_0 = arith.constant 0 : index
    %0 = vector.load %arg1[%c0, %c0_0] : memref<2x1024xbf16, #tpu.memory_space<vmem>>, vector<2x1024xbf16>
    %c0_1 = arith.constant 0 : index
    %c0_2 = arith.constant 0 : index
    %1 = vector.load %arg2[%c0_1, %c0_2] : memref<1024x512xbf16, #tpu.memory_space<vmem>>, vector<1024x512xbf16>
    %cst = arith.constant dense<0.000000e+00> : vector<2x512xf32>
    %2 = tpu.matmul %0, %1, %cst {dimension_numbers = #tpu.dot_dimension_numbers<[1], [0], [0], [1], [0, 0, 1, 1], [], []>} : vector<2x1024xbf16>, vector<1024x512xbf16>, vector<2x512xf32> -> vector<2x512xf32>
    %c0_3 = arith.constant 0 : index
    %c0_4 = arith.constant 0 : index
    %3 = vector.load %arg3[%c0_3, %c0_4] : memref<1x512xf32, #tpu.memory_space<vmem>>, vector<1x512xf32>
    %4 = vector.broadcast %3 : vector<1x512xf32> to vector<2x512xf32>
    %5 = arith.addf %2, %4 : vector<2x512xf32>
    %cst_5 = arith.constant 0.000000e+00 : f32
    %6 = vector.broadcast %cst_5 : f32 to vector<2x512xf32>
    %7 = arith.maximumf %5, %6 : vector<2x512xf32>
    %8 = arith.truncf %7 : vector<2x512xf32> to vector<2x512xbf16>
    %c0_6 = arith.constant 0 : index
    %c0_7 = arith.constant 0 : index
    %9 = vector.load %arg4[%c0_6, %c0_7] : memref<512x64xbf16, #tpu.memory_space<vmem>>, vector<512x64xbf16>
    %cst_8 = arith.constant dense<0.000000e+00> : vector<2x64xf32>
    %10 = tpu.matmul %8, %9, %cst_8 {dimension_numbers = #tpu.dot_dimension_numbers<[1], [0], [0], [1], [0, 0, 1, 1], [], []>} : vector<2x512xbf16>, vector<512x64xbf16>, vector<2x64xf32> -> vector<2x64xf32>
    %c0_9 = arith.constant 0 : index
    %c0_10 = arith.constant 0 : index
    %11 = vector.load %arg5[%c0_9, %c0_10] : memref<1x64xf32, #tpu.memory_space<vmem>>, vector<1x64xf32>
    %12 = vector.broadcast %11 : vector<1x64xf32> to vector<2x64xf32>
    %13 = arith.addf %10, %12 : vector<2x64xf32>
    %cst_11 = arith.constant 0.000000e+00 : f32
    %14 = vector.broadcast %cst_11 : f32 to vector<2x64xf32>
    %15 = arith.maximumf %13, %14 : vector<2x64xf32>
    %16 = arith.truncf %15 : vector<2x64xf32> to vector<2x64xbf16>
    %c0_12 = arith.constant 0 : index
    %c0_13 = arith.constant 0 : index
    %17 = vector.load %arg6[%c0_12, %c0_13] : memref<64x10xbf16, #tpu.memory_space<vmem>>, vector<64x10xbf16>
    %cst_14 = arith.constant dense<0.000000e+00> : vector<2x10xf32>
    %18 = tpu.matmul %16, %17, %cst_14 {dimension_numbers = #tpu.dot_dimension_numbers<[1], [0], [0], [1], [0, 0, 1, 1], [], []>} : vector<2x64xbf16>, vector<64x10xbf16>, vector<2x10xf32> -> vector<2x10xf32>
    %c0_15 = arith.constant 0 : index
    %c0_16 = arith.constant 0 : index
    %19 = vector.load %arg7[%c0_15, %c0_16] : memref<1x10xf32, #tpu.memory_space<vmem>>, vector<1x10xf32>
    %20 = vector.broadcast %19 : vector<1x10xf32> to vector<2x10xf32>
    %21 = arith.addf %18, %20 : vector<2x10xf32>
    %cst_17 = arith.constant dense<0xFF800000> : vector<2xf32>
    %22 = vector.multi_reduction <maximumf>, %21, %cst_17 [1] : vector<2x10xf32> to vector<2xf32>
    %23 = vector.shape_cast %22 : vector<2xf32> to vector<2x1xf32>
    %24 = vector.broadcast %23 : vector<2x1xf32> to vector<2x10xf32>
    %25 = arith.subf %21, %24 : vector<2x10xf32>
    %26 = math.exp %25 : vector<2x10xf32>
    %cst_18 = arith.constant dense<0.000000e+00> : vector<2xf32>
    %27 = vector.multi_reduction <add>, %26, %cst_18 [1] : vector<2x10xf32> to vector<2xf32>
    %28 = vector.shape_cast %27 : vector<2xf32> to vector<2x1xf32>
    %29 = math.log %28 : vector<2x1xf32>
    %30 = vector.broadcast %29 : vector<2x1xf32> to vector<2x10xf32>
    %31 = arith.subf %25, %30 : vector<2x10xf32>
    %c0_19 = arith.constant 0 : index
    %c0_20 = arith.constant 0 : index
    %32 = vector.load %arg8[%c0_19, %c0_20] : memref<2x10xf32, #tpu.memory_space<vmem>>, vector<2x10xf32>
    tpu.vector_store %arg8[%c0_19, %c0_20], %31 {strides = array<i32>} : memref<2x10xf32, #tpu.memory_space<vmem>>, vector<2x10xf32>,
    return
  }
  func.func @transform_0(%arg0: i32) -> (i32, i32) {
    %c0_i32 = arith.constant 0 : i32
    %c0_i32_0 = arith.constant 0 : i32
    return %arg0, %c0_i32 : i32, i32
  }
  func.func @transform_1(%arg0: i32) -> (i32, i32) {
    %c0_i32 = arith.constant 0 : i32
    %c0_i32_0 = arith.constant 0 : i32
    %c0_i32_1 = arith.constant 0 : i32
    return %c0_i32, %c0_i32_0 : i32, i32
  }
  func.func @transform_2(%arg0: i32) -> (i32, i32) {
    %c0_i32 = arith.constant 0 : i32
    %c0_i32_0 = arith.constant 0 : i32
    %c0_i32_1 = arith.constant 0 : i32
    return %c0_i32, %c0_i32_0 : i32, i32
  }
  func.func @transform_3(%arg0: i32) -> (i32, i32) {
    %c0_i32 = arith.constant 0 : i32
    %c0_i32_0 = arith.constant 0 : i32
    %c0_i32_1 = arith.constant 0 : i32
    return %c0_i32, %c0_i32_0 : i32, i32
  }
  func.func @transform_4(%arg0: i32) -> (i32, i32) {
    %c0_i32 = arith.constant 0 : i32
    %c0_i32_0 = arith.constant 0 : i32
    %c0_i32_1 = arith.constant 0 : i32
    return %c0_i32, %c0_i32_0 : i32, i32
  }
  func.func @transform_5(%arg0: i32) -> (i32, i32) {
    %c0_i32 = arith.constant 0 : i32
    %c0_i32_0 = arith.constant 0 : i32
    %c0_i32_1 = arith.constant 0 : i32
    return %c0_i32, %c0_i32_0 : i32, i32
  }
  func.func @transform_6(%arg0: i32) -> (i32, i32) {
    %c0_i32 = arith.constant 0 : i32
    %c0_i32_0 = arith.constant 0 : i32
    %c0_i32_1 = arith.constant 0 : i32
    return %c0_i32, %c0_i32_0 : i32, i32
  }
  func.func @transform_7(%arg0: i32) -> (i32, i32) {
    %c0_i32 = arith.constant 0 : i32
    %c0_i32_0 = arith.constant 0 : i32
    return %arg0, %c0_i32 : i32, i32
  }
}

</mosaic_0001>

<bundles_post_ra>
// kernel: cnn_cifar_v2_forward.4
= control target key start
LH: loop header
LB: loop body
LE: loop exit
PB: predicated region body
PF: predicated region fallthrough
CT: control target
= control target key end

     0   :  { %vm1311_vm0 = vcmask 1044480   ;;  %vm1312_vm1 = vcmask 1045504   ;;  %v3939_v1 = vmov 65535   ;;  %vm926_vm2 = vcmask 220160   ;;  %s5637_s1 = inlined_call_operand.vmem [shape: bf16[27,16], index: 1, kind: input, shape index: {}]   ;;  %s5638_s0 = inlined_call_operand.vmem [shape: bf16[2,4,256,27], index: 0, kind: input, shape index: {}]   ;;  %s5639_s2 = inlined_call_operand.vmem [shape: f32[1,16], index: 2, kind: input, shape index: {}]   ;;  %s5640_s3 = inlined_call_operand.vmem [shape: bf16[2,256,16], index: 3, kind: output, shape index: {}]  }
   0x1   :  { %v3809_v0 = vld [vmem:[%s5637_s1 + $0x8] sm:$0x3f]   ;;  %v1313_v2 = vsel %vm1311_vm0, 4294967295, %v3939_v1  ;;  %v3811_v4 = vld [vmem:[%s5638_s0] sm:$0xff]   ;;  %v3815_v10 = vld [vmem:[%s5638_s0 + $0x10] sm:$0xff]   ;;  %vm2958_vm3 = vcmask 125952  }
   0x2   :  { %v1314_v3 = vsel %vm1312_vm1, %v1313_v2, 0  ;;  %v3810_v6 = vld [vmem:[%s5637_s1] sm:$0xff]   ;;  %3548 = vmatprep.mubr.msk.bf16.mxu0 %vm926_vm2, %v3811_v4  ;;  %v3813_v8 = vld [vmem:[%s5638_s0 + $0x8] sm:$0xff]   ;;  %v3816_v11 = vld [vmem:[%s5638_s0 + $0x210] sm:$0xff]  }
   0x3   :  { %v1316_v5 = vand.u32 %v3809_v0, %v1314_v3  ;;  %v3812_v7 = vld [vmem:[%s5638_s0 + $0x200] sm:$0xff]   ;;  %v3814_v9 = vld [vmem:[%s5638_s0 + $0x208] sm:$0xff]   ;;  %v3817_v12 = vld [vmem:[%s5638_s0 + $0x18] sm:$0xff]  }
   0x4   :  { %3676 = vmatprep.mubr.msk.bf16.mxu1 %vm926_vm2, %v3812_v7  ;;  %v3818_v13 = vld [vmem:[%s5638_s0 + $0x218] sm:$0xff]   ;;  %v3819_v14 = vld [vmem:[%s5638_s0 + $0x20] sm:$0xff]   ;;  %v3821_v16 = vld [vmem:[%s5638_s0 + $0x28] sm:$0xff]  }
   0x5   :  { %3544 = vmatprep.subr.bf16.mxu0 %v1316_v5  ;;  %3804 = vmatprep.subr.bf16.mxu1 %v1316_v5  ;;  %v3820_v15 = vld [vmem:[%s5638_s0 + $0x220] sm:$0xff]   ;;  %v3822_v17 = vld [vmem:[%s5638_s0 + $0x228] sm:$0xff]   ;;  %v3823_v18 = vld [vmem:[%s5638_s0 + $0x30] sm:$0xff]  }
   0x6   :  { %3545 = vmatpush3.bf16.msra.mxu0 %v1316_v5  ;;  %3806 = vmatpush3.bf16.msra.mxu1 %v1316_v5  ;;  %v3824_v19 = vld [vmem:[%s5638_s0 + $0x230] sm:$0xff]   ;;  %v3825_v20 = vld [vmem:[%s5638_s0 + $0x38] sm:$0xff]   ;;  %v3827_v22 = vld [vmem:[%s5638_s0 + $0x40] sm:$0xff]  }
   0x7   :  { %3546 = vmatprep.subr.bf16.mxu0 %v3810_v6  ;;  %3805 = vmatprep.subr.bf16.mxu1 %v3810_v6  ;;  %v3826_v21 = vld [vmem:[%s5638_s0 + $0x238] sm:$0xff]   ;;  %v3828_v23 = vld [vmem:[%s5638_s0 + $0x240] sm:$0xff]   ;;  %v3829_v24 = vld [vmem:[%s5638_s0 + $0x48] sm:$0xff]  }
   0x8   :  { %v3830_v25 = vld [vmem:[%s5638_s0 + $0x248] sm:$0xff]   ;;  %v3831_v26 = vld [vmem:[%s5638_s0 + $0x50] sm:$0xff]   ;;  %v3833_v28 = vld [vmem:[%s5638_s0 + $0x58] sm:$0xff]  }
   0x9   :  { %v3832_v27 = vld [vmem:[%s5638_s0 + $0x250] sm:$0xff]   ;;  %v3834_v29 = vld [vmem:[%s5638_s0 + $0x258] sm:$0xff]   ;;  %v3835_v30 = vld [vmem:[%s5638_s0 + $0x60] sm:$0xff]  }
   0xa   :  { %3547 = vmatpush3.bf16.msra.mxu0 %v3810_v6  ;;  %3807 = vmatpush3.bf16.msra.mxu1 %v3810_v6  ;;  %v3836_v31 = vld [vmem:[%s5638_s0 + $0x260] sm:$0xff]   ;;  %v3837_v32 = vld [vmem:[%s5638_s0 + $0x68] sm:$0xff]   ;;  %v3839_v34 = vld [vmem:[%s5638_s0 + $0x70] sm:$0xff]  }
   0xb   :  { %v3838_v33 = vld [vmem:[%s5638_s0 + $0x268] sm:$0xff]   ;;  %v3840_v35 = vld [vmem:[%s5638_s0 + $0x270] sm:$0xff]   ;;  %v3841_v36 = vld [vmem:[%s5638_s0 + $0x78] sm:$0xff]  }
   0xc   :  { %v3842_v37 = vld [vmem:[%s5638_s0 + $0x278] sm:$0xff]   ;;  %v3843_v38 = vld [vmem:[%s5638_s0 + $0x80] sm:$0xff]   ;;  %v3845_v40 = vld [vmem:[%s5638_s0 + $0x88] sm:$0xff]  }
   0xd   :  { %3549 = vmatmul.mubr.msk.bf16.vlgmr.msra.gmra.mxu0 %vm926_vm2, %v3813_v8  ;;  %3677 = vmatmul.mubr.msk.bf16.vlgmr.msra.gmra.mxu1 %vm926_vm2, %v3814_v9  ;;  %v3844_v39 = vld [vmem:[%s5638_s0 + $0x280] sm:$0xff]   ;;  %v3846_v41 = vld [vmem:[%s5638_s0 + $0x288] sm:$0xff]   ;;  %v3847_v42 = vld [vmem:[%s5638_s0 + $0x90] sm:$0xff]  }
   0xe   :  { %3552 = vmatprep.mubr.msk.bf16.mxu0 %vm926_vm2, %v3815_v10  ;;  %3680 = vmatprep.mubr.msk.bf16.mxu1 %vm926_vm2, %v3816_v11  ;;  %v3848_v43 = vld [vmem:[%s5638_s0 + $0x290] sm:$0xff]   ;;  %v3849_v44 = vld [vmem:[%s5638_s0 + $0x98] sm:$0xff]   ;;  %v3851_v46 = vld [vmem:[%s5638_s0 + $0xa0] sm:$0xff]  }
   0xf   :  { %v3850_v45 = vld [vmem:[%s5638_s0 + $0x298] sm:$0xff]   ;;  %v3852_v47 = vld [vmem:[%s5638_s0 + $0x2a0] sm:$0xff]   ;;  %v3853_v48 = vld [vmem:[%s5638_s0 + $0xa8] sm:$0xff]  }
  0x10   :  { %v3854_v49 = vld [vmem:[%s5638_s0 + $0x2a8] sm:$0xff]   ;;  %v3855_v50 = vld [vmem:[%s5638_s0 + $0xb0] sm:$0xff]   ;;  %v3857_v52 = vld [vmem:[%s5638_s0 + $0xb8] sm:$0xff]  }
  0x11   :  { %v3856_v51 = vld [vmem:[%s5638_s0 + $0x2b0] sm:$0xff]   ;;  %v3858_v53 = vld [vmem:[%s5638_s0 + $0x2b8] sm:$0xff]   ;;  %v3859_v54 = vld [vmem:[%s5638_s0 + $0xc0] sm:$0xff]  }
  0x12   :  { %v3860_v55 = vld [vmem:[%s5638_s0 + $0x2c0] sm:$0xff]   ;;  %v3861_v56 = vld [vmem:[%s5638_s0 + $0xc8] sm:$0xff]   ;;  %v3863_v58 = vld [vmem:[%s5638_s0 + $0xd0] sm:$0xff]  }
  0x13   :  { %v3862_v57 = vld [vmem:[%s5638_s0 + $0x2c8] sm:$0xff]   ;;  %v3864_v59 = vld [vmem:[%s5638_s0 + $0x2d0] sm:$0xff]   ;;  %v3865_v60 = vld [vmem:[%s5638_s0 + $0xd8] sm:$0xff]  }
  0x14   :  { %v3866_v61 = vld [vmem:[%s5638_s0 + $0x2d8] sm:$0xff]   ;;  %v3867_v62 = vld [vmem:[%s5638_s0 + $0xe0] sm:$0xff]   ;;  %v3869_v0 = vld [vmem:[%s5638_s0 + $0xe8] sm:$0xff]  }
  0x15   :  { %3553 = vmatmul.mubr.msk.bf16.gmra.mxu0 %vm926_vm2, %v3817_v12  ;;  %3681 = vmatmul.mubr.msk.bf16.gmra.mxu1 %vm926_vm2, %v3818_v13  ;;  %v3868_v63 = vld [vmem:[%s5638_s0 + $0x2e0] sm:$0xff]   ;;  %v3870_v1 = vld [vmem:[%s5638_s0 + $0x2e8] sm:$0xff]   ;;  %v3871_v2 = vld [vmem:[%s5638_s0 + $0xf0] sm:$0xff]  }
  0x16   :  { %3556 = vmatprep.mubr.msk.bf16.mxu0 %vm926_vm2, %v3819_v14  ;;  %3684 = vmatprep.mubr.msk.bf16.mxu1 %vm926_vm2, %v3820_v15  ;;  %v3872_v3 = vld [vmem:[%s5638_s0 + $0x2f0] sm:$0xff]   ;;  %v3873_v4 = vld [vmem:[%s5638_s0 + $0xf8] sm:$0xff]   ;;  %v3875_v6 = vld [vmem:[%s5638_s0 + $0x100] sm:$0xff]  }
  0x17   :  { %v3874_v5 = vld [vmem:[%s5638_s0 + $0x2f8] sm:$0xff]   ;;  %v3876_v7 = vld [vmem:[%s5638_s0 + $0x300] sm:$0xff]   ;;  %v3877_v8 = vld [vmem:[%s5638_s0 + $0x108] sm:$0xff]  }
  0x18   :  { %v3878_v9 = vld [vmem:[%s5638_s0 + $0x308] sm:$0xff]   ;;  %v3879_v10 = vld [vmem:[%s5638_s0 + $0x110] sm:$0xff]   ;;  %v3881_v12 = vld [vmem:[%s5638_s0 + $0x118] sm:$0xff]  }
  0x19   :  { %v3880_v11 = vld [vmem:[%s5638_s0 + $0x310] sm:$0xff]   ;;  %v3882_v13 = vld [vmem:[%s5638_s0 + $0x318] sm:$0xff]   ;;  %v3883_v14 = vld [vmem:[%s5638_s0 + $0x120] sm:$0xff]  }
  0x1a   :  { %v3884_v15 = vld [vmem:[%s5638_s0 + $0x320] sm:$0xff]  }
  0x1d   :  { %3557 = vmatmul.mubr.msk.bf16.gmra.mxu0 %vm926_vm2, %v3821_v16  ;;  %3685 = vmatmul.mubr.msk.bf16.gmra.mxu1 %vm926_vm2, %v3822_v17  ;;  %v3885_v16 = vld [vmem:[%s5638_s0 + $0x128] sm:$0xff]  }
  0x1e   :  { %3560 = vmatprep.mubr.msk.bf16.mxu0 %vm926_vm2, %v3823_v18  ;;  %3688 = vmatprep.mubr.msk.bf16.mxu1 %vm926_vm2, %v3824_v19  ;;  %v3886_v17 = vld [vmem:[%s5638_s0 + $0x328] sm:$0xff]   ;;  %v3887_v18 = vld [vmem:[%s5638_s0 + $0x130] sm:$0xff]  }
  0x1f   :  { %v3888_v19 = vld [vmem:[%s5638_s0 + $0x330] sm:$0xff]  }
  0x25   :  { %3561 = vmatmul.mubr.msk.bf16.gmra.mxu0 %vm926_vm2, %v3825_v20  ;;  %3689 = vmatmul.mubr.msk.bf16.gmra.mxu1 %vm926_vm2, %v3826_v21  ;;  %v3889_v20 = vld [vmem:[%s5638_s0 + $0x138] sm:$0xff]  }
  0x26   :  { %3564 = vmatprep.mubr.msk.bf16.mxu0 %vm926_vm2, %v3827_v22  ;;  %3692 = vmatprep.mubr.msk.bf16.mxu1 %vm926_vm2, %v3828_v23  ;;  %v3890_v21 = vld [vmem:[%s5638_s0 + $0x338] sm:$0xff]   ;;  %v3891_v22 = vld [vmem:[%s5638_s0 + $0x140] sm:$0xff]  }
  0x27   :  { %v3892_v23 = vld [vmem:[%s5638_s0 + $0x340] sm:$0xff]  }
  0x2d   :  { %3565 = vmatmul.mubr.msk.bf16.gmra.mxu0 %vm926_vm2, %v3829_v24  ;;  %3693 = vmatmul.mubr.msk.bf16.gmra.mxu1 %vm926_vm2, %v3830_v25  ;;  %v3893_v24 = vld [vmem:[%s5638_s0 + $0x148] sm:$0xff]  }
  0x2e   :  { %3568 = vmatprep.mubr.msk.bf16.mxu0 %vm926_vm2, %v3831_v26  ;;  %3696 = vmatprep.mubr.msk.bf16.mxu1 %vm926_vm2, %v3832_v27  ;;  %v3894_v25 = vld [vmem:[%s5638_s0 + $0x348] sm:$0xff]   ;;  %v3895_v26 = vld [vmem:[%s5638_s0 + $0x150] sm:$0xff]  }
  0x2f   :  { %v3896_v27 = vld [vmem:[%s5638_s0 + $0x350] sm:$0xff]  }
  0x35   :  { %3569 = vmatmul.mubr.msk.bf16.gmra.mxu0 %vm926_vm2, %v3833_v28  ;;  %3697 = vmatmul.mubr.msk.bf16.gmra.mxu1 %vm926_vm2, %v3834_v29  ;;  %v3897_v28 = vld [vmem:[%s5638_s0 + $0x158] sm:$0xff]  }
  0x36   :  { %3572 = vmatprep.mubr.msk.bf16.mxu0 %vm926_vm2, %v3835_v30  ;;  %3700 = vmatprep.mubr.msk.bf16.mxu1 %vm926_vm2, %v3836_v31  ;;  %v3898_v29 = vld [vmem:[%s5638_s0 + $0x358] sm:$0xff]   ;;  %v3899_v30 = vld [vmem:[%s5638_s0 + $0x160] sm:$0xff]  }
  0x37   :  { %v3900_v31 = vld [vmem:[%s5638_s0 + $0x360] sm:$0xff]  }
  0x3d   :  { %3573 = vmatmul.mubr.msk.bf16.gmra.mxu0 %vm926_vm2, %v3837_v32  ;;  %3701 = vmatmul.mubr.msk.bf16.gmra.mxu1 %vm926_vm2, %v3838_v33  ;;  %v3901_v32 = vld [vmem:[%s5638_s0 + $0x168] sm:$0xff]  }
  0x3e   :  { %3576 = vmatprep.mubr.msk.bf16.mxu0 %vm926_vm2, %v3839_v34  ;;  %3704 = vmatprep.mubr.msk.bf16.mxu1 %vm926_vm2, %v3840_v35  ;;  %v3902_v33 = vld [vmem:[%s5638_s0 + $0x368] sm:$0xff]   ;;  %v3903_v34 = vld [vmem:[%s5638_s0 + $0x170] sm:$0xff]  }
  0x3f   :  { %v3904_v35 = vld [vmem:[%s5638_s0 + $0x370] sm:$0xff]  }
  0x45   :  { %3577 = vmatmul.mubr.msk.bf16.gmra.mxu0 %vm926_vm2, %v3841_v36  ;;  %3705 = vmatmul.mubr.msk.bf16.gmra.mxu1 %vm926_vm2, %v3842_v37  ;;  %v3905_v36 = vld [vmem:[%s5638_s0 + $0x178] sm:$0xff]  }
  0x46   :  { %3580 = vmatprep.mubr.msk.bf16.mxu0 %vm926_vm2, %v3843_v38  ;;  %3708 = vmatprep.mubr.msk.bf16.mxu1 %vm926_vm2, %v3844_v39  ;;  %v3906_v37 = vld [vmem:[%s5638_s0 + $0x378] sm:$0xff]   ;;  %v3907_v38 = vld [vmem:[%s5638_s0 + $0x180] sm:$0xff]  }
  0x47   :  { %v3908_v39 = vld [vmem:[%s5638_s0 + $0x380] sm:$0xff]  }
  0x4d   :  { %3581 = vmatmul.mubr.msk.bf16.gmra.mxu0 %vm926_vm2, %v3845_v40  ;;  %3709 = vmatmul.mubr.msk.bf16.gmra.mxu1 %vm926_vm2, %v3846_v41  ;;  %v3909_v40 = vld [vmem:[%s5638_s0 + $0x188] sm:$0xff]  }
  0x4e   :  { %3584 = vmatprep.mubr.msk.bf16.mxu0 %vm926_vm2, %v3847_v42  ;;  %3712 = vmatprep.mubr.msk.bf16.mxu1 %vm926_vm2, %v3848_v43  ;;  %v3910_v41 = vld [vmem:[%s5638_s0 + $0x388] sm:$0xff]   ;;  %v3911_v42 = vld [vmem:[%s5638_s0 + $0x190] sm:$0xff]  }
  0x4f   :  { %v3912_v43 = vld [vmem:[%s5638_s0 + $0x390] sm:$0xff]  }
  0x55   :  { %3585 = vmatmul.mubr.msk.bf16.gmra.mxu0 %vm926_vm2, %v3849_v44  ;;  %3713 = vmatmul.mubr.msk.bf16.gmra.mxu1 %vm926_vm2, %v3850_v45 }
  0x56   :  { %3588 = vmatprep.mubr.msk.bf16.mxu0 %vm926_vm2, %v3851_v46  ;;  %3716 = vmatprep.mubr.msk.bf16.mxu1 %vm926_vm2, %v3852_v47 }
  0x5d   :  { %3589 = vmatmul.mubr.msk.bf16.gmra.mxu0 %vm926_vm2, %v3853_v48  ;;  %3717 = vmatmul.mubr.msk.bf16.gmra.mxu1 %vm926_vm2, %v3854_v49 }
  0x5e   :  { %3592 = vmatprep.mubr.msk.bf16.mxu0 %vm926_vm2, %v3855_v50  ;;  %3720 = vmatprep.mubr.msk.bf16.mxu1 %vm926_vm2, %v3856_v51  ;;  %v3913_v50 = vld [vmem:[%s5638_s0 + $0x198] sm:$0xff]  }
  0x5f   :  { %v3914_v51 = vld [vmem:[%s5638_s0 + $0x398] sm:$0xff]  }
  0x65   :  { %3593 = vmatmul.mubr.msk.bf16.gmra.mxu0 %vm926_vm2, %v3857_v52  ;;  %3721 = vmatmul.mubr.msk.bf16.gmra.mxu1 %vm926_vm2, %v3858_v53  ;;  %v3915_v52 = vld [vmem:[%s5638_s0 + $0x1a0] sm:$0xff]  }
  0x66   :  { %3596 = vmatprep.mubr.msk.bf16.mxu0 %vm926_vm2, %v3859_v54  ;;  %3724 = vmatprep.mubr.msk.bf16.mxu1 %vm926_vm2, %v3860_v55  ;;  %v3916_v53 = vld [vmem:[%s5638_s0 + $0x3a0] sm:$0xff]  }
  0x6d   :  { %3597 = vmatmul.mubr.msk.bf16.gmra.mxu0 %vm926_vm2, %v3861_v56  ;;  %3725 = vmatmul.mubr.msk.bf16.gmra.mxu1 %vm926_vm2, %v3862_v57 }
  0x6e   :  { %3600 = vmatprep.mubr.msk.bf16.mxu0 %vm926_vm2, %v3863_v58  ;;  %3728 = vmatprep.mubr.msk.bf16.mxu1 %vm926_vm2, %v3864_v59 }
  0x75   :  { %3601 = vmatmul.mubr.msk.bf16.gmra.mxu0 %vm926_vm2, %v3865_v60  ;;  %3729 = vmatmul.mubr.msk.bf16.gmra.mxu1 %vm926_vm2, %v3866_v61 }
  0x76   :  { %3604 = vmatprep.mubr.msk.bf16.mxu0 %vm926_vm2, %v3867_v62  ;;  %3732 = vmatprep.mubr.msk.bf16.mxu1 %vm926_vm2, %v3868_v63  ;;  %v3917_v62 = vld [vmem:[%s5638_s0 + $0x1a8] sm:$0xff]  }
  0x77   :  { %v3918_v63 = vld [vmem:[%s5638_s0 + $0x3a8] sm:$0xff]  }
  0x7d   :  { %3605 = vmatmul.mubr.msk.bf16.gmra.mxu0 %vm926_vm2, %v3869_v0  ;;  %3733 = vmatmul.mubr.msk.bf16.gmra.mxu1 %vm926_vm2, %v3870_v1  ;;  %v3919_v0 = vld [vmem:[%s5638_s0 + $0x1b0] sm:$0xff]  }
  0x7e   :  { %3608 = vmatprep.mubr.msk.bf16.mxu0 %vm926_vm2, %v3871_v2  ;;  %3736 = vmatprep.mubr.msk.bf16.mxu1 %vm926_vm2, %v3872_v3  ;;  %v3920_v1 = vld [vmem:[%s5638_s0 + $0x3b0] sm:$0xff]  }
  0x85   :  { %3609 = vmatmul.mubr.msk.bf16.gmra.mxu0 %vm926_vm2, %v3873_v4  ;;  %3737 = vmatmul.mubr.msk.bf16.gmra.mxu1 %vm926_vm2, %v3874_v5 }
  0x86   :  { %3612 = vmatprep.mubr.msk.bf16.mxu0 %vm926_vm2, %v3875_v6  ;;  %3740 = vmatprep.mubr.msk.bf16.mxu1 %vm926_vm2, %v3876_v7 }
  0x8d   :  { %3613 = vmatmul.mubr.msk.bf16.gmra.mxu0 %vm926_vm2, %v3877_v8  ;;  %3741 = vmatmul.mubr.msk.bf16.gmra.mxu1 %vm926_vm2, %v3878_v9 }
  0x8e   :  { %3616 = vmatprep.mubr.msk.bf16.mxu0 %vm926_vm2, %v3879_v10  ;;  %3744 = vmatprep.mubr.msk.bf16.mxu1 %vm926_vm2, %v3880_v11  ;;  %v3921_v10 = vld [vmem:[%s5638_s0 + $0x1b8] sm:$0xff]  }
  0x8f   :  { %v3922_v11 = vld [vmem:[%s5638_s0 + $0x3b8] sm:$0xff]  }
  0x95   :  { %3617 = vmatmul.mubr.msk.bf16.gmra.mxu0 %vm926_vm2, %v3881_v12  ;;  %3745 = vmatmul.mubr.msk.bf16.gmra.mxu1 %vm926_vm2, %v3882_v13  ;;  %v3923_v12 = vld [vmem:[%s5638_s0 + $0x1c0] sm:$0xff]  }
  0x96   :  { %3620 = vmatprep.mubr.msk.bf16.mxu0 %vm926_vm2, %v3883_v14  ;;  %3748 = vmatprep.mubr.msk.bf16.mxu1 %vm926_vm2, %v3884_v15  ;;  %v3924_v13 = vld [vmem:[%s5638_s0 + $0x3c0] sm:$0xff]  }
  0x9d   :  { %3621 = vmatmul.mubr.msk.bf16.gmra.mxu0 %vm926_vm2, %v3885_v16  ;;  %3749 = vmatmul.mubr.msk.bf16.gmra.mxu1 %vm926_vm2, %v3886_v17 }
  0x9e   :  { %3624 = vmatprep.mubr.msk.bf16.mxu0 %vm926_vm2, %v3887_v18  ;;  %3752 = vmatprep.mubr.msk.bf16.mxu1 %vm926_vm2, %v3888_v19 }
  0xa5   :  { %3625 = vmatmul.mubr.msk.bf16.gmra.mxu0 %vm926_vm2, %v3889_v20  ;;  %3753 = vmatmul.mubr.msk.bf16.gmra.mxu1 %vm926_vm2, %v3890_v21 }
  0xa6   :  { %3628 = vmatprep.mubr.msk.bf16.mxu0 %vm926_vm2, %v3891_v22  ;;  %3756 = vmatprep.mubr.msk.bf16.mxu1 %vm926_vm2, %v3892_v23  ;;  %v3925_v22 = vld [vmem:[%s5638_s0 + $0x1c8] sm:$0xff]  }
  0xa7   :  { %v3926_v23 = vld [vmem:[%s5638_s0 + $0x3c8] sm:$0xff]  }
  0xad   :  { %3629 = vmatmul.mubr.msk.bf16.gmra.mxu0 %vm926_vm2, %v3893_v24  ;;  %3757 = vmatmul.mubr.msk.bf16.gmra.mxu1 %vm926_vm2, %v3894_v25  ;;  %v3927_v24 = vld [vmem:[%s5638_s0 + $0x1d0] sm:$0xff]  }
  0xae   :  { %3632 = vmatprep.mubr.msk.bf16.mxu0 %vm926_vm2, %v3895_v26  ;;  %3760 = vmatprep.mubr.msk.bf16.mxu1 %vm926_vm2, %v3896_v27  ;;  %v3928_v25 = vld [vmem:[%s5638_s0 + $0x3d0] sm:$0xff]  }
  0xb5   :  { %3633 = vmatmul.mubr.msk.bf16.gmra.mxu0 %vm926_vm2, %v3897_v28  ;;  %3761 = vmatmul.mubr.msk.bf16.gmra.mxu1 %vm926_vm2, %v3898_v29 }
  0xb6   :  { %3636 = vmatprep.mubr.msk.bf16.mxu0 %vm926_vm2, %v3899_v30  ;;  %3764 = vmatprep.mubr.msk.bf16.mxu1 %vm926_vm2, %v3900_v31 }
  0xbd   :  { %3637 = vmatmul.mubr.msk.bf16.gmra.mxu0 %vm926_vm2, %v3901_v32  ;;  %3765 = vmatmul.mubr.msk.bf16.gmra.mxu1 %vm926_vm2, %v3902_v33 }
  0xbe   :  { %3640 = vmatprep.mubr.msk.bf16.mxu0 %vm926_vm2, %v3903_v34  ;;  %3768 = vmatprep.mubr.msk.bf16.mxu1 %vm926_vm2, %v3904_v35  ;;  %v3929_v34 = vld [vmem:[%s5638_s0 + $0x1d8] sm:$0xff]  }
  0xbf   :  { %v3930_v35 = vld [vmem:[%s5638_s0 + $0x3d8] sm:$0xff]  }
  0xc5   :  { %3641 = vmatmul.mubr.msk.bf16.gmra.mxu0 %vm926_vm2, %v3905_v36  ;;  %3769 = vmatmul.mubr.msk.bf16.gmra.mxu1 %vm926_vm2, %v3906_v37  ;;  %v3931_v36 = vld [vmem:[%s5638_s0 + $0x1e0] sm:$0xff]  }
  0xc6   :  { %3644 = vmatprep.mubr.msk.bf16.mxu0 %vm926_vm2, %v3907_v38  ;;  %3772 = vmatprep.mubr.msk.bf16.mxu1 %vm926_vm2, %v3908_v39  ;;  %v3932_v37 = vld [vmem:[%s5638_s0 + $0x3e0] sm:$0xff]  }
  0xcd   :  { %v4370_v44 = vpop.f32.mrf.mxu0  ;;  %3645 = vmatmul.mubr.msk.bf16.gmra.mxu0 %vm926_vm2, %v3909_v40  ;;  %v4373_v45 = vpop.f32.mrf.mxu1  ;;  %3773 = vmatmul.mubr.msk.bf16.gmra.mxu1 %vm926_vm2, %v3910_v41 }
  0xce   :  { %5746 = vst [vmem:[#allocation2_spill] sm:$0xff] %v4373_v45  ;;  %3648 = vmatprep.mubr.msk.bf16.mxu0 %vm926_vm2, %v3911_v42  ;;  %3776 = vmatprep.mubr.msk.bf16.mxu1 %vm926_vm2, %v3912_v43 }
  0xcf   :  { %v4378_v46 = vpop.f32.mrf.mxu0  ;;  %v4380_v47 = vpop.f32.mrf.mxu1 }
  0xd0   :  { %5747 = vst [vmem:[#allocation3_spill] sm:$0xff] %v4380_v47 }
  0xd1   :  { %v4382_v48 = vpop.f32.mrf.mxu0  ;;  %v4384_v49 = vpop.f32.mrf.mxu1 }
  0xd2   :  { %5748 = vst [vmem:[#allocation4_spill] sm:$0xff] %v4384_v49 }
  0xd3   :  { %v4398_v54 = vpop.f32.mrf.mxu0  ;;  %v4400_v55 = vpop.f32.mrf.mxu1 }
  0xd4   :  { %5749 = vst [vmem:[#allocation5_spill] sm:$0xff] %v4400_v55 }
  0xd5   :  { %v4402_v56 = vpop.f32.mrf.mxu0  ;;  %3649 = vmatmul.mubr.msk.bf16.gmra.mxu0 %vm926_vm2, %v3913_v50  ;;  %v4405_v57 = vpop.f32.mrf.mxu1  ;;  %3777 = vmatmul.mubr.msk.bf16.gmra.mxu1 %vm926_vm2, %v3914_v51 }
  0xd6   :  { %5750 = vst [vmem:[#allocation6_spill] sm:$0xff] %v4405_v57  ;;  %3652 = vmatprep.mubr.msk.bf16.mxu0 %vm926_vm2, %v3915_v52  ;;  %3780 = vmatprep.mubr.msk.bf16.mxu1 %vm926_vm2, %v3916_v53  ;;  %v3933_v52 = vld [vmem:[%s5638_s0 + $0x1e8] sm:$0xff]  }
  0xd7   :  { %v4410_v58 = vpop.f32.mrf.mxu0  ;;  %v4412_v59 = vpop.f32.mrf.mxu1  ;;  %v3934_v53 = vld [vmem:[%s5638_s0 + $0x3e8] sm:$0xff]  }
  0xd8   :  { %5751 = vst [vmem:[#allocation7_spill] sm:$0xff] %v4412_v59 }
  0xd9   :  { %v4414_v60 = vpop.f32.mrf.mxu0  ;;  %v4416_v61 = vpop.f32.mrf.mxu1 }
  0xda   :  { %5752 = vst [vmem:[#allocation8_spill] sm:$0xff] %v4416_v61 }
  0xdb   :  { %v4430_v2 = vpop.f32.mrf.mxu0  ;;  %v4432_v3 = vpop.f32.mrf.mxu1 }
  0xdc   :  { %5753 = vst [vmem:[#allocation9_spill] sm:$0xff] %v4432_v3 }
  0xdd   :  { %v4434_v4 = vpop.f32.mrf.mxu0  ;;  %3653 = vmatmul.mubr.msk.bf16.gmra.mxu0 %vm926_vm2, %v3917_v62  ;;  %v4437_v5 = vpop.f32.mrf.mxu1  ;;  %3781 = vmatmul.mubr.msk.bf16.gmra.mxu1 %vm926_vm2, %v3918_v63  ;;  %v3935_v62 = vld [vmem:[%s5638_s0 + $0x1f0] sm:$0xff]  }
  0xde   :  { %5754 = vst [vmem:[#allocation10_spill] sm:$0xff] %v4437_v5  ;;  %3656 = vmatprep.mubr.msk.bf16.mxu0 %vm926_vm2, %v3919_v0  ;;  %3784 = vmatprep.mubr.msk.bf16.mxu1 %vm926_vm2, %v3920_v1  ;;  %v3936_v63 = vld [vmem:[%s5638_s0 + $0x3f0] sm:$0xff]  }
  0xdf   :  { %v4442_v6 = vpop.f32.mrf.mxu0  ;;  %v4444_v7 = vpop.f32.mrf.mxu1 }
  0xe0   :  { %5755 = vst [vmem:[#allocation11_spill] sm:$0xff] %v4444_v7 }
  0xe1   :  { %v4446_v8 = vpop.f32.mrf.mxu0  ;;  %v4448_v9 = vpop.f32.mrf.mxu1 }
  0xe2   :  { %5756 = vst [vmem:[#allocation12_spill] sm:$0xff] %v4448_v9 }
  0xe3   :  { %v4462_v14 = vpop.f32.mrf.mxu0  ;;  %v4464_v15 = vpop.f32.mrf.mxu1 }
  0xe4   :  { %5757 = vst [vmem:[#allocation13_spill] sm:$0xff] %v4464_v15 }
  0xe5   :  { %v4466_v16 = vpop.f32.mrf.mxu0  ;;  %3657 = vmatmul.mubr.msk.bf16.gmra.mxu0 %vm926_vm2, %v3921_v10  ;;  %v4469_v17 = vpop.f32.mrf.mxu1  ;;  %3785 = vmatmul.mubr.msk.bf16.gmra.mxu1 %vm926_vm2, %v3922_v11 }
  0xe6   :  { %5758 = vst [vmem:[#allocation14_spill] sm:$0xff] %v4466_v16  ;;  %5759 = vst [vmem:[#allocation15_spill] sm:$0xff] %v4469_v17  ;;  %3660 = vmatprep.mubr.msk.bf16.mxu0 %vm926_vm2, %v3923_v12  ;;  %3788 = vmatprep.mubr.msk.bf16.mxu1 %vm926_vm2, %v3924_v13 }
  0xe7   :  { %v4474_v18 = vpop.f32.mrf.mxu0  ;;  %v4476_v19 = vpop.f32.mrf.mxu1 }
  0xe8   :  { %5760 = vst [vmem:[#allocation16_spill] sm:$0xff] %v4474_v18  ;;  %5761 = vst [vmem:[#allocation17_spill] sm:$0xff] %v4476_v19 }
  0xe9   :  { %v4478_v20 = vpop.f32.mrf.mxu0  ;;  %v4480_v21 = vpop.f32.mrf.mxu1 }
  0xea   :  { %5762 = vst [vmem:[#allocation18_spill] sm:$0xff] %v4478_v20  ;;  %5763 = vst [vmem:[#allocation19_spill] sm:$0xff] %v4480_v21 }
  0xeb   :  { %v4494_v26 = vpop.f32.mrf.mxu0  ;;  %v4496_v27 = vpop.f32.mrf.mxu1 }
  0xec   :  { %5764 = vst [vmem:[#allocation20_spill] sm:$0xff] %v4494_v26  ;;  %5765 = vst [vmem:[#allocation21_spill] sm:$0xff] %v4496_v27 }
  0xed   :  { %v4498_v28 = vpop.f32.mrf.mxu0  ;;  %3661 = vmatmul.mubr.msk.bf16.gmra.mxu0 %vm926_vm2, %v3925_v22  ;;  %v4501_v29 = vpop.f32.mrf.mxu1  ;;  %3789 = vmatmul.mubr.msk.bf16.gmra.mxu1 %vm926_vm2, %v3926_v23 }
  0xee   :  { %5766 = vst [vmem:[#allocation22_spill] sm:$0xff] %v4498_v28  ;;  %5767 = vst [vmem:[#allocation23_spill] sm:$0xff] %v4501_v29  ;;  %3664 = vmatprep.mubr.msk.bf16.mxu0 %vm926_vm2, %v3927_v24  ;;  %3792 = vmatprep.mubr.msk.bf16.mxu1 %vm926_vm2, %v3928_v25  ;;  %v3937_v24 = vld [vmem:[%s5638_s0 + $0x1f8] sm:$0xff]  }
  0xef   :  { %v4506_v30 = vpop.f32.mrf.mxu0  ;;  %v4508_v31 = vpop.f32.mrf.mxu1  ;;  %v3938_v25 = vld [vmem:[%s5638_s0 + $0x3f8] sm:$0xff]  }
  0xf0   :  { %5768 = vst [vmem:[#allocation24_spill] sm:$0xff] %v4506_v30  ;;  %5769 = vst [vmem:[#allocation25_spill] sm:$0xff] %v4508_v31 }
  0xf1   :  { %v4510_v32 = vpop.f32.mrf.mxu0  ;;  %v4512_v33 = vpop.f32.mrf.mxu1 }
  0xf2   :  { %5770 = vst [vmem:[#allocation26_spill] sm:$0xff] %v4510_v32  ;;  %5771 = vst [vmem:[#allocation27_spill] sm:$0xff] %v4512_v33 }
  0xf3   :  { %v4526_v38 = vpop.f32.mrf.mxu0  ;;  %v4528_v39 = vpop.f32.mrf.mxu1 }
  0xf4   :  { %5772 = vst [vmem:[#allocation28_spill] sm:$0xff] %v4526_v38  ;;  %5773 = vst [vmem:[#allocation29_spill] sm:$0xff] %v4528_v39 }
  0xf5   :  { %v4530_v40 = vpop.f32.mrf.mxu0  ;;  %3665 = vmatmul.mubr.msk.bf16.gmra.mxu0 %vm926_vm2, %v3929_v34  ;;  %v4533_v41 = vpop.f32.mrf.mxu1  ;;  %3793 = vmatmul.mubr.msk.bf16.gmra.mxu1 %vm926_vm2, %v3930_v35 }
  0xf6   :  { %5774 = vst [vmem:[#allocation30_spill] sm:$0xff] %v4530_v40  ;;  %5775 = vst [vmem:[#allocation31_spill] sm:$0xff] %v4533_v41  ;;  %3668 = vmatprep.mubr.msk.bf16.mxu0 %vm926_vm2, %v3931_v36  ;;  %3796 = vmatprep.mubr.msk.bf16.mxu1 %vm926_vm2, %v3932_v37 }
  0xf7   :  { %v4538_v42 = vpop.f32.mrf.mxu0  ;;  %v4540_v43 = vpop.f32.mrf.mxu1 }
  0xf8   :  { %5776 = vst [vmem:[#allocation32_spill] sm:$0xff] %v4538_v42  ;;  %5777 = vst [vmem:[#allocation33_spill] sm:$0xff] %v4540_v43 }
  0xf9   :  { %v4542_v50 = vpop.f32.mrf.mxu0  ;;  %v4544_v51 = vpop.f32.mrf.mxu1 }
  0xfa   :  { %5778 = vst [vmem:[#allocation34_spill] sm:$0xff] %v4542_v50  ;;  %5779 = vst [vmem:[#allocation35_spill] sm:$0xff] %v4544_v51 }
  0xfb   :  { %v4558_v0 = vpop.f32.mrf.mxu0  ;;  %v4560_v1 = vpop.f32.mrf.mxu1 }
  0xfc   :  { %5780 = vst [vmem:[#allocation36_spill] sm:$0xff] %v4558_v0  ;;  %5781 = vst [vmem:[#allocation37_spill] sm:$0xff] %v4560_v1 }
  0xfd   :  { %v4562_v10 = vpop.f32.mrf.mxu0  ;;  %3669 = vmatmul.mubr.msk.bf16.gmra.mxu0 %vm926_vm2, %v3933_v52  ;;  %v4565_v11 = vpop.f32.mrf.mxu1  ;;  %3797 = vmatmul.mubr.msk.bf16.gmra.mxu1 %vm926_vm2, %v3934_v53 }
  0xfe   :  { %5782 = vst [vmem:[#allocation38_spill] sm:$0xff] %v4562_v10  ;;  %5783 = vst [vmem:[#allocation39_spill] sm:$0xff] %v4565_v11  ;;  %3672 = vmatprep.mubr.msk.bf16.mxu0 %vm926_vm2, %v3935_v62  ;;  %3800 = vmatprep.mubr.msk.bf16.mxu1 %vm926_vm2, %v3936_v63 }
  0xff   :  { %v4570_v12 = vpop.f32.mrf.mxu0  ;;  %v4572_v13 = vpop.f32.mrf.mxu1 }
 0x100   :  { %5784 = vst [vmem:[#allocation40_spill] sm:$0xff] %v4570_v12  ;;  %5785 = vst [vmem:[#allocation41_spill] sm:$0xff] %v4572_v13 }
 0x101   :  { %v4574_v22 = vpop.f32.mrf.mxu0  ;;  %v4576_v23 = vpop.f32.mrf.mxu1 }
 0x102   :  { %5786 = vst [vmem:[#allocation42_spill] sm:$0xff] %v4574_v22  ;;  %5787 = vst [vmem:[#allocation43_spill] sm:$0xff] %v4576_v23 }
 0x103   :  { %v4584_v34 = vpop.f32.mrf.mxu0  ;;  %v4586_v35 = vpop.f32.mrf.mxu1 }
 0x104   :  { %5788 = vst [vmem:[#allocation44_spill] sm:$0xff] %v4584_v34  ;;  %5789 = vst [vmem:[#allocation45_spill] sm:$0xff] %v4586_v35 }
 0x105   :  { %v4588_v36 = vpop.f32.mrf.mxu0  ;;  %3673 = vmatmul.mubr.msk.bf16.gmra.mxu0 %vm926_vm2, %v3937_v24  ;;  %v4591_v37 = vpop.f32.mrf.mxu1  ;;  %3801 = vmatmul.mubr.msk.bf16.gmra.mxu1 %vm926_vm2, %v3938_v25 }
 0x106   :  { %5790 = vst [vmem:[#allocation46_spill] sm:$0xff] %v4588_v36  ;;  %5791 = vst [vmem:[#allocation47_spill] sm:$0xff] %v4591_v37 }
 0x107   :  { %v4594_v52 = vpop.f32.mrf.mxu0  ;;  %v4596_v53 = vpop.f32.mrf.mxu1 }
 0x108   :  { %5792 = vst [vmem:[#allocation48_spill] sm:$0xff] %v4594_v52  ;;  %5793 = vst [vmem:[#allocation49_spill] sm:$0xff] %v4596_v53 }
 0x109   :  { %v4598_v62 = vpop.f32.mrf.mxu0  ;;  %v4600_v63 = vpop.f32.mrf.mxu1 }
 0x10a   :  { %5794 = vst [vmem:[#allocation50_spill] sm:$0xff] %v4598_v62  ;;  %5795 = vst [vmem:[#allocation51_spill] sm:$0xff] %v4600_v63 }
 0x10b   :  { %v4602_v23 = vpop.f32.mrf.mxu0  ;;  %v4604_v34 = vpop.f32.mrf.mxu1 }
 0x10c   :  { %5796 = vst [vmem:[#allocation52_spill] sm:$0xff] %v4602_v23  ;;  %5797 = vst [vmem:[#allocation53_spill] sm:$0xff] %v4604_v34 }
 0x10d   :  { %v4606_v35 = vpop.f32.mrf.mxu0  ;;  %v4608_v36 = vpop.f32.mrf.mxu1 }
 0x10e   :  { %5798 = vst [vmem:[#allocation54_spill] sm:$0xff] %v4608_v36 }
 0x10f   :  { %v4614_v52 = vpop.f32.mrf.mxu0  ;;  %v4616_v53 = vpop.f32.mrf.mxu1 }
 0x110   :  { %5799 = vst [vmem:[#allocation55_spill] sm:$0xff] %v4616_v53 }
 0x111   :  { %v4622_v23 = vpop.f32.mrf.mxu0  ;;  %v4624_v62 = vpop.f32.mrf.mxu1 }
 0x112   :  { %5800 = vst [vmem:[#allocation56_spill] sm:$0xff] %v4624_v62 }
 0x113   :  { %v4630_v36 = vpop.f32.mrf.mxu0  ;;  %v4632_v45 = vpop.f32.mrf.mxu1 }
 0x114   :  { %5801 = vst [vmem:[#allocation57_spill] sm:$0xff] %v4632_v45 }
 0x115   :  { %v4638_v53 = vpop.f32.mrf.mxu0  ;;  %v4640_v47 = vpop.f32.mrf.mxu1 }
 0x116   :  { %5802 = vst [vmem:[#allocation58_spill] sm:$0xff] %v4640_v47 }
 0x117   :  { %v4646_v62 = vpop.f32.mrf.mxu0  ;;  %v4648_v49 = vpop.f32.mrf.mxu1 }
 0x118   :  { %5803 = vst [vmem:[#allocation59_spill] sm:$0xff] %v4648_v49 }
 0x119   :  { %v4654_v45 = vpop.f32.mrf.mxu0  ;;  %v4656_v55 = vpop.f32.mrf.mxu1 }
 0x11a   :  { %5804 = vst [vmem:[#allocation60_spill] sm:$0xff] %v4656_v55 }
 0x11b   :  { %v4662_v47 = vpop.f32.mrf.mxu0  ;;  %v4664_v57 = vpop.f32.mrf.mxu1 }
 0x11c   :  { %5805 = vst [vmem:[#allocation61_spill] sm:$0xff] %v4664_v57 }
 0x11d   :  { %v4670_v49 = vpop.f32.mrf.mxu0  ;;  %v4672_v59 = vpop.f32.mrf.mxu1 }
 0x11e   :  { %5806 = vst [vmem:[#allocation62_spill] sm:$0xff] %v4672_v59 }
 0x11f   :  { %v4678_v55 = vpop.f32.mrf.mxu0  ;;  %v4680_v61 = vpop.f32.mrf.mxu1 }
 0x120   :  { %5807 = vst [vmem:[#allocation63_spill] sm:$0xff] %v4680_v61 }
 0x121   :  { %v4686_v57 = vpop.f32.mrf.mxu0  ;;  %v4688_v3 = vpop.f32.mrf.mxu1 }
 0x122   :  { %5808 = vst [vmem:[#allocation64_spill] sm:$0xff] %v4688_v3 }
 0x123   :  { %v4694_v59 = vpop.f32.mrf.mxu0  ;;  %v4696_v5 = vpop.f32.mrf.mxu1 }
 0x124   :  { %5809 = vst [vmem:[#allocation65_spill] sm:$0xff] %v4694_v59  ;;  %5810 = vst [vmem:[#allocation66_spill] sm:$0xff] %v4696_v5 }
 0x125   :  { %v4702_v61 = vpop.f32.mrf.mxu0  ;;  %v4704_v7 = vpop.f32.mrf.mxu1 }
 0x126   :  { %5811 = vst [vmem:[#allocation67_spill] sm:$0xff] %v4702_v61  ;;  %5812 = vst [vmem:[#allocation68_spill] sm:$0xff] %v4704_v7 }
 0x127   :  { %v4710_v3 = vpop.f32.mrf.mxu0  ;;  %v4712_v9 = vpop.f32.mrf.mxu1 }
 0x128   :  { %5813 = vst [vmem:[#allocation69_spill] sm:$0xff] %v4710_v3  ;;  %5814 = vst [vmem:[#allocation70_spill] sm:$0xff] %v4712_v9 }
 0x129   :  { %v4718_v5 = vpop.f32.mrf.mxu0  ;;  %v4720_v15 = vpop.f32.mrf.mxu1 }
 0x12a   :  { %5815 = vst [vmem:[#allocation71_spill] sm:$0xff] %v4718_v5  ;;  %5816 = vst [vmem:[#allocation72_spill] sm:$0xff] %v4720_v15 }
 0x12b   :  { %v4726_v7 = vpop.f32.mrf.mxu0  ;;  %v4728_v17 = vpop.f32.mrf.mxu1 }
 0x12c   :  { %5817 = vst [vmem:[#allocation73_spill] sm:$0xff] %v4726_v7  ;;  %5818 = vst [vmem:[#allocation74_spill] sm:$0xff] %v4728_v17 }
 0x12d   :  { %v4734_v9 = vpop.f32.mrf.mxu0  ;;  %v4736_v19 = vpop.f32.mrf.mxu1 }
 0x12e   :  { %5819 = vst [vmem:[#allocation75_spill] sm:$0xff] %v4734_v9  ;;  %5820 = vst [vmem:[#allocation76_spill] sm:$0xff] %v4736_v19 }
 0x12f   :  { %v4742_v15 = vpop.f32.mrf.mxu0  ;;  %v4744_v21 = vpop.f32.mrf.mxu1 }
 0x130   :  { %5821 = vst [vmem:[#allocation77_spill] sm:$0xff] %v4742_v15  ;;  %5822 = vst [vmem:[#allocation78_spill] sm:$0xff] %v4744_v21 }
 0x131   :  { %v4750_v17 = vpop.f32.mrf.mxu0  ;;  %v4752_v27 = vpop.f32.mrf.mxu1 }
 0x132   :  { %5823 = vst [vmem:[#allocation79_spill] sm:$0xff] %v4750_v17  ;;  %5824 = vst [vmem:[#allocation80_spill] sm:$0xff] %v4752_v27 }
 0x133   :  { %v4758_v19 = vpop.f32.mrf.mxu0  ;;  %v4760_v29 = vpop.f32.mrf.mxu1 }
 0x134   :  { %5825 = vst [vmem:[#allocation81_spill] sm:$0xff] %v4758_v19  ;;  %5826 = vst [vmem:[#allocation82_spill] sm:$0xff] %v4760_v29 }
 0x135   :  { %v4766_v21 = vpop.f32.mrf.mxu0  ;;  %v4768_v31 = vpop.f32.mrf.mxu1 }
 0x136   :  { %5827 = vst [vmem:[#allocation83_spill] sm:$0xff] %v4766_v21  ;;  %5828 = vst [vmem:[#allocation84_spill] sm:$0xff] %v4768_v31 }
 0x137   :  { %v4774_v27 = vpop.f32.mrf.mxu0  ;;  %v4776_v33 = vpop.f32.mrf.mxu1 }
 0x138   :  { %5829 = vst [vmem:[#allocation85_spill] sm:$0xff] %v4774_v27  ;;  %5830 = vst [vmem:[#allocation86_spill] sm:$0xff] %v4776_v33 }
 0x139   :  { %v4782_v29 = vpop.f32.mrf.mxu0  ;;  %v4784_v39 = vpop.f32.mrf.mxu1 }
 0x13a   :  { %5831 = vst [vmem:[#allocation87_spill] sm:$0xff] %v4782_v29  ;;  %5832 = vst [vmem:[#allocation88_spill] sm:$0xff] %v4784_v39 }
 0x13b   :  { %v4790_v31 = vpop.f32.mrf.mxu0  ;;  %v4792_v41 = vpop.f32.mrf.mxu1 }
 0x13c   :  { %5833 = vst [vmem:[#allocation89_spill] sm:$0xff] %v4790_v31  ;;  %5834 = vst [vmem:[#allocation90_spill] sm:$0xff] %v4792_v41 }
 0x13d   :  { %v4798_v33 = vpop.f32.mrf.mxu0  ;;  %v4800_v43 = vpop.f32.mrf.mxu1 }
 0x13e   :  { %5835 = vst [vmem:[#allocation91_spill] sm:$0xff] %v4798_v33  ;;  %5836 = vst [vmem:[#allocation92_spill] sm:$0xff] %v4800_v43 }
 0x13f   :  { %v4806_v39 = vpop.f32.mrf.mxu0  ;;  %v4808_v51 = vpop.f32.mrf.mxu1 }
 0x140   :  { %5837 = vst [vmem:[#allocation93_spill] sm:$0xff] %v4806_v39  ;;  %5838 = vst [vmem:[#allocation94_spill] sm:$0xff] %v4808_v51 }
 0x141   :  { %v4814_v41 = vpop.f32.mrf.mxu0  ;;  %v4816_v1 = vpop.f32.mrf.mxu1 }
 0x142   :  { %5839 = vst [vmem:[#allocation95_spill] sm:$0xff] %v4814_v41  ;;  %5840 = vst [vmem:[#allocation96_spill] sm:$0xff] %v4816_v1 }
 0x143   :  { %v4822_v43 = vpop.f32.mrf.mxu0  ;;  %v4824_v11 = vpop.f32.mrf.mxu1 }
 0x144   :  { %5842 = vst [vmem:[#allocation97_spill] sm:$0xff] %v4822_v43  ;;  %5843 = vst [vmem:[#allocation98_spill] sm:$0xff] %v4824_v11 }
 0x145   :  { %v4830_v51 = vpop.f32.mrf.mxu0  ;;  %v4832_v13 = vpop.f32.mrf.mxu1 }
 0x146   :  { %5846 = vst [vmem:[#allocation99_spill] sm:$0xff] %v4830_v51  ;;  %5847 = vst [vmem:[#allocation100_spill] sm:$0xff] %v4832_v13 }
 0x147   :  { %v4838_v1 = vpop.f32.mrf.mxu0  ;;  %v4840_v33 = vpop.f32.mrf.mxu1 }
 0x148   :  { %5849 = vst [vmem:[#allocation101_spill] sm:$0xff] %v4838_v1  ;;  %5850 = vst [vmem:[#allocation102_spill] sm:$0xff] %v4840_v33 }
 0x149   :  { %v4846_v11 = vpop.f32.mrf.mxu0  ;;  %v4848_v39 = vpop.f32.mrf.mxu1 }
 0x14a   :  { %5853 = vst [vmem:[#allocation103_spill] sm:$0xff] %v4846_v11  ;;  %5854 = vst [vmem:[#allocation104_spill] sm:$0xff] %v4848_v39 }
 0x14b   :  { %v4854_v13 = vpop.f32.mrf.mxu0  ;;  %v4856_v37 = vpop.f32.mrf.mxu1 }
 0x14c   :  { %5857 = vst [vmem:[#allocation105_spill] sm:$0xff] %v4854_v13  ;;  %5858 = vst [vmem:[#allocation106_spill] sm:$0xff] %v4856_v37 }
 0x14d   :  { %v4862_v33 = vpop.f32.mrf.mxu0  ;;  %v4864_v43 = vpop.f32.mrf.mxu1 }
 0x14f   :  { %v4866_v41 = vpop.f32.mrf.mxu0  ;;  %v4868_v24 = vpop.f32.mrf.mxu1 }
 0x151   :  { %v4870_v11 = vpop.f32.mrf.mxu0  ;;  %v4872_v25 = vpop.f32.mrf.mxu1 }
 0x153   :  { %v4874_v39 = vpop.f32.mrf.mxu0  ;;  %v4876_v51 = vpop.f32.mrf.mxu1 }
 0x155   :  { %v4878_v63 = vpop.f32.mrf.mxu0  ;;  %v4880_v13 = vpop.f32.mrf.mxu1 }
 0x157   :  { %v4882_v34 = vpop.f32.mrf.mxu0  ;;  %v4884_v37 = vpop.f32.mrf.mxu1 }
 0x159   :  { %v4886_v1 = vpop.f32.mrf.mxu0  ;;  %v4888_v12 = vpop.f32.mrf.mxu1 }
 0x15b   :  { %v4890_v10 = vpop.f32.mrf.mxu0  ;;  %v4892_v22 = vpop.f32.mrf.mxu1 }
 0x15d   :  { %v4894_v31 = vpop.f32.mrf.mxu0  ;;  %v4896_v0 = vpop.f32.mrf.mxu1 }
 0x15f   :  { %v4898_v29 = vpop.f32.mrf.mxu0  ;;  %v4900_v50 = vpop.f32.mrf.mxu1 }
 0x161   :  { %v4902_v27 = vpop.f32.mrf.mxu0  ;;  %v4904_v42 = vpop.f32.mrf.mxu1 }
 0x163   :  { %v4906_v21 = vpop.f32.mrf.mxu0  ;;  %v4908_v40 = vpop.f32.mrf.mxu1 }
 0x165   :  { %v4910_v19 = vpop.f32.mrf.mxu0  ;;  %v4912_v38 = vpop.f32.mrf.mxu1 }
 0x166   :  { %5861 = vst [vmem:[#allocation107_spill] sm:$0xff] %v4910_v19  ;;  %5862 = vst [vmem:[#allocation108_spill] sm:$0xff] %v4912_v38  ;;  %v5905_v19 = vmax.f32 %v4378_v46, %v4614_v52  ;;  %v5909_v46 = vmax.f32 %v4382_v48, %v4622_v23  ;;  %v5913_v48 = vmax.f32 %v4398_v54, %v4630_v36 }
 0x167   :  { %v4914_v17 = vpop.f32.mrf.mxu0  ;;  %v4916_v32 = vpop.f32.mrf.mxu1 }
 0x168   :  { %5863 = vst [vmem:[#allocation109_spill] sm:$0xff] %v4914_v17  ;;  %5864 = vst [vmem:[#allocation110_spill] sm:$0xff] %v4916_v32  ;;  %v5903_v17 = vld [vmem:[#allocation54_spill] sm:$0xff] }
 0x169   :  { %v4918_v15 = vpop.f32.mrf.mxu0  ;;  %v4920_v30 = vpop.f32.mrf.mxu1 }
 0x16a   :  { %5865 = vst [vmem:[#allocation111_spill] sm:$0xff] %v4918_v15  ;;  %5866 = vst [vmem:[#allocation112_spill] sm:$0xff] %v4920_v30 }
 0x16b   :  { %v4922_v9 = vpop.f32.mrf.mxu0  ;;  %v4924_v28 = vpop.f32.mrf.mxu1 }
 0x16c   :  { %5867 = vst [vmem:[#allocation113_spill] sm:$0xff] %v4922_v9  ;;  %5868 = vst [vmem:[#allocation114_spill] sm:$0xff] %v4924_v28 }
 0x16d   :  { %v4926_v7 = vpop.f32.mrf.mxu0  ;;  %v4928_v26 = vpop.f32.mrf.mxu1 }
 0x16e   :  { %5869 = vst [vmem:[#allocation115_spill] sm:$0xff] %v4926_v7  ;;  %5870 = vst [vmem:[#allocation116_spill] sm:$0xff] %v4928_v26 }
 0x16f   :  { %v4930_v5 = vpop.f32.mrf.mxu0  ;;  %v4932_v20 = vpop.f32.mrf.mxu1 }
 0x170   :  { %5871 = vst [vmem:[#allocation117_spill] sm:$0xff] %v4930_v5  ;;  %5872 = vst [vmem:[#allocation118_spill] sm:$0xff] %v4932_v20 }
 0x171   :  { %v4934_v3 = vpop.f32.mrf.mxu0  ;;  %v4936_v18 = vpop.f32.mrf.mxu1 }
 0x172   :  { %5873 = vst [vmem:[#allocation119_spill] sm:$0xff] %v4934_v3  ;;  %5874 = vst [vmem:[#allocation120_spill] sm:$0xff] %v4936_v18 }
 0x173   :  { %v4938_v32 = vpop.f32.mrf.mxu0  ;;  %v4940_v15 = vpop.f32.mrf.mxu1 }
 0x174   :  { %5875 = vst [vmem:[#allocation121_spill] sm:$0xff] %v4938_v32  ;;  %5876 = vst [vmem:[#allocation122_spill] sm:$0xff] %v4940_v15 }
 0x175   :  { %v4942_v30 = vpop.f32.mrf.mxu0  ;;  %v4944_v9 = vpop.f32.mrf.mxu1 }
 0x176   :  { %5877 = vst [vmem:[#allocation123_spill] sm:$0xff] %v4942_v30  ;;  %5878 = vst [vmem:[#allocation124_spill] sm:$0xff] %v4944_v9 }
 0x177   :  { %v4946_v28 = vpop.f32.mrf.mxu0  ;;  %v4948_v7 = vpop.f32.mrf.mxu1 }
 0x178   :  { %5879 = vst [vmem:[#allocation125_spill] sm:$0xff] %v4946_v28  ;;  %5880 = vst [vmem:[#allocation126_spill] sm:$0xff] %v4948_v7 }
 0x179   :  { %v4950_v26 = vpop.f32.mrf.mxu0  ;;  %v4952_v5 = vpop.f32.mrf.mxu1 }
 0x17a   :  { %5881 = vst [vmem:[#allocation127_spill] sm:$0xff] %v4950_v26  ;;  %5882 = vst [vmem:[#allocation128_spill] sm:$0xff] %v4952_v5 }
 0x17b   :  { %v4954_v20 = vpop.f32.mrf.mxu0  ;;  %v4956_v3 = vpop.f32.mrf.mxu1 }
 0x17c   :  { %5883 = vst [vmem:[#allocation129_spill] sm:$0xff] %v4954_v20  ;;  %5884 = vst [vmem:[#allocation130_spill] sm:$0xff] %v4956_v3 }
 0x17d   :  { %v4958_v18 = vpop.f32.mrf.mxu0  ;;  %v4960_v32 = vpop.f32.mrf.mxu1 }
 0x17e   :  { %5885 = vst [vmem:[#allocation131_spill] sm:$0xff] %v4958_v18  ;;  %5886 = vst [vmem:[#allocation132_spill] sm:$0xff] %v4960_v32 }
 0x17f   :  { %v4962_v15 = vpop.f32.mrf.mxu0  ;;  %v4964_v30 = vpop.f32.mrf.mxu1 }
 0x180   :  { %5887 = vst [vmem:[#allocation133_spill] sm:$0xff] %v4962_v15  ;;  %5888 = vst [vmem:[#allocation134_spill] sm:$0xff] %v4964_v30 }
 0x181   :  { %v4966_v9 = vpop.f32.mrf.mxu0  ;;  %v4968_v28 = vpop.f32.mrf.mxu1 }
 0x182   :  { %5889 = vst [vmem:[#allocation135_spill] sm:$0xff] %v4966_v9  ;;  %5890 = vst [vmem:[#allocation136_spill] sm:$0xff] %v4968_v28 }
 0x183   :  { %v4970_v7 = vpop.f32.mrf.mxu0  ;;  %v4972_v26 = vpop.f32.mrf.mxu1 }
 0x184   :  { %5891 = vst [vmem:[#allocation137_spill] sm:$0xff] %v4970_v7  ;;  %5892 = vst [vmem:[#allocation138_spill] sm:$0xff] %v4972_v26 }
 0x185   :  { %v4974_v5 = vpop.f32.mrf.mxu0  ;;  %v4976_v20 = vpop.f32.mrf.mxu1 }
 0x186   :  { %5893 = vst [vmem:[#allocation139_spill] sm:$0xff] %v4974_v5  ;;  %5894 = vst [vmem:[#allocation140_spill] sm:$0xff] %v4976_v20 }
 0x187   :  { %v4978_v3 = vpop.f32.mrf.mxu0  ;;  %v4980_v18 = vpop.f32.mrf.mxu1 }
 0x188   :  { %5895 = vst [vmem:[#allocation141_spill] sm:$0xff] %v4978_v3  ;;  %5896 = vst [vmem:[#allocation142_spill] sm:$0xff] %v4980_v18  ;;  %v4995_v3 = vld [vmem:[%s5639_s2] ss:$0 sm:$0xff] }
 0x189   :  { %v4982_v32 = vpop.f32.mrf.mxu0  ;;  %v4984_v15 = vpop.f32.mrf.mxu1 }
 0x18a   :  { %5897 = vst [vmem:[#allocation143_spill] sm:$0xff] %v4982_v32  ;;  %5898 = vst [vmem:[#allocation144_spill] sm:$0xff] %v4984_v15  ;;  %v5901_v15 = vmax.f32 %v4370_v44, %v4606_v35  ;;  %v5906_v44 = vld [vmem:[#allocation3_spill] sm:$0xff] }
 0x18b   :  { %v4986_v30 = vpop.f32.mrf.mxu0  ;;  %v4988_v9 = vpop.f32.mrf.mxu1 }
 0x18c   :  { %5899 = vst [vmem:[#allocation145_spill] sm:$0xff] %v4986_v30  ;;  %5900 = vst [vmem:[#allocation146_spill] sm:$0xff] %v4988_v9  ;;  %v5902_v30 = vld [vmem:[#allocation2_spill] sm:$0xff] }
 0x18d   :  { %v3646_v28 = vpop.f32.mrf.mxu0  ;;  %v3774_v7 = vpop.f32.mrf.mxu1  ;;  %v5904_v9 = vmax.f32 %v5902_v30, %v5903_v17 }
 0x18e   :  { %v2441_v26 = vmax.f32 %v4862_v33, %v3646_v28  ;;  %v2473_v5 = vmax.f32 %v4864_v43, %v3774_v7 }
 0x18f   :  { %v1736_v18 = vpop.f32.mrf.mxu0  ;;  %v2248_v20 = vpop.f32.mrf.mxu1 }
 0x190   :  { %v2505_v32 = vmax.f32 %v5901_v15, %v2441_v26  ;;  %v2537_v61 = vmax.f32 %v5904_v9, %v2473_v5  ;;  %v2439_v16 = vmax.f32 %v4866_v41, %v1736_v18  ;;  %v2471_v28 = vmax.f32 %v4868_v24, %v2248_v20  ;;  %v5907_v15 = vld [vmem:[#allocation55_spill] sm:$0xff]  ;;  %v5911_v41 = vld [vmem:[#allocation56_spill] sm:$0xff] }
 0x191   :  { %v3647_v7 = vpop.f32.mrf.mxu0  ;;  %v3775_v33 = vpop.f32.mrf.mxu1  ;;  %v5908_v26 = vmax.f32 %v5906_v44, %v5907_v15 }
 0x192   :  { %v2576_v43 = vadd.f32 %v4995_v3, %v2505_v32  ;;  %v2608_v38 = vadd.f32 %v4995_v3, %v2537_v61  ;;  %v2503_v59 = vmax.f32 %v5905_v19, %v2439_v16  ;;  %v2442_v5 = vmax.f32 %v4870_v11, %v3647_v7  ;;  %v5910_v19 = vld [vmem:[#allocation4_spill] sm:$0xff] }
 0x193   :  { %v2535_v35 = vmax.f32 %v5908_v26, %v2471_v28  ;;  %v2474_v9 = vmax.f32 %v4872_v25, %v3775_v33  ;;  %v1739_v17 = vpop.f32.mrf.mxu0  ;;  %v2251_v18 = vpop.f32.mrf.mxu1  ;;  %v5912_v52 = vmax.f32 %v5910_v19, %v5911_v41  ;;  %v5914_v26 = vld [vmem:[#allocation5_spill] sm:$0xff]  ;;  %v5918_v19 = vld [vmem:[#allocation6_spill] sm:$0xff] }
 0x194   :  { %v2640_v20 = vmax.f32 %v2576_v43, 0.0  ;;  %v2672_v30 = vmax.f32 %v2608_v38, 0.0  ;;  %v2574_v32 = vadd.f32 %v4995_v3, %v2503_v59  ;;  %v2506_v16 = vmax.f32 %v5909_v46, %v2442_v5  ;;  %v5919_v41 = vld [vmem:[#allocation58_spill] sm:$0xff] }
 0x195   :  { %v2606_v61 = vadd.f32 %v4995_v3, %v2535_v35  ;;  %v2538_v24 = vmax.f32 %v5912_v52, %v2474_v9  ;;  %v2440_v11 = vmax.f32 %v4874_v39, %v1739_v17  ;;  %v2472_v25 = vmax.f32 %v4876_v51, %v2251_v18  ;;  %v3650_v28 = vpop.f32.mrf.mxu0  ;;  %v3778_v7 = vpop.f32.mrf.mxu1  ;;  %v5915_v35 = vld [vmem:[#allocation57_spill] sm:$0xff] }
 0x196   :  { %v3352_v33 = vpack.c.bf16 %v2640_v20, %v2640_v20  ;;  %v3384_v38 = vpack.c.bf16 %v2672_v30, %v2672_v30  ;;  %v2638_v43 = vmax.f32 %v2574_v32, 0.0  ;;  %v2577_v44 = vadd.f32 %v4995_v3, %v2506_v16 }
 0x197   :  { %v2670_v59 = vmax.f32 %v2606_v61, 0.0  ;;  %v2609_v15 = vadd.f32 %v4995_v3, %v2538_v24  ;;  %v2504_v23 = vmax.f32 %v5913_v48, %v2440_v11  ;;  %v5916_v5 = vmax.f32 %v5914_v26, %v5915_v35  ;;  %v1752_v9 = vpop.f32.mrf.mxu0  ;;  %v2264_v51 = vpop.f32.mrf.mxu1  ;;  %v5922_v48 = vld [vmem:[#allocation7_spill] sm:$0xff] }
 0x198   :  { %2961 = vst.msk [vmem:[%s5640_s3 + $0x8] sm:$0xf] %vm2958_vm3, %v3352_v33  ;;  %2993 = vst.msk [vmem:[%s5640_s3 + $0x88] sm:$0xf] %vm2958_vm3, %v3384_v38  ;;  %v3350_v17 = vpack.c.bf16 %v2638_v43, %v2638_v43  ;;  %v2445_v54 = vmax.f32 %v4878_v63, %v3650_v28  ;;  %v2477_v36 = vmax.f32 %v4880_v13, %v3778_v7  ;;  %v2641_v20 = vmax.f32 %v2577_v44, 0.0 }
 0x199   :  { %v2536_v39 = vmax.f32 %v5916_v5, %v2472_v25  ;;  %v3382_v18 = vpack.c.bf16 %v2670_v59, %v2670_v59  ;;  %v2673_v30 = vmax.f32 %v2609_v15, 0.0  ;;  %v2575_v32 = vadd.f32 %v4995_v3, %v2504_v23  ;;  %v3651_v46 = vpop.f32.mrf.mxu0  ;;  %v3779_v16 = vpop.f32.mrf.mxu1  ;;  %v5923_v23 = vld [vmem:[#allocation59_spill] sm:$0xff] }
 0x19a   :  { %2959 = vst.msk [vmem:[%s5640_s3] sm:$0xf] %vm2958_vm3, %v3350_v17  ;;  %v5917_v13 = vmax.f32 %v4402_v56, %v4638_v53  ;;  %v5920_v52 = vmax.f32 %v5918_v19, %v5919_v41  ;;  %v2443_v11 = vmax.f32 %v4882_v34, %v1752_v9  ;;  %v2475_v25 = vmax.f32 %v4884_v37, %v2264_v51 }
 0x19b   :  { %v2607_v61 = vadd.f32 %v4995_v3, %v2536_v39  ;;  %2991 = vst.msk [vmem:[%s5640_s3 + $0x80] sm:$0xf] %vm2958_vm3, %v3382_v18  ;;  %v3353_v28 = vpack.c.bf16 %v2641_v20, %v2641_v20  ;;  %v3385_v7 = vpack.c.bf16 %v2673_v30, %v2673_v30  ;;  %v2639_v33 = vmax.f32 %v2575_v32, 0.0  ;;  %v1755_v43 = vpop.f32.mrf.mxu0  ;;  %v2267_v59 = vpop.f32.mrf.mxu1 }
 0x19c   :  { %v2509_v63 = vmax.f32 %v5917_v13, %v2445_v54  ;;  %v2541_v24 = vmax.f32 %v5920_v52, %v2477_v36  ;;  %v5921_v56 = vmax.f32 %v4410_v58, %v4646_v62  ;;  %v5924_v26 = vmax.f32 %v5922_v48, %v5923_v23  ;;  %v5926_v54 = vld [vmem:[#allocation8_spill] sm:$0xff]  ;;  %v5934_v48 = vld [vmem:[#allocation10_spill] sm:$0xff] }
 0x19d   :  { %v2671_v38 = vmax.f32 %v2607_v61, 0.0  ;;  %2962 = vst.msk [vmem:[%s5640_s3 + $0xc] sm:$0xf] %vm2958_vm3, %v3353_v28  ;;  %2994 = vst.msk [vmem:[%s5640_s3 + $0x8c] sm:$0xf] %vm2958_vm3, %v3385_v7  ;;  %v3351_v37 = vpack.c.bf16 %v2639_v33, %v2639_v33  ;;  %v2446_v5 = vmax.f32 %v4886_v1, %v3651_v46  ;;  %v2478_v58 = vmax.f32 %v4888_v12, %v3779_v16  ;;  %v3654_v62 = vpop.f32.mrf.mxu0  ;;  %v3782_v39 = vpop.f32.mrf.mxu1  ;;  %v5927_v36 = vld [vmem:[#allocation60_spill] sm:$0xff] }
 0x19e   :  { %v2580_v44 = vadd.f32 %v4995_v3, %v2509_v63  ;;  %v2612_v15 = vadd.f32 %v4995_v3, %v2541_v24  ;;  %v2507_v53 = vmax.f32 %v5921_v56, %v2443_v11  ;;  %v2539_v34 = vmax.f32 %v5924_v26, %v2475_v25  ;;  %v5930_v11 = vld [vmem:[#allocation9_spill] sm:$0xff]  ;;  %v5935_v23 = vld [vmem:[#allocation62_spill] sm:$0xff] }
 0x19f   :  { %v3383_v35 = vpack.c.bf16 %v2671_v38, %v2671_v38  ;;  %2960 = vst.msk [vmem:[%s5640_s3 + $0x4] sm:$0xf] %vm2958_vm3, %v3351_v37  ;;  %v5925_v1 = vmax.f32 %v4414_v60, %v4654_v45  ;;  %v5928_v20 = vmax.f32 %v5926_v54, %v5927_v36  ;;  %v2444_v32 = vmax.f32 %v4890_v10, %v1755_v43  ;;  %v1768_v46 = vpop.f32.mrf.mxu0  ;;  %v2280_v16 = vpop.f32.mrf.mxu1  ;;  %v5931_v25 = vld [vmem:[#allocation61_spill] sm:$0xff] }
 0x1a0   :  { %v2644_v9 = vmax.f32 %v2580_v44, 0.0  ;;  %v2676_v51 = vmax.f32 %v2612_v15, 0.0  ;;  %v2578_v17 = vadd.f32 %v4995_v3, %v2507_v53  ;;  %v2610_v18 = vadd.f32 %v4995_v3, %v2539_v34 }
 0x1a1   :  { %2992 = vst.msk [vmem:[%s5640_s3 + $0x84] sm:$0xf] %vm2958_vm3, %v3383_v35  ;;  %v2510_v12 = vmax.f32 %v5925_v1, %v2446_v5  ;;  %v2542_v30 = vmax.f32 %v5928_v20, %v2478_v58  ;;  %v2476_v61 = vmax.f32 %v4892_v22, %v2267_v59  ;;  %v5929_v45 = vmax.f32 %v4430_v2, %v4662_v47  ;;  %v3655_v7 = vpop.f32.mrf.mxu0  ;;  %v3783_v22 = vpop.f32.mrf.mxu1  ;;  %v5938_v1 = vld [vmem:[#allocation11_spill] sm:$0xff] }
 0x1a2   :  { %v3356_v13 = vpack.c.bf16 %v2644_v9, %v2644_v9  ;;  %v3388_v63 = vpack.c.bf16 %v2676_v51, %v2676_v51  ;;  %v2642_v19 = vmax.f32 %v2578_v17, 0.0  ;;  %v2674_v41 = vmax.f32 %v2610_v18, 0.0 }
 0x1a3   :  { %v2581_v52 = vadd.f32 %v4995_v3, %v2510_v12  ;;  %v2613_v24 = vadd.f32 %v4995_v3, %v2542_v30  ;;  %v2508_v60 = vmax.f32 %v5929_v45, %v2444_v32  ;;  %v5932_v28 = vmax.f32 %v5930_v11, %v5931_v25  ;;  %v1771_v56 = vpop.f32.mrf.mxu0  ;;  %v2283_v53 = vpop.f32.mrf.mxu1  ;;  %v5939_v12 = vld [vmem:[#allocation63_spill] sm:$0xff] }
 0x1a4   :  { %2965 = vst.msk [vmem:[%s5640_s3 + $0x18] sm:$0xf] %vm2958_vm3, %v3356_v13  ;;  %2997 = vst.msk [vmem:[%s5640_s3 + $0x98] sm:$0xf] %vm2958_vm3, %v3388_v63  ;;  %v3354_v33 = vpack.c.bf16 %v2642_v19, %v2642_v19  ;;  %v3386_v38 = vpack.c.bf16 %v2674_v41, %v2674_v41  ;;  %v2449_v47 = vmax.f32 %v4894_v31, %v3654_v62  ;;  %v5942_v13 = vld [vmem:[#allocation12_spill] sm:$0xff] }
 0x1a5   :  { %v2540_v10 = vmax.f32 %v5932_v28, %v2476_v61  ;;  %v2481_v2 = vmax.f32 %v4896_v0, %v3782_v39  ;;  %v2645_v43 = vmax.f32 %v2581_v52, 0.0  ;;  %v2677_v59 = vmax.f32 %v2613_v24, 0.0  ;;  %v3658_v9 = vpop.f32.mrf.mxu0  ;;  %v3786_v51 = vpop.f32.mrf.mxu1  ;;  %v5943_v63 = vld [vmem:[#allocation64_spill] sm:$0xff] }
 0x1a6   :  { %v2579_v44 = vadd.f32 %v4995_v3, %v2508_v60  ;;  %2963 = vst.msk [vmem:[%s5640_s3 + $0x10] sm:$0xf] %vm2958_vm3, %v3354_v33  ;;  %2995 = vst.msk [vmem:[%s5640_s3 + $0x90] sm:$0xf] %vm2958_vm3, %v3386_v38  ;;  %v5933_v31 = vmax.f32 %v4434_v4, %v4670_v49  ;;  %v5936_v26 = vmax.f32 %v5934_v48, %v5935_v23  ;;  %v5947_v38 = vld [vmem:[#allocation13_spill] sm:$0xff] }
 0x1a7   :  { %v2611_v15 = vadd.f32 %v4995_v3, %v2540_v10  ;;  %v2447_v37 = vmax.f32 %v4898_v29, %v1768_v46  ;;  %v2479_v35 = vmax.f32 %v4900_v50, %v2280_v16  ;;  %v3357_v5 = vpack.c.bf16 %v2645_v43, %v2645_v43  ;;  %v2296_v30 = vpop.f32.mrf.mxu1 }
 0x1a8   :  { %v2513_v0 = vmax.f32 %v5933_v31, %v2449_v47  ;;  %v2545_v34 = vmax.f32 %v5936_v26, %v2481_v2  ;;  %v3389_v58 = vpack.c.bf16 %v2677_v59, %v2677_v59  ;;  %v2643_v62 = vmax.f32 %v2579_v44, 0.0  ;;  %v5948_v47 = vld [vmem:[#allocation66_spill] sm:$0xff] }
 0x1a9   :  { %v2675_v39 = vmax.f32 %v2611_v15, 0.0  ;;  %v5937_v49 = vmax.f32 %v4442_v6, %v4678_v55  ;;  %v5940_v54 = vmax.f32 %v5938_v1, %v5939_v12  ;;  %2966 = vst.msk [vmem:[%s5640_s3 + $0x1c] sm:$0xf] %vm2958_vm3, %v3357_v5  ;;  %v2450_v20 = vmax.f32 %v4902_v27, %v3655_v7  ;;  %v1784_v6 = vpop.f32.mrf.mxu0  ;;  %v3787_v60 = vpop.f32.mrf.mxu1 }
 0x1aa   :  { %v2584_v17 = vadd.f32 %v4995_v3, %v2513_v0  ;;  %v2616_v18 = vadd.f32 %v4995_v3, %v2545_v34  ;;  %2998 = vst.msk [vmem:[%s5640_s3 + $0x9c] sm:$0xf] %vm2958_vm3, %v3389_v58  ;;  %v3355_v50 = vpack.c.bf16 %v2643_v62, %v2643_v62  ;;  %v2482_v55 = vmax.f32 %v4904_v42, %v3783_v22  ;;  %v5955_v62 = vld [vmem:[#allocation15_spill] sm:$0xff] }
 0x1ab   :  { %v2511_v4 = vmax.f32 %v5937_v49, %v2447_v37  ;;  %v2543_v29 = vmax.f32 %v5940_v54, %v2479_v35  ;;  %v3387_v36 = vpack.c.bf16 %v2675_v39, %v2675_v39  ;;  %v5941_v27 = vmax.f32 %v4446_v8, %v4686_v57  ;;  %v3659_v45 = vpop.f32.mrf.mxu0  ;;  %v5945_v57 = vld [vmem:[#allocation65_spill] sm:$0xff]  ;;  %v5952_v37 = vld [vmem:[#allocation14_spill] sm:$0xff]  ;;  %v5953_v35 = vld [vmem:[#allocation67_spill] sm:$0xff] }
 0x1ac   :  { %v2648_v32 = vmax.f32 %v2584_v17, 0.0  ;;  %v2680_v61 = vmax.f32 %v2616_v18, 0.0  ;;  %2964 = vst.msk [vmem:[%s5640_s3 + $0x14] sm:$0xf] %vm2958_vm3, %v3355_v50  ;;  %v5944_v19 = vmax.f32 %v5942_v13, %v5943_v63  ;;  %v2448_v52 = vmax.f32 %v4906_v21, %v1771_v56  ;;  %v5951_v56 = vld [vmem:[#allocation108_spill] sm:$0xff]  ;;  %v5958_v17 = vld [vmem:[#allocation109_spill] sm:$0xff] }
 0x1ad   :  { %v2582_v46 = vadd.f32 %v4995_v3, %v2511_v4  ;;  %v2614_v16 = vadd.f32 %v4995_v3, %v2543_v29  ;;  %2996 = vst.msk [vmem:[%s5640_s3 + $0x94] sm:$0xf] %vm2958_vm3, %v3387_v36  ;;  %v2514_v42 = vmax.f32 %v5941_v27, %v2450_v20  ;;  %v2480_v24 = vmax.f32 %v4908_v40, %v2283_v53  ;;  %v1787_v43 = vpop.f32.mrf.mxu0  ;;  %v2299_v40 = vpop.f32.mrf.mxu1  ;;  %v5956_v39 = vld [vmem:[#allocation68_spill] sm:$0xff]  ;;  %v5959_v49 = vld [vmem:[#allocation110_spill] sm:$0xff]  ;;  %v5963_v27 = vld [vmem:[#allocation17_spill] sm:$0xff] }
 0x1ae   :  { %v2546_v41 = vmax.f32 %v5944_v19, %v2482_v55  ;;  %v3360_v11 = vpack.c.bf16 %v2648_v32, %v2648_v32  ;;  %v3392_v25 = vpack.c.bf16 %v2680_v61, %v2680_v61  ;;  %v5946_v8 = vmax.f32 %v4462_v14, %v5945_v57  ;;  %v5950_v14 = vld [vmem:[#allocation107_spill] sm:$0xff]  ;;  %v5960_v32 = vld [vmem:[#allocation16_spill] sm:$0xff]  ;;  %v5961_v61 = vld [vmem:[#allocation69_spill] sm:$0xff] }
 0x1af   :  { %v2646_v28 = vmax.f32 %v2582_v46, 0.0  ;;  %v2678_v10 = vmax.f32 %v2614_v16, 0.0  ;;  %v2585_v7 = vadd.f32 %v4995_v3, %v2514_v42  ;;  %v5949_v2 = vmax.f32 %v5947_v38, %v5948_v47  ;;  %v5189_v26 = vpop.f32.mrf.mxu0  ;;  %v5191_v34 = vpop.f32.mrf.mxu1  ;;  %v5966_v19 = vld [vmem:[#allocation111_spill] sm:$0xff]  ;;  %v5972_v38 = vld [vmem:[#allocation72_spill] sm:$0xff] }
 0x1b0   :  { %v2617_v22 = vadd.f32 %v4995_v3, %v2546_v41  ;;  %v2512_v33 = vmax.f32 %v5946_v8, %v2448_v52  ;;  %2969 = vst.msk [vmem:[%s5640_s3 + $0x28] sm:$0xf] %vm2958_vm3, %v3360_v11  ;;  %3001 = vst.msk [vmem:[%s5640_s3 + $0xa8] sm:$0xf] %vm2958_vm3, %v3392_v25  ;;  %v2453_v15 = vmax.f32 %v5950_v14, %v3658_v9  ;;  %v5967_v52 = vld [vmem:[#allocation112_spill] sm:$0xff] }
 0x1b1   :  { %v2544_v21 = vmax.f32 %v5949_v2, %v2480_v24  ;;  %v3358_v59 = vpack.c.bf16 %v2646_v28, %v2646_v28  ;;  %v3390_v44 = vpack.c.bf16 %v2678_v10, %v2678_v10  ;;  %v2485_v53 = vmax.f32 %v5951_v56, %v3786_v51  ;;  %v5209_v50 = vpop.f32.mrf.mxu0  ;;  %v5211_v36 = vpop.f32.mrf.mxu1 }
 0x1b2   :  { %v2649_v31 = vmax.f32 %v2585_v7, 0.0  ;;  %v2681_v0 = vmax.f32 %v2617_v22, 0.0  ;;  %v2583_v48 = vadd.f32 %v4995_v3, %v2512_v33  ;;  %v5954_v5 = vmax.f32 %v5952_v37, %v5953_v35  ;;  %v5971_v33 = vld [vmem:[#allocation19_spill] sm:$0xff]  ;;  %v5976_v35 = vld [vmem:[#allocation20_spill] sm:$0xff] }
 0x1b3   :  { %v2615_v23 = vadd.f32 %v4995_v3, %v2544_v21  ;;  %2967 = vst.msk [vmem:[%s5640_s3 + $0x20] sm:$0xf] %vm2958_vm3, %v3358_v59  ;;  %2999 = vst.msk [vmem:[%s5640_s3 + $0xa0] sm:$0xf] %vm2958_vm3, %v3390_v44  ;;  %v5957_v9 = vmax.f32 %v5955_v62, %v5956_v39  ;;  %v2451_v18 = vmax.f32 %v5958_v17, %v1784_v6  ;;  %v5964_v6 = vld [vmem:[#allocation70_spill] sm:$0xff]  ;;  %v5231_v11 = vpop.f32.mrf.mxu0  ;;  %v5233_v25 = vpop.f32.mrf.mxu1  ;;  %v5974_v21 = vld [vmem:[#allocation113_spill] sm:$0xff] }
 0x1b4   :  { %v2517_v58 = vmax.f32 %v5954_v5, %v2453_v15  ;;  %v2483_v4 = vmax.f32 %v5959_v49, %v2296_v30  ;;  %v3361_v1 = vpack.c.bf16 %v2649_v31, %v2649_v31  ;;  %v3393_v12 = vpack.c.bf16 %v2681_v0, %v2681_v0  ;;  %v5975_v44 = vld [vmem:[#allocation114_spill] sm:$0xff]  ;;  %v5977_v5 = vld [vmem:[#allocation73_spill] sm:$0xff] }
 0x1b5   :  { %v2549_v51 = vmax.f32 %v5957_v9, %v2485_v53  ;;  %v2647_v54 = vmax.f32 %v2583_v48, 0.0  ;;  %v2679_v29 = vmax.f32 %v2615_v23, 0.0  ;;  %v5962_v46 = vmax.f32 %v5960_v32, %v5961_v61  ;;  %v5253_v15 = vpop.f32.mrf.mxu0  ;;  %v5255_v56 = vpop.f32.mrf.mxu1  ;;  %v5979_v39 = vld [vmem:[#allocation21_spill] sm:$0xff] }
 0x1b6   :  { %v2588_v20 = vadd.f32 %v4995_v3, %v2517_v58  ;;  %v5965_v42 = vmax.f32 %v5963_v27, %v5964_v6  ;;  %2970 = vst.msk [vmem:[%s5640_s3 + $0x2c] sm:$0xf] %vm2958_vm3, %v3361_v1  ;;  %3002 = vst.msk [vmem:[%s5640_s3 + $0xac] sm:$0xf] %vm2958_vm3, %v3393_v12  ;;  %v2454_v41 = vmax.f32 %v5966_v19, %v3659_v45  ;;  %v5968_v45 = vld [vmem:[#allocation18_spill] sm:$0xff]  ;;  %v5983_v12 = vld [vmem:[#allocation116_spill] sm:$0xff] }
 0x1b7   :  { %v2620_v55 = vadd.f32 %v4995_v3, %v2549_v51  ;;  %v2515_v16 = vmax.f32 %v5962_v46, %v2451_v18  ;;  %v3359_v13 = vpack.c.bf16 %v2647_v54, %v2647_v54  ;;  %v3391_v63 = vpack.c.bf16 %v2679_v29, %v2679_v29  ;;  %v5265_v51 = vpop.f32.mrf.mxu0  ;;  %v5267_v17 = vpop.f32.mrf.mxu1  ;;  %v5987_v6 = vld [vmem:[#allocation23_spill] sm:$0xff] }
 0x1b8   :  { %v2547_v30 = vmax.f32 %v5965_v42, %v2483_v4  ;;  %v2486_v24 = vmax.f32 %v5967_v52, %v3787_v60  ;;  %v2652_v28 = vmax.f32 %v2588_v20, 0.0  ;;  %v5969_v60 = vld [vmem:[#allocation71_spill] sm:$0xff]  ;;  %v5973_v47 = vmax.f32 %v5971_v33, %v5972_v38  ;;  %v5988_v42 = vld [vmem:[#allocation76_spill] sm:$0xff]  ;;  %v5993_v33 = vld [vmem:[#allocation77_spill] sm:$0xff] }
 0x1b9   :  { %v2684_v10 = vmax.f32 %v2620_v55, 0.0  ;;  %v2586_v7 = vadd.f32 %v4995_v3, %v2515_v16  ;;  %2968 = vst.msk [vmem:[%s5640_s3 + $0x24] sm:$0xf] %vm2958_vm3, %v3359_v13  ;;  %3000 = vst.msk [vmem:[%s5640_s3 + $0xa4] sm:$0xf] %vm2958_vm3, %v3391_v63  ;;  %v5970_v57 = vmax.f32 %v5968_v45, %v5969_v60  ;;  %v2452_v59 = vmax.f32 %v5974_v21, %v1787_v43  ;;  %v5980_v43 = vld [vmem:[#allocation74_spill] sm:$0xff]  ;;  %v5283_v61 = vpop.f32.mrf.mxu0  ;;  %v5285_v46 = vpop.f32.mrf.mxu1 }
 0x1ba   :  { %v2618_v22 = vadd.f32 %v4995_v3, %v2547_v30  ;;  %v2550_v2 = vmax.f32 %v5973_v47, %v2486_v24  ;;  %v2484_v14 = vmax.f32 %v5975_v44, %v2299_v40  ;;  %v3364_v53 = vpack.c.bf16 %v2652_v28, %v2652_v28  ;;  %v5982_v4 = vld [vmem:[#allocation115_spill] sm:$0xff]  ;;  %v5990_v63 = vld [vmem:[#allocation117_spill] sm:$0xff] }
 0x1bb   :  { %v2518_v8 = vmax.f32 %v5970_v57, %v2454_v41  ;;  %v3396_v31 = vpack.c.bf16 %v2684_v10, %v2684_v10  ;;  %v2650_v0 = vmax.f32 %v2586_v7, 0.0  ;;  %v5978_v58 = vmax.f32 %v5976_v35, %v5977_v5  ;;  %v5991_v41 = vld [vmem:[#allocation118_spill] sm:$0xff]  ;;  %v5307_v45 = vpop.f32.mrf.mxu1 }
 0x1bc   :  { %v2682_v48 = vmax.f32 %v2618_v22, 0.0  ;;  %v2621_v37 = vadd.f32 %v4995_v3, %v2550_v2  ;;  %v5981_v9 = vmax.f32 %v5979_v39, %v5980_v43  ;;  %2973 = vst.msk [vmem:[%s5640_s3 + $0x38] sm:$0xf] %vm2958_vm3, %v3364_v53  ;;  %v2457_v1 = vmax.f32 %v5982_v4, %v5189_v26  ;;  %v5984_v26 = vld [vmem:[#allocation22_spill] sm:$0xff]  ;;  %v5305_v22 = vpop.f32.mrf.mxu0  ;;  %v6003_v43 = vld [vmem:[#allocation27_spill] sm:$0xff] }
 0x1bd   :  { %v2589_v23 = vadd.f32 %v4995_v3, %v2518_v8  ;;  %v2516_v62 = vmax.f32 %v5978_v58, %v2452_v59  ;;  %3005 = vst.msk [vmem:[%s5640_s3 + $0xb8] sm:$0xf] %vm2958_vm3, %v3396_v31  ;;  %v3362_v18 = vpack.c.bf16 %v2650_v0, %v2650_v0  ;;  %v2489_v54 = vmax.f32 %v5983_v12, %v5191_v34  ;;  %v5985_v34 = vld [vmem:[#allocation75_spill] sm:$0xff]  ;;  %v5992_v8 = vld [vmem:[#allocation24_spill] sm:$0xff]  ;;  %v5996_v2 = vld [vmem:[#allocation78_spill] sm:$0xff] }
 0x1be   :  { %v2548_v40 = vmax.f32 %v5981_v9, %v2484_v14  ;;  %v3394_v49 = vpack.c.bf16 %v2682_v48, %v2682_v48  ;;  %v2685_v20 = vmax.f32 %v2621_v37, 0.0  ;;  %v5986_v16 = vmax.f32 %v5984_v26, %v5985_v34  ;;  %v5998_v14 = vld [vmem:[#allocation119_spill] sm:$0xff]  ;;  %v5999_v31 = vld [vmem:[#allocation120_spill] sm:$0xff]  ;;  %v5329_v48 = vpop.f32.mrf.mxu0 }
 0x1bf   :  { %v2653_v29 = vmax.f32 %v2589_v23, 0.0  ;;  %v2587_v55 = vadd.f32 %v4995_v3, %v2516_v62  ;;  %2971 = vst.msk [vmem:[%s5640_s3 + $0x30] sm:$0xf] %vm2958_vm3, %v3362_v18  ;;  %v5989_v30 = vmax.f32 %v5987_v6, %v5988_v42  ;;  %v2455_v19 = vmax.f32 %v5990_v63, %v5209_v50  ;;  %v5995_v50 = vld [vmem:[#allocation25_spill] sm:$0xff]  ;;  %v5331_v23 = vpop.f32.mrf.mxu1  ;;  %v6004_v9 = vld [vmem:[#allocation80_spill] sm:$0xff] }
 0x1c0   :  { %v2619_v32 = vadd.f32 %v4995_v3, %v2548_v40  ;;  %3003 = vst.msk [vmem:[%s5640_s3 + $0xb0] sm:$0xf] %vm2958_vm3, %v3394_v49  ;;  %v2521_v27 = vmax.f32 %v5986_v16, %v2457_v1  ;;  %v2487_v52 = vmax.f32 %v5991_v41, %v5211_v36  ;;  %v3397_v28 = vpack.c.bf16 %v2685_v20, %v2685_v20  ;;  %v6006_v49 = vld [vmem:[#allocation121_spill] sm:$0xff]  ;;  %v6007_v1 = vld [vmem:[#allocation122_spill] sm:$0xff] }
 0x1c1   :  { %v2553_v13 = vmax.f32 %v5989_v30, %v2489_v54  ;;  %v3365_v24 = vpack.c.bf16 %v2653_v29, %v2653_v29  ;;  %v2651_v10 = vmax.f32 %v2587_v55, 0.0  ;;  %v5994_v38 = vmax.f32 %v5992_v8, %v5993_v33  ;;  %v5353_v54 = vpop.f32.mrf.mxu0  ;;  %v5355_v29 = vpop.f32.mrf.mxu1  ;;  %v6009_v6 = vld [vmem:[#allocation81_spill] sm:$0xff] }
 0x1c2   :  { %v2683_v7 = vmax.f32 %v2619_v32, 0.0  ;;  %v2592_v60 = vadd.f32 %v4995_v3, %v2521_v27  ;;  %v5997_v21 = vmax.f32 %v5995_v50, %v5996_v2  ;;  %3006 = vst.msk [vmem:[%s5640_s3 + $0xbc] sm:$0xf] %vm2958_vm3, %v3397_v28  ;;  %v2458_v53 = vmax.f32 %v5998_v14, %v5231_v11  ;;  %v6000_v11 = vld [vmem:[#allocation26_spill] sm:$0xff]  ;;  %v6008_v27 = vld [vmem:[#allocation28_spill] sm:$0xff]  ;;  %v6019_v2 = vld [vmem:[#allocation31_spill] sm:$0xff] }
 0x1c3   :  { %v2624_v57 = vadd.f32 %v4995_v3, %v2553_v13  ;;  %v2519_v47 = vmax.f32 %v5994_v38, %v2455_v19  ;;  %2974 = vst.msk [vmem:[%s5640_s3 + $0x3c] sm:$0xf] %vm2958_vm3, %v3365_v24  ;;  %v3363_v59 = vpack.c.bf16 %v2651_v10, %v2651_v10  ;;  %v2490_v0 = vmax.f32 %v5999_v31, %v5233_v25  ;;  %v6001_v25 = vld [vmem:[#allocation79_spill] sm:$0xff]  ;;  %v6012_v13 = vld [vmem:[#allocation82_spill] sm:$0xff]  ;;  %v6015_v28 = vld [vmem:[#allocation124_spill] sm:$0xff] }
 0x1c4   :  { %v2551_v36 = vmax.f32 %v5997_v21, %v2487_v52  ;;  %v3395_v44 = vpack.c.bf16 %v2683_v7, %v2683_v7  ;;  %v2656_v37 = vmax.f32 %v2592_v60, 0.0  ;;  %v6002_v62 = vmax.f32 %v6000_v11, %v6001_v25  ;;  %v6014_v52 = vld [vmem:[#allocation123_spill] sm:$0xff]  ;;  %v5377_v7 = vpop.f32.mrf.mxu0  ;;  %v5379_v60 = vpop.f32.mrf.mxu1  ;;  %v6020_v21 = vld [vmem:[#allocation84_spill] sm:$0xff] }
 0x1c5   :  { %v2688_v35 = vmax.f32 %v2624_v57, 0.0  ;;  %v2590_v5 = vadd.f32 %v4995_v3, %v2519_v47  ;;  %2972 = vst.msk [vmem:[%s5640_s3 + $0x34] sm:$0xf] %vm2958_vm3, %v3363_v59  ;;  %v6005_v40 = vmax.f32 %v6003_v43, %v6004_v9  ;;  %v2456_v4 = vmax.f32 %v6006_v49, %v5253_v15  ;;  %v6011_v15 = vld [vmem:[#allocation29_spill] sm:$0xff]  ;;  %v6024_v25 = vld [vmem:[#allocation32_spill] sm:$0xff] }
 0x1c6   :  { %v2622_v58 = vadd.f32 %v4995_v3, %v2551_v36  ;;  %3004 = vst.msk [vmem:[%s5640_s3 + $0xb4] sm:$0xf] %vm2958_vm3, %v3395_v44  ;;  %v2522_v39 = vmax.f32 %v6002_v62, %v2458_v53  ;;  %v2488_v12 = vmax.f32 %v6007_v1, %v5255_v56  ;;  %v3368_v20 = vpack.c.bf16 %v2656_v37, %v2656_v37  ;;  %v6022_v44 = vld [vmem:[#allocation125_spill] sm:$0xff]  ;;  %v6023_v53 = vld [vmem:[#allocation126_spill] sm:$0xff] }
 0x1c7   :  { %v2554_v18 = vmax.f32 %v6005_v40, %v2490_v0  ;;  %v3400_v55 = vpack.c.bf16 %v2688_v35, %v2688_v35  ;;  %v2654_v32 = vmax.f32 %v2590_v5, 0.0  ;;  %v6010_v42 = vmax.f32 %v6008_v27, %v6009_v6  ;;  %v6025_v62 = vld [vmem:[#allocation85_spill] sm:$0xff]  ;;  %v6028_v40 = vld [vmem:[#allocation86_spill] sm:$0xff]  ;;  %v6033_v6 = vld [vmem:[#allocation87_spill] sm:$0xff] }
 0x1c8   :  { %v2686_v26 = vmax.f32 %v2622_v58, 0.0  ;;  %v2593_v34 = vadd.f32 %v4995_v3, %v2522_v39  ;;  %v6013_v63 = vmax.f32 %v6011_v15, %v6012_v13  ;;  %2977 = vst.msk [vmem:[%s5640_s3 + $0x48] sm:$0xf] %vm2958_vm3, %v3368_v20  ;;  %v2461_v24 = vmax.f32 %v6014_v52, %v5265_v51  ;;  %v6016_v51 = vld [vmem:[#allocation30_spill] sm:$0xff]  ;;  %v6027_v9 = vld [vmem:[#allocation33_spill] sm:$0xff]  ;;  %v6036_v15 = vld [vmem:[#allocation88_spill] sm:$0xff] }
 0x1c9   :  { %v2625_v16 = vadd.f32 %v4995_v3, %v2554_v18  ;;  %v2520_v30 = vmax.f32 %v6010_v42, %v2456_v4  ;;  %3009 = vst.msk [vmem:[%s5640_s3 + $0xc8] sm:$0xf] %vm2958_vm3, %v3400_v55  ;;  %v3366_v19 = vpack.c.bf16 %v2654_v32, %v2654_v32  ;;  %v2493_v10 = vmax.f32 %v6015_v28, %v5267_v17  ;;  %v6017_v17 = vld [vmem:[#allocation83_spill] sm:$0xff]  ;;  %v5411_v4 = vpop.f32.mrf.mxu1  ;;  %v6031_v55 = vld [vmem:[#allocation128_spill] sm:$0xff] }
 0x1ca   :  { %v2552_v56 = vmax.f32 %v6013_v63, %v2488_v12  ;;  %v3398_v41 = vpack.c.bf16 %v2686_v26, %v2686_v26  ;;  %v2657_v57 = vmax.f32 %v2593_v34, 0.0  ;;  %v6018_v47 = vmax.f32 %v6016_v51, %v6017_v17  ;;  %v6030_v12 = vld [vmem:[#allocation127_spill] sm:$0xff]  ;;  %v6040_v17 = vld [vmem:[#allocation36_spill] sm:$0xff] }
 0x1cb   :  { %v2689_v8 = vmax.f32 %v2625_v16, 0.0  ;;  %v2591_v33 = vadd.f32 %v4995_v3, %v2520_v30  ;;  %2975 = vst.msk [vmem:[%s5640_s3 + $0x40] sm:$0xf] %vm2958_vm3, %v3366_v19  ;;  %v6021_v36 = vmax.f32 %v6019_v2, %v6020_v21  ;;  %v2459_v14 = vmax.f32 %v6022_v44, %v5283_v61  ;;  %v5409_v61 = vpop.f32.mrf.mxu0  ;;  %v6035_v30 = vld [vmem:[#allocation35_spill] sm:$0xff]  ;;  %v6043_v21 = vld [vmem:[#allocation37_spill] sm:$0xff] }
 0x1cc   :  { %v2623_v38 = vadd.f32 %v4995_v3, %v2552_v56  ;;  %3007 = vst.msk [vmem:[%s5640_s3 + $0xc0] sm:$0xf] %vm2958_vm3, %v3398_v41  ;;  %v2525_v50 = vmax.f32 %v6018_v47, %v2461_v24  ;;  %v2491_v31 = vmax.f32 %v6023_v53, %v5285_v46  ;;  %v3369_v0 = vpack.c.bf16 %v2657_v57, %v2657_v57  ;;  %v6038_v56 = vld [vmem:[#allocation129_spill] sm:$0xff]  ;;  %v6039_v41 = vld [vmem:[#allocation130_spill] sm:$0xff] }
 0x1cd   :  { %v2557_v59 = vmax.f32 %v6021_v36, %v2493_v10  ;;  %v3401_v37 = vpack.c.bf16 %v2689_v8, %v2689_v8  ;;  %v2655_v35 = vmax.f32 %v2591_v33, 0.0  ;;  %v6026_v39 = vmax.f32 %v6024_v25, %v6025_v62  ;;  %v1835_v8 = vpop.f32.mrf.mxu0  ;;  %v2347_v33 = vpop.f32.mrf.mxu1  ;;  %v6041_v47 = vld [vmem:[#allocation89_spill] sm:$0xff]  ;;  %v6044_v36 = vld [vmem:[#allocation90_spill] sm:$0xff]  ;;  %v6051_v62 = vld [vmem:[#allocation39_spill] sm:$0xff] }
 0x1ce   :  { %v2687_v5 = vmax.f32 %v2623_v38, 0.0  ;;  %v2596_v58 = vadd.f32 %v4995_v3, %v2525_v50  ;;  %v6029_v18 = vmax.f32 %v6027_v9, %v6028_v40  ;;  %2978 = vst.msk [vmem:[%s5640_s3 + $0x4c] sm:$0xf] %vm2958_vm3, %v3369_v0  ;;  %v2462_v20 = vmax.f32 %v6030_v12, %v5305_v22  ;;  %v6032_v22 = vld [vmem:[#allocation34_spill] sm:$0xff]  ;;  %v6054_v40 = vld [vmem:[#allocation133_spill] sm:$0xff] }
 0x1cf   :  { %v2628_v11 = vadd.f32 %v4995_v3, %v2557_v59  ;;  %v2523_v43 = vmax.f32 %v6026_v39, %v2459_v14  ;;  %3010 = vst.msk [vmem:[%s5640_s3 + $0xcc] sm:$0xf] %vm2958_vm3, %v3401_v37  ;;  %v3367_v46 = vpack.c.bf16 %v2655_v35, %v2655_v35  ;;  %v2494_v32 = vmax.f32 %v6031_v55, %v5307_v45  ;;  %v6046_v14 = vld [vmem:[#allocation131_spill] sm:$0xff]  ;;  %v6052_v39 = vld [vmem:[#allocation92_spill] sm:$0xff]  ;;  %v3802_v12 = vpop.f32.mrf.mxu1 }
 0x1d0   :  { %v2555_v49 = vmax.f32 %v6029_v18, %v2491_v31  ;;  %v3399_v1 = vpack.c.bf16 %v2687_v5, %v2687_v5  ;;  %v2660_v26 = vmax.f32 %v2596_v58, 0.0  ;;  %v6034_v42 = vmax.f32 %v6032_v22, %v6033_v6  ;;  %v6047_v31 = vld [vmem:[#allocation132_spill] sm:$0xff]  ;;  %v6057_v22 = vld [vmem:[#allocation93_spill] sm:$0xff] }
 0x1d1   :  { %v2692_v34 = vmax.f32 %v2628_v11, 0.0  ;;  %v2594_v16 = vadd.f32 %v4995_v3, %v2523_v43  ;;  %2976 = vst.msk [vmem:[%s5640_s3 + $0x44] sm:$0xf] %vm2958_vm3, %v3367_v46  ;;  %v6037_v13 = vmax.f32 %v6035_v30, %v6036_v15  ;;  %v2460_v19 = vmax.f32 %v6038_v56, %v5329_v48  ;;  %v6049_v11 = vld [vmem:[#allocation91_spill] sm:$0xff]  ;;  %v6060_v30 = vld [vmem:[#allocation94_spill] sm:$0xff] }
 0x1d2   :  { %v2626_v27 = vadd.f32 %v4995_v3, %v2555_v49  ;;  %3008 = vst.msk [vmem:[%s5640_s3 + $0xc4] sm:$0xf] %vm2958_vm3, %v3399_v1  ;;  %v2526_v45 = vmax.f32 %v6034_v42, %v2462_v20  ;;  %v2492_v52 = vmax.f32 %v6039_v41, %v5331_v23  ;;  %v3372_v24 = vpack.c.bf16 %v2660_v26, %v2660_v26  ;;  %v6055_v49 = vld [vmem:[#allocation134_spill] sm:$0xff]  ;;  %v3674_v1 = vpop.f32.mrf.mxu0 }
 0x1d3   :  { %v2558_v63 = vmax.f32 %v6037_v13, %v2494_v32  ;;  %v3404_v28 = vpack.c.bf16 %v2692_v34, %v2692_v34  ;;  %v2658_v10 = vmax.f32 %v2594_v16, 0.0  ;;  %v6042_v50 = vmax.f32 %v6040_v17, %v6041_v47  ;;  %v6067_v47 = vld [vmem:[#allocation43_spill] sm:$0xff] }
 0x1d4   :  { %v2690_v57 = vmax.f32 %v2626_v27, 0.0  ;;  %v2597_v38 = vadd.f32 %v4995_v3, %v2526_v45  ;;  %v6045_v48 = vmax.f32 %v6043_v21, %v6044_v36  ;;  %2981 = vst.msk [vmem:[%s5640_s3 + $0x58] sm:$0xf] %vm2958_vm3, %v3372_v24  ;;  %v2465_v53 = vmax.f32 %v6046_v14, %v5353_v54  ;;  %v6048_v54 = vld [vmem:[#allocation38_spill] sm:$0xff]  ;;  %v6056_v27 = vld [vmem:[#allocation40_spill] sm:$0xff]  ;;  %v6059_v45 = vld [vmem:[#allocation41_spill] sm:$0xff] }
 0x1d5   :  { %v2629_v51 = vadd.f32 %v4995_v3, %v2558_v63  ;;  %v2524_v2 = vmax.f32 %v6042_v50, %v2460_v19  ;;  %3013 = vst.msk [vmem:[%s5640_s3 + $0xd8] sm:$0xf] %vm2958_vm3, %v3404_v28  ;;  %v3370_v23 = vpack.c.bf16 %v2658_v10, %v2658_v10  ;;  %v2497_v0 = vmax.f32 %v6047_v31, %v5355_v29  ;;  %v6062_v63 = vld [vmem:[#allocation135_spill] sm:$0xff]  ;;  %v6063_v19 = vld [vmem:[#allocation136_spill] sm:$0xff]  ;;  %v6070_v36 = vld [vmem:[#allocation137_spill] sm:$0xff] }
 0x1d6   :  { %v2556_v59 = vmax.f32 %v6045_v48, %v2492_v52  ;;  %v3402_v44 = vpack.c.bf16 %v2690_v57, %v2690_v57  ;;  %v2661_v37 = vmax.f32 %v2597_v38, 0.0  ;;  %v6050_v25 = vmax.f32 %v6048_v54, %v6049_v11  ;;  %v1848_v57 = vpop.f32.mrf.mxu0  ;;  %v2360_v38 = vpop.f32.mrf.mxu1  ;;  %v6068_v50 = vld [vmem:[#allocation96_spill] sm:$0xff]  ;;  %v6075_v11 = vld [vmem:[#allocation45_spill] sm:$0xff] }
 0x1d7   :  { %v2693_v35 = vmax.f32 %v2629_v51, 0.0  ;;  %v2595_v5 = vadd.f32 %v4995_v3, %v2524_v2  ;;  %2979 = vst.msk [vmem:[%s5640_s3 + $0x50] sm:$0xf] %vm2958_vm3, %v3370_v23  ;;  %v6053_v43 = vmax.f32 %v6051_v62, %v6052_v39  ;;  %v2463_v18 = vmax.f32 %v6054_v40, %v5377_v7  ;;  %v6078_v39 = vld [vmem:[#allocation139_spill] sm:$0xff] }
 0x1d8   :  { %v2627_v58 = vadd.f32 %v4995_v3, %v2556_v59  ;;  %3011 = vst.msk [vmem:[%s5640_s3 + $0xd0] sm:$0xf] %vm2958_vm3, %v3402_v44  ;;  %v2529_v29 = vmax.f32 %v6050_v25, %v2465_v53  ;;  %v2495_v46 = vmax.f32 %v6055_v49, %v5379_v60  ;;  %v3373_v20 = vpack.c.bf16 %v2661_v37, %v2661_v37  ;;  %v6071_v59 = vld [vmem:[#allocation138_spill] sm:$0xff]  ;;  %v3803_v49 = vpop.f32.mrf.mxu1 }
 0x1d9   :  { %v2561_v9 = vmax.f32 %v6053_v43, %v2497_v0  ;;  %v3405_v55 = vpack.c.bf16 %v2693_v35, %v2693_v35  ;;  %v2659_v32 = vmax.f32 %v2595_v5, 0.0  ;;  %v6058_v6 = vmax.f32 %v6056_v27, %v6057_v22  ;;  %v6072_v35 = vld [vmem:[#allocation44_spill] sm:$0xff]  ;;  %v6073_v5 = vld [vmem:[#allocation97_spill] sm:$0xff]  ;;  %v6076_v25 = vld [vmem:[#allocation98_spill] sm:$0xff] }
 0x1da   :  { %v2691_v26 = vmax.f32 %v2627_v58, 0.0  ;;  %v2600_v34 = vadd.f32 %v4995_v3, %v2529_v29  ;;  %v6061_v7 = vmax.f32 %v6059_v45, %v6060_v30  ;;  %2982 = vst.msk [vmem:[%s5640_s3 + $0x5c] sm:$0xf] %vm2958_vm3, %v3373_v20  ;;  %v2466_v56 = vmax.f32 %v6062_v63, %v5409_v61  ;;  %v6064_v61 = vld [vmem:[#allocation42_spill] sm:$0xff]  ;;  %v6084_v27 = vld [vmem:[#allocation100_spill] sm:$0xff] }
 0x1db   :  { %v2632_v16 = vadd.f32 %v4995_v3, %v2561_v9  ;;  %v2527_v42 = vmax.f32 %v6058_v6, %v2463_v18  ;;  %3014 = vst.msk [vmem:[%s5640_s3 + $0xdc] sm:$0xf] %vm2958_vm3, %v3405_v55  ;;  %v3371_v60 = vpack.c.bf16 %v2659_v32, %v2659_v32  ;;  %v2498_v41 = vmax.f32 %v6063_v19, %v5411_v4  ;;  %v6065_v4 = vld [vmem:[#allocation95_spill] sm:$0xff]  ;;  %v6079_v9 = vld [vmem:[#allocation140_spill] sm:$0xff]  ;;  %v3675_v18 = vpop.f32.mrf.mxu0  ;;  %v6087_v30 = vld [vmem:[#allocation142_spill] sm:$0xff] }
 0x1dc   :  { %v2559_v15 = vmax.f32 %v6061_v7, %v2495_v46  ;;  %v3403_v13 = vpack.c.bf16 %v2691_v26, %v2691_v26  ;;  %v2664_v52 = vmax.f32 %v2600_v34, 0.0  ;;  %v6066_v51 = vmax.f32 %v6064_v61, %v6065_v4  ;;  %v6092_v61 = vld [vmem:[#allocation102_spill] sm:$0xff] }
 0x1dd   :  { %v2696_v24 = vmax.f32 %v2632_v16, 0.0  ;;  %v2598_v28 = vadd.f32 %v4995_v3, %v2527_v42  ;;  %2980 = vst.msk [vmem:[%s5640_s3 + $0x54] sm:$0xf] %vm2958_vm3, %v3371_v60  ;;  %v6069_v2 = vmax.f32 %v6067_v47, %v6068_v50  ;;  %v2464_v48 = vmax.f32 %v6070_v36, %v1835_v8  ;;  %v6083_v16 = vld [vmem:[#allocation47_spill] sm:$0xff]  ;;  %v6086_v42 = vld [vmem:[#allocation141_spill] sm:$0xff] }
 0x1de   :  { %v2630_v10 = vadd.f32 %v4995_v3, %v2559_v15  ;;  %3012 = vst.msk [vmem:[%s5640_s3 + $0xd4] sm:$0xf] %vm2958_vm3, %v3403_v13  ;;  %v2530_v17 = vmax.f32 %v6066_v51, %v2466_v56  ;;  %v2496_v23 = vmax.f32 %v6071_v59, %v2347_v33  ;;  %v3376_v44 = vpack.c.bf16 %v2664_v52, %v2664_v52  ;;  %v6089_v52 = vld [vmem:[#allocation101_spill] sm:$0xff]  ;;  %v6094_v50 = vld [vmem:[#allocation143_spill] sm:$0xff] }
 0x1df   :  { %v2562_v21 = vmax.f32 %v6069_v2, %v2498_v41  ;;  %v3408_v14 = vpack.c.bf16 %v2696_v24, %v2696_v24  ;;  %v2662_v53 = vmax.f32 %v2598_v28, 0.0  ;;  %v6074_v58 = vmax.f32 %v6072_v35, %v6073_v5  ;;  %v6088_v41 = vld [vmem:[#allocation48_spill] sm:$0xff] }
 0x1e0   :  { %v2694_v31 = vmax.f32 %v2630_v10, 0.0  ;;  %v2601_v0 = vadd.f32 %v4995_v3, %v2530_v17  ;;  %v6077_v29 = vmax.f32 %v6075_v11, %v6076_v25  ;;  %2985 = vst.msk [vmem:[%s5640_s3 + $0x68] sm:$0xf] %vm2958_vm3, %v3376_v44  ;;  %v2469_v43 = vmax.f32 %v6078_v39, %v3674_v1  ;;  %v6080_v1 = vld [vmem:[#allocation46_spill] sm:$0xff]  ;;  %v6091_v10 = vld [vmem:[#allocation49_spill] sm:$0xff]  ;;  %v1851_v17 = vpop.f32.mrf.mxu0  ;;  %v6100_v35 = vld [vmem:[#allocation104_spill] sm:$0xff] }
 0x1e1   :  { %v2633_v37 = vadd.f32 %v4995_v3, %v2562_v21  ;;  %v2528_v54 = vmax.f32 %v6074_v58, %v2464_v48  ;;  %3017 = vst.msk [vmem:[%s5640_s3 + $0xe8] sm:$0xf] %vm2958_vm3, %v3408_v14  ;;  %v3374_v8 = vpack.c.bf16 %v2662_v53, %v2662_v53  ;;  %v2501_v40 = vmax.f32 %v6079_v9, %v3802_v12  ;;  %v6081_v12 = vld [vmem:[#allocation99_spill] sm:$0xff]  ;;  %v6095_v21 = vld [vmem:[#allocation144_spill] sm:$0xff]  ;;  %v6096_v14 = vld [vmem:[#allocation50_spill] sm:$0xff] }
 0x1e2   :  { %v2560_v62 = vmax.f32 %v6077_v29, %v2496_v23  ;;  %v3406_v33 = vpack.c.bf16 %v2694_v31, %v2694_v31  ;;  %v2665_v46 = vmax.f32 %v2601_v0, 0.0  ;;  %v6082_v26 = vmax.f32 %v6080_v1, %v6081_v12  ;;  %v6097_v53 = vld [vmem:[#allocation103_spill] sm:$0xff]  ;;  %v6103_v25 = vld [vmem:[#allocation146_spill] sm:$0xff] }
 0x1e3   :  { %v2697_v20 = vmax.f32 %v2633_v37, 0.0  ;;  %v2599_v55 = vadd.f32 %v4995_v3, %v2528_v54  ;;  %2983 = vst.msk [vmem:[%s5640_s3 + $0x60] sm:$0xf] %vm2958_vm3, %v3374_v8  ;;  %v6085_v22 = vmax.f32 %v6083_v16, %v6084_v27  ;;  %v2467_v45 = vmax.f32 %v6086_v42, %v1848_v57  ;;  %v2363_v57 = vpop.f32.mrf.mxu1  ;;  %v6099_v37 = vld [vmem:[#allocation51_spill] sm:$0xff]  ;;  %v6102_v54 = vld [vmem:[#allocation145_spill] sm:$0xff] }
 0x1e4   :  { %v2631_v32 = vadd.f32 %v4995_v3, %v2560_v62  ;;  %3015 = vst.msk [vmem:[%s5640_s3 + $0xe0] sm:$0xf] %vm2958_vm3, %v3406_v33  ;;  %v2533_v34 = vmax.f32 %v6082_v26, %v2469_v43  ;;  %v2499_v7 = vmax.f32 %v6087_v30, %v2360_v38  ;;  %v3377_v15 = vpack.c.bf16 %v2665_v46, %v2665_v46 }
 0x1e5   :  { %v2565_v6 = vmax.f32 %v6085_v22, %v2501_v40  ;;  %v3409_v60 = vpack.c.bf16 %v2697_v20, %v2697_v20  ;;  %v2663_v13 = vmax.f32 %v2599_v55, 0.0  ;;  %v6090_v24 = vmax.f32 %v6088_v41, %v6089_v52  ;;  %v6104_v40 = vld [vmem:[#allocation52_spill] sm:$0xff]  ;;  %v6107_v20 = vld [vmem:[#allocation53_spill] sm:$0xff]  ;;  %v6108_v55 = vld [vmem:[#allocation106_spill] sm:$0xff] }
 0x1e6   :  { %v2695_v63 = vmax.f32 %v2631_v32, 0.0  ;;  %v2604_v56 = vadd.f32 %v4995_v3, %v2533_v34  ;;  %v6093_v4 = vmax.f32 %v6091_v10, %v6092_v61  ;;  %2986 = vst.msk [vmem:[%s5640_s3 + $0x6c] sm:$0xf] %vm2958_vm3, %v3377_v15  ;;  %v2470_v2 = vmax.f32 %v6094_v50, %v3675_v18  ;;  %v6105_v18 = vld [vmem:[#allocation105_spill] sm:$0xff] }
 0x1e7   :  { %v2636_v19 = vadd.f32 %v4995_v3, %v2565_v6  ;;  %v2531_v28 = vmax.f32 %v6090_v24, %v2467_v45  ;;  %3018 = vst.msk [vmem:[%s5640_s3 + $0xec] sm:$0xf] %vm2958_vm3, %v3409_v60  ;;  %v3375_v38 = vpack.c.bf16 %v2663_v13, %v2663_v13  ;;  %v2502_v36 = vmax.f32 %v6095_v21, %v3803_v49 }
 0x1e8   :  { %v2563_v51 = vmax.f32 %v6093_v4, %v2499_v7  ;;  %v3407_v47 = vpack.c.bf16 %v2695_v63, %v2695_v63  ;;  %v2668_v48 = vmax.f32 %v2604_v56, 0.0  ;;  %v6098_v31 = vmax.f32 %v6096_v14, %v6097_v53 }
 0x1e9   :  { %v2700_v59 = vmax.f32 %v2636_v19, 0.0  ;;  %v2602_v23 = vadd.f32 %v4995_v3, %v2531_v28  ;;  %2984 = vst.msk [vmem:[%s5640_s3 + $0x64] sm:$0xf] %vm2958_vm3, %v3375_v38  ;;  %v6101_v5 = vmax.f32 %v6099_v37, %v6100_v35  ;;  %v2468_v11 = vmax.f32 %v6102_v54, %v1851_v17 }
 0x1ea   :  { %v2634_v44 = vadd.f32 %v4995_v3, %v2563_v51  ;;  %3016 = vst.msk [vmem:[%s5640_s3 + $0xe4] sm:$0xf] %vm2958_vm3, %v3407_v47  ;;  %v2534_v0 = vmax.f32 %v6098_v31, %v2470_v2  ;;  %v2500_v29 = vmax.f32 %v6103_v25, %v2363_v57  ;;  %v3380_v62 = vpack.c.bf16 %v2668_v48, %v2668_v48 }
 0x1eb   :  { %v2566_v58 = vmax.f32 %v6101_v5, %v2502_v36  ;;  %v3412_v8 = vpack.c.bf16 %v2700_v59, %v2700_v59  ;;  %v2666_v33 = vmax.f32 %v2602_v23, 0.0  ;;  %v6106_v49 = vmax.f32 %v6104_v40, %v6105_v18 }
 0x1ec   :  { %v2698_v39 = vmax.f32 %v2634_v44, 0.0  ;;  %v2605_v43 = vadd.f32 %v4995_v3, %v2534_v0  ;;  %v6109_v32 = vmax.f32 %v6107_v20, %v6108_v55  ;;  %2989 = vst.msk [vmem:[%s5640_s3 + $0x78] sm:$0xf] %vm2958_vm3, %v3380_v62 }
 0x1ed   :  { %v2637_v9 = vadd.f32 %v4995_v3, %v2566_v58  ;;  %v2532_v46 = vmax.f32 %v6106_v49, %v2468_v11  ;;  %3021 = vst.msk [vmem:[%s5640_s3 + $0xf8] sm:$0xf] %vm2958_vm3, %v3412_v8  ;;  %v3378_v12 = vpack.c.bf16 %v2666_v33, %v2666_v33 }
 0x1ee   :  { %v2564_v1 = vmax.f32 %v6109_v32, %v2500_v29  ;;  %v3410_v26 = vpack.c.bf16 %v2698_v39, %v2698_v39  ;;  %v2669_v34 = vmax.f32 %v2605_v43, 0.0 }
 0x1ef   :  { %v2701_v16 = vmax.f32 %v2637_v9, 0.0  ;;  %v2603_v27 = vadd.f32 %v4995_v3, %v2532_v46  ;;  %2987 = vst.msk [vmem:[%s5640_s3 + $0x70] sm:$0xf] %vm2958_vm3, %v3378_v12 }
 0x1f0   :  { %v2635_v22 = vadd.f32 %v4995_v3, %v2564_v1  ;;  %3019 = vst.msk [vmem:[%s5640_s3 + $0xf0] sm:$0xf] %vm2958_vm3, %v3410_v26  ;;  %v3381_v6 = vpack.c.bf16 %v2669_v34, %v2669_v34 }
 0x1f1   :  { %v3413_v42 = vpack.c.bf16 %v2701_v16, %v2701_v16  ;;  %v2667_v45 = vmax.f32 %v2603_v27, 0.0 }
 0x1f2   :  { %v2699_v30 = vmax.f32 %v2635_v22, 0.0  ;;  %2990 = vst.msk [vmem:[%s5640_s3 + $0x7c] sm:$0xf] %vm2958_vm3, %v3381_v6 }
 0x1f3   :  { %3022 = vst.msk [vmem:[%s5640_s3 + $0xfc] sm:$0xf] %vm2958_vm3, %v3413_v42  ;;  %v3379_v3 = vpack.c.bf16 %v2667_v45, %v2667_v45 }
 0x1f4   :  { %v3411_v7 = vpack.c.bf16 %v2699_v30, %v2699_v30 }
 0x1f5   :  { %2988 = vst.msk [vmem:[%s5640_s3 + $0x74] sm:$0xf] %vm2958_vm3, %v3379_v3 }
 0x1f6   :  { %3020 = vst.msk [vmem:[%s5640_s3 + $0xf4] sm:$0xf] %vm2958_vm3, %v3411_v7 }

// kernel: cnn_cifar_v2_forward.5
= control target key start
LH: loop header
LB: loop body
LE: loop exit
PB: predicated region body
PF: predicated region fallthrough
CT: control target
= control target key end

     0   :  { %v1259_v0 = vmov 0   ;;  %vm439_vm0 = vcmask 130048   ;;  %vm976_vm1 = vcmask 257024   ;;  %s1796_s1 = inlined_call_operand.vmem [shape: bf16[144,32], index: 1, kind: input, shape index: {}]   ;;  %s1797_s0 = inlined_call_operand.vmem [shape: bf16[2,4,64,144], index: 0, kind: input, shape index: {}]   ;;  %s1798_s2 = inlined_call_operand.vmem [shape: f32[1,32], index: 2, kind: input, shape index: {}]   ;;  %s1799_s3 = inlined_call_operand.vmem [shape: bf16[2,64,32], index: 3, kind: output, shape index: {}]  }
   0x1   :  { %536 = vmatprep.subr.bf16.mxu0 %v1259_v0  ;;  %1135 = vmatprep.subr.bf16.mxu1 %v1259_v0  ;;  %v1154_v1 = vld [vmem:[%s1796_s1 + $0x38] sm:$0xff]   ;;  %v1155_v2 = vld [vmem:[%s1796_s1 + $0x30] sm:$0xff]   ;;  %v1156_v3 = vld [vmem:[%s1796_s1 + $0x28] sm:$0xff]  }
   0x2   :  { %537 = vmatpush1.bf16.msra.mxu0 %v1154_v1  ;;  %1144 = vmatpush1.bf16.msra.mxu1 %v1154_v1  ;;  %v1157_v4 = vld [vmem:[%s1796_s1 + $0x20] sm:$0xff]   ;;  %v1158_v7 = vld [vmem:[%s1796_s1 + $0x18] sm:$0xff]   ;;  %v1159_v8 = vld [vmem:[%s1796_s1 + $0x10] sm:$0xff]  }
   0x3   :  { %538 = vmatprep.subr.bf16.mxu0 %v1259_v0  ;;  %1136 = vmatprep.subr.bf16.mxu1 %v1259_v0  ;;  %v1165_v5 = vld [vmem:[%s1797_s0 + $0x4] ss:$8 sps:$4 sm:$0xff]   ;;  %v1163_v12 = vld [vmem:[%s1797_s0] ss:$8 sps:$4 sm:$0xff]   ;;  %v1169_v14 = vld [vmem:[%s1797_s0 + $0x14] ss:$8 sps:$4 sm:$0xff]  }
   0x4   :  { %v1168_v6 = vld [vmem:[%s1797_s0 + $0x104] ss:$8 sps:$4 sm:$0xff]   ;;  %1070 = vmatprep.mubr.msk.bf16.mxu0 %vm439_vm0, %v1165_v5  ;;  %v1166_v13 = vld [vmem:[%s1797_s0 + $0x100] ss:$8 sps:$4 sm:$0xff]   ;;  %v1171_v15 = vld [vmem:[%s1797_s0 + $0x114] ss:$8 sps:$4 sm:$0xff]  }
   0x5   :  { %1086 = vmatprep.mubr.msk.bf16.mxu1 %vm439_vm0, %v1168_v6  ;;  %v1160_v9 = vld [vmem:[%s1796_s1 + $0x8] sm:$0xff]   ;;  %v1161_v10 = vld [vmem:[%s1796_s1] sm:$0xff]   ;;  %v1173_v16 = vld [vmem:[%s1797_s0 + $0x10] ss:$8 sps:$4 sm:$0xff]  }
   0x6   :  { %539 = vmatpush1.bf16.msra.mxu0 %v1155_v2  ;;  %1145 = vmatpush1.bf16.msra.mxu1 %v1155_v2  ;;  %v1162_v11 = vld [vmem:[%s1796_s1 + $0x40] sm:$0xff]   ;;  %v1174_v17 = vld [vmem:[%s1797_s0 + $0x110] ss:$8 sps:$4 sm:$0xff]   ;;  %v1181_v22 = vld [vmem:[%s1797_s0 + $0x34] ss:$8 sps:$4 sm:$0xff]  }
   0x7   :  { %540 = vmatprep.subr.bf16.mxu0 %v1259_v0  ;;  %1137 = vmatprep.subr.bf16.mxu1 %v1259_v0  ;;  %v1175_v18 = vld [vmem:[%s1797_s0 + $0x24] ss:$8 sps:$4 sm:$0xff]   ;;  %v1179_v20 = vld [vmem:[%s1797_s0 + $0x20] ss:$8 sps:$4 sm:$0xff]   ;;  %v1183_v23 = vld [vmem:[%s1797_s0 + $0x134] ss:$8 sps:$4 sm:$0xff]  }
   0x8   :  { %v1177_v19 = vld [vmem:[%s1797_s0 + $0x124] ss:$8 sps:$4 sm:$0xff]   ;;  %v1180_v21 = vld [vmem:[%s1797_s0 + $0x120] ss:$8 sps:$4 sm:$0xff]   ;;  %v1185_v24 = vld [vmem:[%s1797_s0 + $0x30] ss:$8 sps:$4 sm:$0xff]  }
   0x9   :  { %v1186_v25 = vld [vmem:[%s1797_s0 + $0x130] ss:$8 sps:$4 sm:$0xff]   ;;  %v1187_v26 = vld [vmem:[%s1797_s0 + $0x44] ss:$8 sps:$4 sm:$0xff]   ;;  %v1191_v28 = vld [vmem:[%s1797_s0 + $0x40] ss:$8 sps:$4 sm:$0xff]  }
   0xa   :  { %541 = vmatpush1.bf16.msra.mxu0 %v1156_v3  ;;  %1146 = vmatpush1.bf16.msra.mxu1 %v1156_v3  ;;  %v1189_v27 = vld [vmem:[%s1797_s0 + $0x144] ss:$8 sps:$4 sm:$0xff]   ;;  %v1192_v29 = vld [vmem:[%s1797_s0 + $0x140] ss:$8 sps:$4 sm:$0xff]   ;;  %v1193_v30 = vld [vmem:[%s1797_s0 + $0x54] ss:$8 sps:$4 sm:$0xff]  }
   0xb   :  { %542 = vmatprep.subr.bf16.mxu0 %v1259_v0  ;;  %1138 = vmatprep.subr.bf16.mxu1 %v1259_v0  ;;  %v1195_v31 = vld [vmem:[%s1797_s0 + $0x154] ss:$8 sps:$4 sm:$0xff]   ;;  %v1197_v32 = vld [vmem:[%s1797_s0 + $0x50] ss:$8 sps:$4 sm:$0xff]   ;;  %v1199_v34 = vld [vmem:[%s1797_s0 + $0x64] ss:$8 sps:$4 sm:$0xff]  }
   0xc   :  { %v1198_v33 = vld [vmem:[%s1797_s0 + $0x150] ss:$8 sps:$4 sm:$0xff]   ;;  %v1201_v35 = vld [vmem:[%s1797_s0 + $0x164] ss:$8 sps:$4 sm:$0xff]   ;;  %v1203_v36 = vld [vmem:[%s1797_s0 + $0x60] ss:$8 sps:$4 sm:$0xff]  }
   0xd   :  { %v1204_v37 = vld [vmem:[%s1797_s0 + $0x160] ss:$8 sps:$4 sm:$0xff]   ;;  %v1205_v38 = vld [vmem:[%s1797_s0 + $0x74] ss:$8 sps:$4 sm:$0xff]   ;;  %v1209_v40 = vld [vmem:[%s1797_s0 + $0x70] ss:$8 sps:$4 sm:$0xff]  }
   0xe   :  { %543 = vmatpush1.bf16.msra.mxu0 %v1157_v4  ;;  %1147 = vmatpush1.bf16.msra.mxu1 %v1157_v4  ;;  %v1207_v39 = vld [vmem:[%s1797_s0 + $0x174] ss:$8 sps:$4 sm:$0xff]   ;;  %v1210_v41 = vld [vmem:[%s1797_s0 + $0x170] ss:$8 sps:$4 sm:$0xff]   ;;  %v1211_v42 = vld [vmem:[%s1797_s0 + $0x84] ss:$8 sps:$4 sm:$0xff]  }
   0xf   :  { %544 = vmatprep.subr.bf16.mxu0 %v1259_v0  ;;  %1139 = vmatprep.subr.bf16.mxu1 %v1259_v0  ;;  %v1213_v43 = vld [vmem:[%s1797_s0 + $0x184] ss:$8 sps:$4 sm:$0xff]   ;;  %v1215_v44 = vld [vmem:[%s1797_s0 + $0x80] ss:$8 sps:$4 sm:$0xff]   ;;  %v1217_v46 = vld [vmem:[%s1797_s0 + $0x94] ss:$8 sps:$4 sm:$0xff]  }
  0x10   :  { %v1216_v45 = vld [vmem:[%s1797_s0 + $0x180] ss:$8 sps:$4 sm:$0xff]   ;;  %v1219_v47 = vld [vmem:[%s1797_s0 + $0x194] ss:$8 sps:$4 sm:$0xff]   ;;  %v1221_v48 = vld [vmem:[%s1797_s0 + $0x90] ss:$8 sps:$4 sm:$0xff]  }
  0x11   :  { %v1222_v49 = vld [vmem:[%s1797_s0 + $0x190] ss:$8 sps:$4 sm:$0xff]   ;;  %v1223_v50 = vld [vmem:[%s1797_s0 + $0xa4] ss:$8 sps:$4 sm:$0xff]   ;;  %v1227_v52 = vld [vmem:[%s1797_s0 + $0xa0] ss:$8 sps:$4 sm:$0xff]  }
  0x12   :  { %545 = vmatpush1.bf16.msra.mxu0 %v1158_v7  ;;  %1148 = vmatpush1.bf16.msra.mxu1 %v1158_v7  ;;  %v1225_v51 = vld [vmem:[%s1797_s0 + $0x1a4] ss:$8 sps:$4 sm:$0xff]   ;;  %v1228_v53 = vld [vmem:[%s1797_s0 + $0x1a0] ss:$8 sps:$4 sm:$0xff]   ;;  %v1229_v54 = vld [vmem:[%s1797_s0 + $0xb4] ss:$8 sps:$4 sm:$0xff]  }
  0x13   :  { %546 = vmatprep.subr.bf16.mxu0 %v1259_v0  ;;  %1140 = vmatprep.subr.bf16.mxu1 %v1259_v0  ;;  %v1231_v55 = vld [vmem:[%s1797_s0 + $0x1b4] ss:$8 sps:$4 sm:$0xff]   ;;  %v1233_v56 = vld [vmem:[%s1797_s0 + $0xb0] ss:$8 sps:$4 sm:$0xff]   ;;  %v1235_v58 = vld [vmem:[%s1797_s0 + $0xc4] ss:$8 sps:$4 sm:$0xff]  }
  0x14   :  { %v1234_v57 = vld [vmem:[%s1797_s0 + $0x1b0] ss:$8 sps:$4 sm:$0xff]   ;;  %v1237_v59 = vld [vmem:[%s1797_s0 + $0x1c4] ss:$8 sps:$4 sm:$0xff]   ;;  %v1239_v60 = vld [vmem:[%s1797_s0 + $0xc0] ss:$8 sps:$4 sm:$0xff]  }
  0x15   :  { %v1240_v61 = vld [vmem:[%s1797_s0 + $0x1c0] ss:$8 sps:$4 sm:$0xff]   ;;  %v1241_v62 = vld [vmem:[%s1797_s0 + $0xd4] ss:$8 sps:$4 sm:$0xff]   ;;  %v1246_v1 = vld [vmem:[%s1797_s0 + $0x1d0] ss:$8 sps:$4 sm:$0xff]  }
  0x16   :  { %547 = vmatpush1.bf16.msra.mxu0 %v1159_v8  ;;  %1149 = vmatpush1.bf16.msra.mxu1 %v1159_v8  ;;  %v1243_v63 = vld [vmem:[%s1797_s0 + $0x1d4] ss:$8 sps:$4 sm:$0xff]   ;;  %v1247_v2 = vld [vmem:[%s1797_s0 + $0xe4] ss:$8 sps:$4 sm:$0xff]   ;;  %v1251_v4 = vld [vmem:[%s1797_s0 + $0xe0] ss:$8 sps:$4 sm:$0xff]  }
  0x17   :  { %548 = vmatprep.subr.bf16.mxu0 %v1259_v0  ;;  %1141 = vmatprep.subr.bf16.mxu1 %v1259_v0  ;;  %v1249_v3 = vld [vmem:[%s1797_s0 + $0x1e4] ss:$8 sps:$4 sm:$0xff]   ;;  %v1252_v5 = vld [vmem:[%s1797_s0 + $0x1e0] ss:$8 sps:$4 sm:$0xff]   ;;  %v1253_v6 = vld [vmem:[%s1797_s0 + $0xf4] ss:$8 sps:$4 sm:$0xff]  }
  0x18   :  { %v1255_v7 = vld [vmem:[%s1797_s0 + $0x1f4] ss:$8 sps:$4 sm:$0xff]   ;;  %v1257_v8 = vld [vmem:[%s1797_s0 + $0xf0] ss:$8 sps:$4 sm:$0xff]  }
  0x1a   :  { %549 = vmatpush1.bf16.msra.mxu0 %v1160_v9  ;;  %1150 = vmatpush1.bf16.msra.mxu1 %v1160_v9  ;;  %v1258_v9 = vld [vmem:[%s1797_s0 + $0x1f0] ss:$8 sps:$4 sm:$0xff]  }
  0x1b   :  { %550 = vmatprep.subr.bf16.mxu0 %v1259_v0  ;;  %1142 = vmatprep.subr.bf16.mxu1 %v1259_v0 }
  0x1e   :  { %551 = vmatpush1.bf16.msra.mxu0 %v1161_v10  ;;  %1151 = vmatpush1.bf16.msra.mxu1 %v1161_v10 }
  0x1f   :  { %566 = vmatprep.subr.bf16.mxu0 %v1259_v0  ;;  %1143 = vmatprep.subr.bf16.mxu1 %v1259_v0  ;;  %v1245_v0 = vld [vmem:[%s1797_s0 + $0xd0] ss:$8 sps:$4 sm:$0xff]  }
  0x22   :  { %567 = vmatpush2.bf16.msra.mxu0 %v1162_v11  ;;  %1152 = vmatpush2.bf16.msra.mxu1 %v1162_v11 }
  0x25   :  { %569 = vmatmul.mubr.bf16.vlgmr.msra.gmra.mxu0 %v1163_v12  ;;  %697 = vmatmul.mubr.bf16.vlgmr.msra.gmra.mxu1 %v1166_v13 }
  0x26   :  { %1071 = vmatprep.mubr.msk.bf16.mxu0 %vm439_vm0, %v1169_v14  ;;  %1087 = vmatprep.mubr.msk.bf16.mxu1 %vm439_vm0, %v1171_v15 }
  0x2d   :  { %577 = vmatmul.mubr.bf16.gmra.mxu0 %v1173_v16  ;;  %705 = vmatmul.mubr.bf16.gmra.mxu1 %v1174_v17 }
  0x2e   :  { %1072 = vmatprep.mubr.msk.bf16.mxu0 %vm439_vm0, %v1175_v18  ;;  %1088 = vmatprep.mubr.msk.bf16.mxu1 %vm439_vm0, %v1177_v19 }
  0x35   :  { %585 = vmatmul.mubr.bf16.gmra.mxu0 %v1179_v20  ;;  %713 = vmatmul.mubr.bf16.gmra.mxu1 %v1180_v21 }
  0x36   :  { %1073 = vmatprep.mubr.msk.bf16.mxu0 %vm439_vm0, %v1181_v22  ;;  %1089 = vmatprep.mubr.msk.bf16.mxu1 %vm439_vm0, %v1183_v23 }
  0x3d   :  { %593 = vmatmul.mubr.bf16.gmra.mxu0 %v1185_v24  ;;  %721 = vmatmul.mubr.bf16.gmra.mxu1 %v1186_v25 }
  0x3e   :  { %1074 = vmatprep.mubr.msk.bf16.mxu0 %vm439_vm0, %v1187_v26  ;;  %1090 = vmatprep.mubr.msk.bf16.mxu1 %vm439_vm0, %v1189_v27 }
  0x45   :  { %601 = vmatmul.mubr.bf16.gmra.mxu0 %v1191_v28  ;;  %729 = vmatmul.mubr.bf16.gmra.mxu1 %v1192_v29 }
  0x46   :  { %1075 = vmatprep.mubr.msk.bf16.mxu0 %vm439_vm0, %v1193_v30  ;;  %1091 = vmatprep.mubr.msk.bf16.mxu1 %vm439_vm0, %v1195_v31 }
  0x4d   :  { %609 = vmatmul.mubr.bf16.gmra.mxu0 %v1197_v32  ;;  %737 = vmatmul.mubr.bf16.gmra.mxu1 %v1198_v33 }
  0x4e   :  { %1076 = vmatprep.mubr.msk.bf16.mxu0 %vm439_vm0, %v1199_v34  ;;  %1092 = vmatprep.mubr.msk.bf16.mxu1 %vm439_vm0, %v1201_v35 }
  0x55   :  { %617 = vmatmul.mubr.bf16.gmra.mxu0 %v1203_v36  ;;  %745 = vmatmul.mubr.bf16.gmra.mxu1 %v1204_v37 }
  0x56   :  { %1077 = vmatprep.mubr.msk.bf16.mxu0 %vm439_vm0, %v1205_v38  ;;  %1093 = vmatprep.mubr.msk.bf16.mxu1 %vm439_vm0, %v1207_v39 }
  0x5d   :  { %625 = vmatmul.mubr.bf16.gmra.mxu0 %v1209_v40  ;;  %753 = vmatmul.mubr.bf16.gmra.mxu1 %v1210_v41 }
  0x5e   :  { %1078 = vmatprep.mubr.msk.bf16.mxu0 %vm439_vm0, %v1211_v42  ;;  %1094 = vmatprep.mubr.msk.bf16.mxu1 %vm439_vm0, %v1213_v43 }
  0x65   :  { %633 = vmatmul.mubr.bf16.gmra.mxu0 %v1215_v44  ;;  %761 = vmatmul.mubr.bf16.gmra.mxu1 %v1216_v45 }
  0x66   :  { %1079 = vmatprep.mubr.msk.bf16.mxu0 %vm439_vm0, %v1217_v46  ;;  %1095 = vmatprep.mubr.msk.bf16.mxu1 %vm439_vm0, %v1219_v47 }
  0x6d   :  { %641 = vmatmul.mubr.bf16.gmra.mxu0 %v1221_v48  ;;  %769 = vmatmul.mubr.bf16.gmra.mxu1 %v1222_v49 }
  0x6e   :  { %1080 = vmatprep.mubr.msk.bf16.mxu0 %vm439_vm0, %v1223_v50  ;;  %1096 = vmatprep.mubr.msk.bf16.mxu1 %vm439_vm0, %v1225_v51 }
  0x75   :  { %649 = vmatmul.mubr.bf16.gmra.mxu0 %v1227_v52  ;;  %777 = vmatmul.mubr.bf16.gmra.mxu1 %v1228_v53 }
  0x76   :  { %1081 = vmatprep.mubr.msk.bf16.mxu0 %vm439_vm0, %v1229_v54  ;;  %1097 = vmatprep.mubr.msk.bf16.mxu1 %vm439_vm0, %v1231_v55 }
  0x7d   :  { %657 = vmatmul.mubr.bf16.gmra.mxu0 %v1233_v56  ;;  %785 = vmatmul.mubr.bf16.gmra.mxu1 %v1234_v57 }
  0x7e   :  { %1082 = vmatprep.mubr.msk.bf16.mxu0 %vm439_vm0, %v1235_v58  ;;  %1098 = vmatprep.mubr.msk.bf16.mxu1 %vm439_vm0, %v1237_v59 }
  0x85   :  { %665 = vmatmul.mubr.bf16.gmra.mxu0 %v1239_v60  ;;  %793 = vmatmul.mubr.bf16.gmra.mxu1 %v1240_v61 }
  0x86   :  { %1083 = vmatprep.mubr.msk.bf16.mxu0 %vm439_vm0, %v1241_v62  ;;  %1099 = vmatprep.mubr.msk.bf16.mxu1 %vm439_vm0, %v1243_v63 }
  0x8d   :  { %673 = vmatmul.mubr.bf16.gmra.mxu0 %v1245_v0  ;;  %801 = vmatmul.mubr.bf16.gmra.mxu1 %v1246_v1 }
  0x8e   :  { %1084 = vmatprep.mubr.msk.bf16.mxu0 %vm439_vm0, %v1247_v2  ;;  %1100 = vmatprep.mubr.msk.bf16.mxu1 %vm439_vm0, %v1249_v3 }
  0x95   :  { %681 = vmatmul.mubr.bf16.gmra.mxu0 %v1251_v4  ;;  %809 = vmatmul.mubr.bf16.gmra.mxu1 %v1252_v5 }
  0x96   :  { %1085 = vmatprep.mubr.msk.bf16.mxu0 %vm439_vm0, %v1253_v6  ;;  %1101 = vmatprep.mubr.msk.bf16.mxu1 %vm439_vm0, %v1255_v7 }
  0x9d   :  { %689 = vmatmul.mubr.bf16.gmra.mxu0 %v1257_v8  ;;  %817 = vmatmul.mubr.bf16.gmra.mxu1 %v1258_v9 }
  0xe5   :  { %v1531_v10 = vpop.f32.mrf.mxu0  ;;  %v1533_v11 = vpop.f32.mrf.mxu1 }
  0xe7   :  { %v572_v12 = vpop.f32.mrf.mxu0  ;;  %v700_v13 = vpop.f32.mrf.mxu1 }
  0xe9   :  { %v1535_v14 = vpop.f32.mrf.mxu0  ;;  %v1537_v15 = vpop.f32.mrf.mxu1 }
  0xeb   :  { %v575_v16 = vpop.f32.mrf.mxu0  ;;  %v703_v17 = vpop.f32.mrf.mxu1 }
  0xed   :  { %v1539_v18 = vpop.f32.mrf.mxu0  ;;  %v1541_v19 = vpop.f32.mrf.mxu1 }
  0xef   :  { %v580_v20 = vpop.f32.mrf.mxu0  ;;  %v708_v21 = vpop.f32.mrf.mxu1 }
  0xf1   :  { %v1543_v22 = vpop.f32.mrf.mxu0  ;;  %v1545_v23 = vpop.f32.mrf.mxu1 }
  0xf3   :  { %v583_v24 = vpop.f32.mrf.mxu0  ;;  %v711_v25 = vpop.f32.mrf.mxu1 }
  0xf5   :  { %v1547_v26 = vpop.f32.mrf.mxu0  ;;  %v1549_v27 = vpop.f32.mrf.mxu1 }
  0xf7   :  { %v588_v28 = vpop.f32.mrf.mxu0  ;;  %v716_v29 = vpop.f32.mrf.mxu1 }
  0xf9   :  { %v1551_v30 = vpop.f32.mrf.mxu0  ;;  %v1553_v31 = vpop.f32.mrf.mxu1 }
  0xfb   :  { %v591_v32 = vpop.f32.mrf.mxu0  ;;  %v719_v33 = vpop.f32.mrf.mxu1 }
  0xfd   :  { %v1555_v34 = vpop.f32.mrf.mxu0  ;;  %v1557_v35 = vpop.f32.mrf.mxu1 }
  0xff   :  { %v596_v36 = vpop.f32.mrf.mxu0  ;;  %v724_v37 = vpop.f32.mrf.mxu1 }
 0x101   :  { %v1559_v38 = vpop.f32.mrf.mxu0  ;;  %v1561_v39 = vpop.f32.mrf.mxu1 }
 0x103   :  { %v599_v40 = vpop.f32.mrf.mxu0  ;;  %v727_v41 = vpop.f32.mrf.mxu1 }
 0x105   :  { %v1563_v42 = vpop.f32.mrf.mxu0  ;;  %v1565_v43 = vpop.f32.mrf.mxu1 }
 0x106   :  { %v825_v44 = vmax.f32 %v1531_v10, %v1563_v42  ;;  %v833_v45 = vmax.f32 %v1533_v11, %v1565_v43 }
 0x107   :  { %v604_v46 = vpop.f32.mrf.mxu0  ;;  %v732_v47 = vpop.f32.mrf.mxu1 }
 0x109   :  { %v1571_v48 = vpop.f32.mrf.mxu0  ;;  %v1573_v49 = vpop.f32.mrf.mxu1 }
 0x10a   :  { %v826_v50 = vmax.f32 %v1535_v14, %v1571_v48  ;;  %v1800_v11 = vmax.f32 %v1537_v15, %v1573_v49 }
 0x10b   :  { %v607_v52 = vpop.f32.mrf.mxu0  ;;  %v735_v53 = vpop.f32.mrf.mxu1 }
 0x10d   :  { %v1579_v54 = vpop.f32.mrf.mxu0  ;;  %v1581_v55 = vpop.f32.mrf.mxu1 }
 0x10e   :  { %v1801_v49 = vmax.f32 %v1539_v18, %v1579_v54 }
 0x10f   :  { %v612_v58 = vpop.f32.mrf.mxu0  ;;  %v740_v59 = vpop.f32.mrf.mxu1 }
 0x111   :  { %v1587_v60 = vpop.f32.mrf.mxu0  ;;  %v1589_v61 = vpop.f32.mrf.mxu1 }
 0x112   :  { %v1803_v18 = vmax.f32 %v1543_v22, %v1587_v60  ;;  %v1804_v54 = vmax.f32 %v1545_v23, %v1589_v61 }
 0x113   :  { %v615_v0 = vpop.f32.mrf.mxu0  ;;  %v743_v1 = vpop.f32.mrf.mxu1 }
 0x115   :  { %v1595_v2 = vpop.f32.mrf.mxu0  ;;  %v1597_v3 = vpop.f32.mrf.mxu1 }
 0x116   :  { %v1805_v23 = vmax.f32 %v1547_v26, %v1595_v2 }
 0x117   :  { %v620_v6 = vpop.f32.mrf.mxu0  ;;  %v748_v7 = vpop.f32.mrf.mxu1 }
 0x119   :  { %v1603_v8 = vpop.f32.mrf.mxu0  ;;  %v1605_v9 = vpop.f32.mrf.mxu1 }
 0x11b   :  { %v623_v16 = vpop.f32.mrf.mxu0  ;;  %v751_v17 = vpop.f32.mrf.mxu1 }
 0x11d   :  { %v1611_v20 = vpop.f32.mrf.mxu0  ;;  %v1613_v21 = vpop.f32.mrf.mxu1 }
 0x11f   :  { %v628_v28 = vpop.f32.mrf.mxu0  ;;  %v756_v29 = vpop.f32.mrf.mxu1 }
 0x121   :  { %v1619_v32 = vpop.f32.mrf.mxu0  ;;  %v1621_v33 = vpop.f32.mrf.mxu1 }
 0x123   :  { %v631_v40 = vpop.f32.mrf.mxu0  ;;  %v759_v41 = vpop.f32.mrf.mxu1 }
 0x125   :  { %v634_v46 = vpop.f32.mrf.mxu0  ;;  %v762_v47 = vpop.f32.mrf.mxu1 }
 0x127   :  { %v636_v52 = vpop.f32.mrf.mxu0  ;;  %v764_v53 = vpop.f32.mrf.mxu1 }
 0x129   :  { %v637_v58 = vpop.f32.mrf.mxu0  ;;  %v765_v59 = vpop.f32.mrf.mxu1 }
 0x12b   :  { %v639_v0 = vpop.f32.mrf.mxu0  ;;  %v767_v1 = vpop.f32.mrf.mxu1 }
 0x12d   :  { %v1627_v6 = vpop.f32.mrf.mxu0  ;;  %v1629_v7 = vpop.f32.mrf.mxu1 }
 0x12f   :  { %v644_v16 = vpop.f32.mrf.mxu0  ;;  %v772_v17 = vpop.f32.mrf.mxu1 }
 0x131   :  { %v1631_v28 = vpop.f32.mrf.mxu0  ;;  %v1633_v29 = vpop.f32.mrf.mxu1 }
 0x133   :  { %v647_v40 = vpop.f32.mrf.mxu0  ;;  %v775_v41 = vpop.f32.mrf.mxu1 }
 0x135   :  { %v1635_v37 = vpop.f32.mrf.mxu0  ;;  %v1637_v52 = vpop.f32.mrf.mxu1 }
 0x137   :  { %v652_v53 = vpop.f32.mrf.mxu0  ;;  %v780_v36 = vpop.f32.mrf.mxu1 }
 0x139   :  { %v1639_v0 = vpop.f32.mrf.mxu0  ;;  %v1641_v1 = vpop.f32.mrf.mxu1 }
 0x13b   :  { %v655_v25 = vpop.f32.mrf.mxu0  ;;  %v783_v24 = vpop.f32.mrf.mxu1 }
 0x13c   :  { %v1654_v24 = vld [vmem:[%s1798_s2] ss:$0 sm:$0xff] }
 0x13d   :  { %v1643_v16 = vpop.f32.mrf.mxu0  ;;  %v1645_v17 = vpop.f32.mrf.mxu1 }
 0x13f   :  { %v660_v13 = vpop.f32.mrf.mxu0  ;;  %v788_v12 = vpop.f32.mrf.mxu1 }
 0x141   :  { %v1647_v40 = vpop.f32.mrf.mxu0  ;;  %v1649_v41 = vpop.f32.mrf.mxu1 }
 0x143   :  { %v663_v5 = vpop.f32.mrf.mxu0  ;;  %v791_v4 = vpop.f32.mrf.mxu1 }
 0x145   :  { %v666_v53 = vpop.f32.mrf.mxu0  ;;  %v794_v36 = vpop.f32.mrf.mxu1 }
 0x146   :  { %v841_v63 = vmax.f32 %v634_v46, %v666_v53  ;;  %v849_v62 = vmax.f32 %v762_v47, %v794_v36 }
 0x147   :  { %v668_v25 = vpop.f32.mrf.mxu0  ;;  %v796_v57 = vpop.f32.mrf.mxu1 }
 0x148   :  { %v857_v12 = vmax.f32 %v825_v44, %v841_v63  ;;  %v865_v5 = vmax.f32 %v833_v45, %v849_v62 }
 0x149   :  { %v669_v4 = vpop.f32.mrf.mxu0  ;;  %v797_v13 = vpop.f32.mrf.mxu1 }
 0x14a   :  { %v880_v46 = vadd.f32 %v1654_v24, %v857_v12  ;;  %v888_v47 = vadd.f32 %v1654_v24, %v865_v5  ;;  %v842_v53 = vmax.f32 %v637_v58, %v669_v4  ;;  %v850_v36 = vmax.f32 %v765_v59, %v797_v13 }
 0x14b   :  { %v671_v56 = vpop.f32.mrf.mxu0  ;;  %v799_v51 = vpop.f32.mrf.mxu1 }
 0x14c   :  { %v896_v25 = vmax.f32 %v880_v46, 0.0  ;;  %v904_v57 = vmax.f32 %v888_v47, 0.0  ;;  %v858_v10 = vmax.f32 %v826_v50, %v842_v53  ;;  %v866_v42 = vmax.f32 %v1800_v11, %v850_v36 }
 0x14d   :  { %v674_v43 = vpop.f32.mrf.mxu0  ;;  %v802_v44 = vpop.f32.mrf.mxu1 }
 0x14e   :  { %v1119_v45 = vpack.c.bf16 %v896_v25, %v896_v25  ;;  %v1127_v62 = vpack.c.bf16 %v904_v57, %v904_v57  ;;  %v881_v63 = vadd.f32 %v1654_v24, %v858_v10  ;;  %v889_v56 = vadd.f32 %v1654_v24, %v866_v42 }
 0x14f   :  { %v843_v51 = vmax.f32 %v1627_v6, %v674_v43  ;;  %v851_v58 = vmax.f32 %v1629_v7, %v802_v44  ;;  %v676_v59 = vpop.f32.mrf.mxu0  ;;  %v804_v14 = vpop.f32.mrf.mxu1  ;;  %v1802_v6 = vmax.f32 %v1541_v19, %v1581_v55 }
 0x150   :  { %977 = vst.msk [vmem:[%s1799_s3] sm:$0xf] %vm976_vm1, %v1119_v45  ;;  %985 = vst.msk [vmem:[%s1799_s3 + $0x20] sm:$0xf] %vm976_vm1, %v1127_v62  ;;  %v897_v15 = vmax.f32 %v881_v63, 0.0  ;;  %v905_v48 = vmax.f32 %v889_v56, 0.0 }
 0x151   :  { %v859_v50 = vmax.f32 %v1801_v49, %v843_v51  ;;  %v867_v7 = vmax.f32 %v1802_v6, %v851_v58  ;;  %v677_v12 = vpop.f32.mrf.mxu0  ;;  %v805_v5 = vpop.f32.mrf.mxu1  ;;  %v1806_v58 = vmax.f32 %v1549_v27, %v1597_v3 }
 0x152   :  { %v1120_v4 = vpack.c.bf16 %v897_v15, %v897_v15  ;;  %v1128_v13 = vpack.c.bf16 %v905_v48, %v905_v48  ;;  %v844_v46 = vmax.f32 %v1631_v28, %v677_v12  ;;  %v852_v47 = vmax.f32 %v1633_v29, %v805_v5 }
 0x153   :  { %v882_v53 = vadd.f32 %v1654_v24, %v859_v50  ;;  %v890_v36 = vadd.f32 %v1654_v24, %v867_v7  ;;  %v679_v25 = vpop.f32.mrf.mxu0  ;;  %v807_v57 = vpop.f32.mrf.mxu1  ;;  %v1807_v7 = vmax.f32 %v1551_v30, %v1603_v8  ;;  %v1809_v30 = vmax.f32 %v1555_v34, %v1611_v20 }
 0x154   :  { %978 = vst.msk [vmem:[%s1799_s3 + $0x4] sm:$0xf] %vm976_vm1, %v1120_v4  ;;  %986 = vst.msk [vmem:[%s1799_s3 + $0x24] sm:$0xf] %vm976_vm1, %v1128_v13  ;;  %v860_v19 = vmax.f32 %v1803_v18, %v844_v46  ;;  %v868_v55 = vmax.f32 %v1804_v54, %v852_v47  ;;  %v1810_v8 = vmax.f32 %v1557_v35, %v1613_v21 }
 0x155   :  { %v898_v28 = vmax.f32 %v882_v53, 0.0  ;;  %v906_v29 = vmax.f32 %v890_v36, 0.0  ;;  %v682_v10 = vpop.f32.mrf.mxu0  ;;  %v810_v11 = vpop.f32.mrf.mxu1  ;;  %v1811_v35 = vmax.f32 %v1559_v38, %v1619_v32 }
 0x156   :  { %v883_v42 = vadd.f32 %v1654_v24, %v860_v19  ;;  %v891_v43 = vadd.f32 %v1654_v24, %v868_v55  ;;  %v845_v44 = vmax.f32 %v1635_v37, %v682_v10  ;;  %v853_v45 = vmax.f32 %v1637_v52, %v810_v11 }
 0x157   :  { %v1121_v62 = vpack.c.bf16 %v898_v28, %v898_v28  ;;  %v1129_v63 = vpack.c.bf16 %v906_v29, %v906_v29  ;;  %v684_v22 = vpop.f32.mrf.mxu0  ;;  %v812_v60 = vpop.f32.mrf.mxu1 }
 0x158   :  { %v899_v56 = vmax.f32 %v883_v42, 0.0  ;;  %v907_v51 = vmax.f32 %v891_v43, 0.0  ;;  %v861_v61 = vmax.f32 %v1805_v23, %v845_v44  ;;  %v869_v59 = vmax.f32 %v1806_v58, %v853_v45 }
 0x159   :  { %979 = vst.msk [vmem:[%s1799_s3 + $0x8] sm:$0xf] %vm976_vm1, %v1121_v62  ;;  %987 = vst.msk [vmem:[%s1799_s3 + $0x28] sm:$0xf] %vm976_vm1, %v1129_v63  ;;  %v685_v37 = vpop.f32.mrf.mxu0  ;;  %v813_v52 = vpop.f32.mrf.mxu1  ;;  %v1812_v45 = vmax.f32 %v1561_v39, %v1621_v33 }
 0x15a   :  { %v1122_v14 = vpack.c.bf16 %v899_v56, %v899_v56  ;;  %v1130_v15 = vpack.c.bf16 %v907_v51, %v907_v51  ;;  %v884_v26 = vadd.f32 %v1654_v24, %v861_v61  ;;  %v892_v2 = vadd.f32 %v1654_v24, %v869_v59 }
 0x15b   :  { %v846_v27 = vmax.f32 %v1639_v0, %v685_v37  ;;  %v854_v3 = vmax.f32 %v1641_v1, %v813_v52  ;;  %v687_v48 = vpop.f32.mrf.mxu0  ;;  %v815_v49 = vpop.f32.mrf.mxu1  ;;  %v1808_v1 = vmax.f32 %v1553_v31, %v1605_v9 }
 0x15c   :  { %980 = vst.msk [vmem:[%s1799_s3 + $0xc] sm:$0xf] %vm976_vm1, %v1122_v14  ;;  %988 = vst.msk [vmem:[%s1799_s3 + $0x2c] sm:$0xf] %vm976_vm1, %v1130_v15  ;;  %v900_v50 = vmax.f32 %v884_v26, 0.0  ;;  %v908_v6 = vmax.f32 %v892_v2, 0.0 }
 0x15d   :  { %v862_v0 = vmax.f32 %v1807_v7, %v846_v27  ;;  %v870_v12 = vmax.f32 %v1808_v1, %v854_v3  ;;  %v690_v5 = vpop.f32.mrf.mxu0  ;;  %v818_v4 = vpop.f32.mrf.mxu1 }
 0x15e   :  { %v1123_v13 = vpack.c.bf16 %v900_v50, %v900_v50  ;;  %v1131_v46 = vpack.c.bf16 %v908_v6, %v908_v6  ;;  %v847_v47 = vmax.f32 %v1643_v16, %v690_v5  ;;  %v855_v53 = vmax.f32 %v1645_v17, %v818_v4 }
 0x15f   :  { %v885_v36 = vadd.f32 %v1654_v24, %v862_v0  ;;  %v893_v25 = vadd.f32 %v1654_v24, %v870_v12  ;;  %v692_v57 = vpop.f32.mrf.mxu0  ;;  %v820_v18 = vpop.f32.mrf.mxu1 }
 0x160   :  { %981 = vst.msk [vmem:[%s1799_s3 + $0x10] sm:$0xf] %vm976_vm1, %v1123_v13  ;;  %989 = vst.msk [vmem:[%s1799_s3 + $0x30] sm:$0xf] %vm976_vm1, %v1131_v46  ;;  %v863_v31 = vmax.f32 %v1809_v30, %v847_v47  ;;  %v871_v9 = vmax.f32 %v1810_v8, %v855_v53 }
 0x161   :  { %v901_v16 = vmax.f32 %v885_v36, 0.0  ;;  %v909_v17 = vmax.f32 %v893_v25, 0.0  ;;  %v693_v19 = vpop.f32.mrf.mxu0  ;;  %v821_v54 = vpop.f32.mrf.mxu1 }
 0x162   :  { %v886_v55 = vadd.f32 %v1654_v24, %v863_v31  ;;  %v894_v28 = vadd.f32 %v1654_v24, %v871_v9  ;;  %v848_v29 = vmax.f32 %v1647_v40, %v693_v19  ;;  %v856_v10 = vmax.f32 %v1649_v41, %v821_v54 }
 0x163   :  { %v1124_v11 = vpack.c.bf16 %v901_v16, %v901_v16  ;;  %v1132_v42 = vpack.c.bf16 %v909_v17, %v909_v17  ;;  %v695_v34 = vpop.f32.mrf.mxu0  ;;  %v823_v20 = vpop.f32.mrf.mxu1 }
 0x164   :  { %v902_v43 = vmax.f32 %v886_v55, 0.0  ;;  %v910_v44 = vmax.f32 %v894_v28, 0.0  ;;  %v864_v21 = vmax.f32 %v1811_v35, %v848_v29  ;;  %v872_v62 = vmax.f32 %v1812_v45, %v856_v10 }
 0x165   :  { %982 = vst.msk [vmem:[%s1799_s3 + $0x14] sm:$0xf] %vm976_vm1, %v1124_v11  ;;  %990 = vst.msk [vmem:[%s1799_s3 + $0x34] sm:$0xf] %vm976_vm1, %v1132_v42 }
 0x166   :  { %v1125_v40 = vpack.c.bf16 %v902_v43, %v902_v43  ;;  %v1133_v41 = vpack.c.bf16 %v910_v44, %v910_v44  ;;  %v887_v63 = vadd.f32 %v1654_v24, %v864_v21  ;;  %v895_v38 = vadd.f32 %v1654_v24, %v872_v62 }
 0x168   :  { %983 = vst.msk [vmem:[%s1799_s3 + $0x18] sm:$0xf] %vm976_vm1, %v1125_v40  ;;  %991 = vst.msk [vmem:[%s1799_s3 + $0x38] sm:$0xf] %vm976_vm1, %v1133_v41  ;;  %v903_v39 = vmax.f32 %v887_v63, 0.0  ;;  %v911_v32 = vmax.f32 %v895_v38, 0.0 }
 0x16a   :  { %v1126_v33 = vpack.c.bf16 %v903_v39, %v903_v39  ;;  %v1134_v22 = vpack.c.bf16 %v911_v32, %v911_v32 }
 0x16c   :  { %984 = vst.msk [vmem:[%s1799_s3 + $0x1c] sm:$0xf] %vm976_vm1, %v1126_v33  ;;  %992 = vst.msk [vmem:[%s1799_s3 + $0x3c] sm:$0xf] %vm976_vm1, %v1134_v22 }

// kernel: cnn_cifar_v2_forward.6
= control target key start
LH: loop header
LB: loop body
LE: loop exit
PB: predicated region body
PF: predicated region fallthrough
CT: control target
= control target key end

     0   :  { %vm311_vm0 = vcmask 261120   ;;  %vm573_vm1 = vcmask 519168   ;;  %s998_s1 = inlined_call_operand.vmem [shape: bf16[288,64], index: 1, kind: input, shape index: {}]   ;;  %s999_s0 = inlined_call_operand.vmem [shape: bf16[2,4,16,288], index: 0, kind: input, shape index: {}]   ;;  %s1000_s2 = inlined_call_operand.vmem [shape: f32[1,64], index: 2, kind: input, shape index: {}]   ;;  %s1001_s3 = inlined_call_operand.vmem [shape: bf16[2,16,64], index: 3, kind: output, shape index: {}]  }
   0x1   :  { %v751_v0 = vld [vmem:[%s998_s1 + $0x78] sm:$0xff]   ;;  %v753_v2 = vld [vmem:[%s998_s1 + $0x70] sm:$0xff]   ;;  %v755_v4 = vld [vmem:[%s998_s1 + $0x68] sm:$0xff]  }
   0x2   :  { %v752_v1 = vld [vmem:[%s998_s1 + $0x38] sm:$0xff]   ;;  %641 = vmatprep.subr.bf16.mxu0 %v751_v0  ;;  %735 = vmatprep.subr.bf16.mxu1 %v751_v0  ;;  %v754_v3 = vld [vmem:[%s998_s1 + $0x30] sm:$0xff]   ;;  %v756_v5 = vld [vmem:[%s998_s1 + $0x28] sm:$0xff]  }
   0x3   :  { %642 = vmatpush3.bf16.msra.mxu0 %v752_v1  ;;  %743 = vmatpush3.bf16.msra.mxu1 %v752_v1  ;;  %v757_v6 = vld [vmem:[%s998_s1 + $0x60] sm:$0xff]   ;;  %v759_v8 = vld [vmem:[%s998_s1 + $0x58] sm:$0xff]   ;;  %v761_v10 = vld [vmem:[%s998_s1 + $0x50] sm:$0xff]  }
   0x4   :  { %643 = vmatprep.subr.bf16.mxu0 %v753_v2  ;;  %736 = vmatprep.subr.bf16.mxu1 %v753_v2  ;;  %v758_v7 = vld [vmem:[%s998_s1 + $0x20] sm:$0xff]   ;;  %v760_v9 = vld [vmem:[%s998_s1 + $0x18] sm:$0xff]   ;;  %v762_v13 = vld [vmem:[%s998_s1 + $0x10] sm:$0xff]  }
   0x5   :  { %v769_v11 = vld [vmem:[%s999_s0 + $0x4] ss:$12 sps:$4 sm:$0xff]   ;;  %v772_v12 = vld [vmem:[%s999_s0 + $0x94] ss:$12 sps:$4 sm:$0xff]   ;;  %v763_v14 = vld [vmem:[%s998_s1 + $0x48] sm:$0xff]  }
   0x6   :  { %368 = vmatprep.mubr.bf16.mxu0 %v769_v11  ;;  %416 = vmatprep.mubr.bf16.mxu1 %v772_v12  ;;  %v764_v15 = vld [vmem:[%s998_s1 + $0x8] sm:$0xff]   ;;  %v765_v16 = vld [vmem:[%s998_s1 + $0x40] sm:$0xff]   ;;  %v770_v20 = vld [vmem:[%s999_s0 + $0x90] ss:$12 sps:$4 sm:$0xff]  }
   0x7   :  { %644 = vmatpush3.bf16.msra.mxu0 %v754_v3  ;;  %744 = vmatpush3.bf16.msra.mxu1 %v754_v3  ;;  %v766_v17 = vld [vmem:[%s998_s1] sm:$0xff]   ;;  %v773_v19 = vld [vmem:[%s998_s1 + $0x88] sm:$0xff]   ;;  %v784_v28 = vld [vmem:[%s999_s0 + $0x30] ss:$12 sps:$4 sm:$0xff]  }
   0x8   :  { %645 = vmatprep.subr.bf16.mxu0 %v755_v4  ;;  %737 = vmatprep.subr.bf16.mxu1 %v755_v4  ;;  %v767_v18 = vld [vmem:[%s999_s0] ss:$12 sps:$4 sm:$0xff]   ;;  %v774_v21 = vld [vmem:[%s999_s0 + $0x1c] ss:$12 sps:$4 sm:$0xff]   ;;  %v778_v24 = vld [vmem:[%s999_s0 + $0x18] ss:$12 sps:$4 sm:$0xff]  }
   0x9   :  { %v776_v22 = vld [vmem:[%s999_s0 + $0xac] ss:$12 sps:$4 sm:$0xff]   ;;  %v780_v23 = vld [vmem:[%s998_s1 + $0x80] sm:$0xff]   ;;  %v779_v25 = vld [vmem:[%s999_s0 + $0xa8] ss:$12 sps:$4 sm:$0xff]  }
   0xa   :  { %v781_v26 = vld [vmem:[%s999_s0 + $0x34] ss:$12 sps:$4 sm:$0xff]   ;;  %v786_v30 = vld [vmem:[%s999_s0 + $0x4c] ss:$12 sps:$4 sm:$0xff]   ;;  %v790_v33 = vld [vmem:[%s999_s0 + $0x50] ss:$12 sps:$4 sm:$0xff]  }
   0xb   :  { %646 = vmatpush3.bf16.msra.mxu0 %v756_v5  ;;  %745 = vmatpush3.bf16.msra.mxu1 %v756_v5  ;;  %v783_v27 = vld [vmem:[%s999_s0 + $0x8] ss:$12 sps:$4 sm:$0xff]   ;;  %v785_v29 = vld [vmem:[%s999_s0 + $0x20] ss:$12 sps:$4 sm:$0xff]   ;;  %v788_v31 = vld [vmem:[%s999_s0 + $0x38] ss:$12 sps:$4 sm:$0xff]  }
   0xc   :  { %647 = vmatprep.subr.bf16.mxu0 %v757_v6  ;;  %738 = vmatprep.subr.bf16.mxu1 %v757_v6  ;;  %v789_v32 = vld [vmem:[%s999_s0 + $0x48] ss:$12 sps:$4 sm:$0xff]   ;;  %v791_v34 = vld [vmem:[%s999_s0 + $0x64] ss:$12 sps:$4 sm:$0xff]   ;;  %v794_v36 = vld [vmem:[%s999_s0 + $0x60] ss:$12 sps:$4 sm:$0xff]  }
   0xd   :  { %v793_v35 = vld [vmem:[%s999_s0 + $0x68] ss:$12 sps:$4 sm:$0xff]   ;;  %v795_v37 = vld [vmem:[%s999_s0 + $0x80] ss:$12 sps:$4 sm:$0xff]   ;;  %v798_v39 = vld [vmem:[%s999_s0 + $0x98] ss:$12 sps:$4 sm:$0xff]  }
   0xe   :  { %v796_v38 = vld [vmem:[%s999_s0 + $0x7c] ss:$12 sps:$4 sm:$0xff]   ;;  %v799_v40 = vld [vmem:[%s999_s0 + $0x78] ss:$12 sps:$4 sm:$0xff]  }
   0xf   :  { %648 = vmatpush3.bf16.msra.mxu0 %v758_v7  ;;  %746 = vmatpush3.bf16.msra.mxu1 %v758_v7  ;;  %v800_v41 = vld [vmem:[%s999_s0 + $0xb0] ss:$12 sps:$4 sm:$0xff]  }
  0x10   :  { %649 = vmatprep.subr.bf16.mxu0 %v759_v8  ;;  %739 = vmatprep.subr.bf16.mxu1 %v759_v8 }
  0x13   :  { %650 = vmatpush3.bf16.msra.mxu0 %v760_v9  ;;  %747 = vmatpush3.bf16.msra.mxu1 %v760_v9 }
  0x14   :  { %651 = vmatprep.subr.bf16.mxu0 %v761_v10  ;;  %740 = vmatprep.subr.bf16.mxu1 %v761_v10 }
  0x17   :  { %652 = vmatpush3.bf16.msra.mxu0 %v762_v13  ;;  %748 = vmatpush3.bf16.msra.mxu1 %v762_v13 }
  0x18   :  { %653 = vmatprep.subr.bf16.mxu0 %v763_v14  ;;  %741 = vmatprep.subr.bf16.mxu1 %v763_v14 }
  0x1b   :  { %654 = vmatpush3.bf16.msra.mxu0 %v764_v15  ;;  %749 = vmatpush3.bf16.msra.mxu1 %v764_v15 }
  0x1c   :  { %655 = vmatprep.subr.bf16.mxu0 %v765_v16  ;;  %742 = vmatprep.subr.bf16.mxu1 %v765_v16 }
  0x1f   :  { %656 = vmatpush3.bf16.msra.mxu0 %v766_v17  ;;  %750 = vmatpush3.bf16.msra.mxu1 %v766_v17 }
  0x20   :  { %715 = vmatprep.subr.bf16.mxu1 %v773_v19 }
  0x22   :  { %369 = vmatmul.mubr.bf16.vlgmr.msra.gmra.mxu0 %v767_v18  ;;  %417 = vmatmul.mubr.bf16.vlgmr.msra.gmra.mxu1 %v770_v20 }
  0x23   :  { %716 = vmatpush3.bf16.msra.mxu1 %v773_v19  ;;  %376 = vmatprep.mubr.bf16.mxu0 %v774_v21 }
  0x24   :  { %424 = vmatprep.mubr.bf16.mxu1 %v776_v22  ;;  %717 = vmatprep.subr.bf16.mxu1 %v780_v23 }
  0x27   :  { %718 = vmatpush3.bf16.msra.mxu1 %v780_v23 }
  0x2a   :  { %377 = vmatmul.mubr.bf16.gmra.mxu0 %v778_v24  ;;  %425 = vmatmul.mubr.bf16.gmra.mxu1 %v779_v25  ;;  %v632_v25 = vld [vmem:[%s1000_s2] ss:$0 sm:$0xff] }
  0x2b   :  { %384 = vmatprep.mubr.bf16.mxu0 %v781_v26  ;;  %719 = vmatprep.mubr.msk.bf16.mxu1 %vm311_vm0, %v783_v27 }
  0x32   :  { %385 = vmatmul.mubr.bf16.gmra.mxu0 %v784_v28  ;;  %720 = vmatmul.mubr.msk.bf16.vlgmr.msra.gmra.mxu1 %vm311_vm0, %v785_v29 }
  0x33   :  { %392 = vmatprep.mubr.bf16.mxu0 %v786_v30  ;;  %723 = vmatprep.mubr.msk.bf16.mxu1 %vm311_vm0, %v788_v31 }
  0x3a   :  { %393 = vmatmul.mubr.bf16.gmra.mxu0 %v789_v32  ;;  %724 = vmatmul.mubr.msk.bf16.gmra.mxu1 %vm311_vm0, %v790_v33 }
  0x3b   :  { %400 = vmatprep.mubr.bf16.mxu0 %v791_v34  ;;  %727 = vmatprep.mubr.msk.bf16.mxu1 %vm311_vm0, %v793_v35 }
  0x42   :  { %401 = vmatmul.mubr.bf16.gmra.mxu0 %v794_v36  ;;  %728 = vmatmul.mubr.msk.bf16.gmra.mxu1 %vm311_vm0, %v795_v37 }
  0x43   :  { %408 = vmatprep.mubr.bf16.mxu0 %v796_v38  ;;  %731 = vmatprep.mubr.msk.bf16.mxu1 %vm311_vm0, %v798_v39 }
  0x4a   :  { %409 = vmatmul.mubr.bf16.gmra.mxu0 %v799_v40  ;;  %732 = vmatmul.mubr.msk.bf16.gmra.mxu1 %vm311_vm0, %v800_v41 }
  0xe2   :  { %v657_v42 = vpop.f32.mrf.mxu0  ;;  %v955_v43 = vpop.f32.mrf.mxu1 }
  0xe4   :  { %v658_v44 = vpop.f32.mrf.mxu0  ;;  %v957_v45 = vpop.f32.mrf.mxu1 }
  0xe5   :  { %v659_v2 = vadd.f32 %v658_v44, %v657_v42 }
  0xe6   :  { %v660_v46 = vpop.f32.mrf.mxu0  ;;  %v959_v47 = vpop.f32.mrf.mxu1 }
  0xe8   :  { %v661_v48 = vpop.f32.mrf.mxu0  ;;  %v961_v49 = vpop.f32.mrf.mxu1 }
  0xe9   :  { %v662_v14 = vadd.f32 %v661_v48, %v660_v46 }
  0xea   :  { %v663_v50 = vpop.f32.mrf.mxu0  ;;  %v963_v51 = vpop.f32.mrf.mxu1 }
  0xec   :  { %v664_v52 = vpop.f32.mrf.mxu0  ;;  %v965_v53 = vpop.f32.mrf.mxu1 }
  0xed   :  { %v665_v5 = vadd.f32 %v664_v52, %v663_v50  ;;  %v695_v52 = vadd.f32 %v957_v45, %v955_v43 }
  0xee   :  { %v666_v54 = vpop.f32.mrf.mxu0  ;;  %v967_v55 = vpop.f32.mrf.mxu1 }
  0xf0   :  { %v667_v56 = vpop.f32.mrf.mxu0  ;;  %v969_v57 = vpop.f32.mrf.mxu1 }
  0xf1   :  { %v668_v17 = vadd.f32 %v667_v56, %v666_v54 }
  0xf2   :  { %v669_v58 = vpop.f32.mrf.mxu0  ;;  %v721_v59 = vpop.f32.mrf.mxu1 }
  0xf3   :  { %v476_v11 = vadd.f32 %v721_v59, %v665_v5 }
  0xf4   :  { %v670_v60 = vpop.f32.mrf.mxu0  ;;  %v467_v61 = vpop.f32.mrf.mxu1 }
  0xf5   :  { %v468_v6 = vadd.f32 %v659_v2, %v467_v61  ;;  %v671_v9 = vadd.f32 %v670_v60, %v669_v58  ;;  %v701_v60 = vadd.f32 %v965_v53, %v963_v51  ;;  %v704_v51 = vadd.f32 %v969_v57, %v967_v55 }
  0xf6   :  { %v672_v62 = vpop.f32.mrf.mxu0  ;;  %v722_v63 = vpop.f32.mrf.mxu1 }
  0xf7   :  { %v530_v18 = vmax.f32 %v468_v6, %v476_v11  ;;  %v479_v28 = vadd.f32 %v722_v63, %v668_v17 }
  0xf8   :  { %v673_v0 = vpop.f32.mrf.mxu0  ;;  %v470_v1 = vpop.f32.mrf.mxu1 }
  0xf9   :  { %v674_v21 = vadd.f32 %v673_v0, %v672_v62  ;;  %v471_v22 = vadd.f32 %v662_v14, %v470_v1  ;;  %v698_v0 = vadd.f32 %v961_v49, %v959_v47 }
  0xfa   :  { %v675_v3 = vpop.f32.mrf.mxu0  ;;  %v725_v4 = vpop.f32.mrf.mxu1 }
  0xfb   :  { %v531_v34 = vmax.f32 %v471_v22, %v479_v28 }
  0xfc   :  { %v676_v7 = vpop.f32.mrf.mxu0  ;;  %v483_v8 = vpop.f32.mrf.mxu1 }
  0xfd   :  { %v677_v10 = vadd.f32 %v676_v7, %v675_v3  ;;  %v484_v16 = vadd.f32 %v671_v9, %v483_v8 }
  0xfe   :  { %v678_v12 = vpop.f32.mrf.mxu0  ;;  %v726_v13 = vpop.f32.mrf.mxu1 }
  0xff   :  { %v492_v15 = vadd.f32 %v725_v4, %v677_v10 }
 0x100   :  { %v679_v19 = vpop.f32.mrf.mxu0  ;;  %v486_v20 = vpop.f32.mrf.mxu1 }
 0x101   :  { %v534_v23 = vmax.f32 %v484_v16, %v492_v15  ;;  %v680_v24 = vadd.f32 %v679_v19, %v678_v12  ;;  %v487_v31 = vadd.f32 %v674_v21, %v486_v20 }
 0x102   :  { %v681_v26 = vpop.f32.mrf.mxu0  ;;  %v729_v27 = vpop.f32.mrf.mxu1 }
 0x103   :  { %v538_v29 = vmax.f32 %v530_v18, %v534_v23  ;;  %v495_v30 = vadd.f32 %v726_v13, %v680_v24 }
 0x104   :  { %v682_v32 = vpop.f32.mrf.mxu0  ;;  %v499_v33 = vpop.f32.mrf.mxu1 }
 0x105   :  { %v549_v35 = vadd.f32 %v632_v25, %v538_v29  ;;  %v535_v36 = vmax.f32 %v487_v31, %v495_v30  ;;  %v683_v56 = vadd.f32 %v682_v32, %v681_v26 }
 0x106   :  { %v684_v37 = vpop.f32.mrf.mxu0  ;;  %v730_v38 = vpop.f32.mrf.mxu1 }
 0x107   :  { %v553_v39 = vmax.f32 %v549_v35, 0.0  ;;  %v539_v40 = vmax.f32 %v531_v34, %v535_v36  ;;  %v500_v45 = vadd.f32 %v683_v56, %v499_v33 }
 0x108   :  { %v685_v41 = vpop.f32.mrf.mxu0  ;;  %v502_v42 = vpop.f32.mrf.mxu1 }
 0x109   :  { %v637_v44 = vpack.c.bf16 %v553_v39, %v553_v39  ;;  %v550_v46 = vadd.f32 %v632_v25, %v539_v40  ;;  %v686_v2 = vadd.f32 %v685_v41, %v684_v37 }
 0x10a   :  { %v687_v48 = vpop.f32.mrf.mxu0  ;;  %v733_v50 = vpop.f32.mrf.mxu1 }
 0x10b   :  { %574 = vst.msk [vmem:[%s1001_s3] sm:$0xf] %vm573_vm1, %v637_v44  ;;  %v554_v54 = vmax.f32 %v550_v46, 0.0  ;;  %v524_v3 = vadd.f32 %v733_v50, %v701_v60  ;;  %v503_v49 = vadd.f32 %v686_v2, %v502_v42 }
 0x10c   :  { %v688_v58 = vpop.f32.mrf.mxu0  ;;  %v515_v59 = vpop.f32.mrf.mxu1 }
 0x10d   :  { %v638_v61 = vpack.c.bf16 %v554_v54, %v554_v54  ;;  %v689_v62 = vadd.f32 %v688_v58, %v687_v48  ;;  %v516_v63 = vadd.f32 %v695_v52, %v515_v59 }
 0x10e   :  { %v690_v1 = vpop.f32.mrf.mxu0  ;;  %v734_v43 = vpop.f32.mrf.mxu1 }
 0x10f   :  { %575 = vst.msk [vmem:[%s1001_s3 + $0x4] sm:$0xf] %vm573_vm1, %v638_v61  ;;  %v508_v4 = vadd.f32 %v729_v27, %v689_v62  ;;  %v536_v7 = vmax.f32 %v516_v63, %v524_v3  ;;  %v527_v10 = vadd.f32 %v734_v43, %v704_v51 }
 0x110   :  { %v691_v53 = vpop.f32.mrf.mxu0  ;;  %v518_v5 = vpop.f32.mrf.mxu1 }
 0x111   :  { %v532_v6 = vmax.f32 %v500_v45, %v508_v4  ;;  %v692_v8 = vadd.f32 %v691_v53, %v690_v1  ;;  %v519_v47 = vadd.f32 %v698_v0, %v518_v5 }
 0x113   :  { %v540_v9 = vmax.f32 %v532_v6, %v536_v7  ;;  %v511_v11 = vadd.f32 %v730_v38, %v692_v8  ;;  %v537_v14 = vmax.f32 %v519_v47, %v527_v10 }
 0x115   :  { %v551_v12 = vadd.f32 %v632_v25, %v540_v9  ;;  %v533_v13 = vmax.f32 %v503_v49, %v511_v11 }
 0x117   :  { %v555_v15 = vmax.f32 %v551_v12, 0.0  ;;  %v541_v16 = vmax.f32 %v533_v13, %v537_v14 }
 0x119   :  { %v639_v17 = vpack.c.bf16 %v555_v15, %v555_v15  ;;  %v552_v18 = vadd.f32 %v632_v25, %v541_v16 }
 0x11b   :  { %576 = vst.msk [vmem:[%s1001_s3 + $0x8] sm:$0xf] %vm573_vm1, %v639_v17  ;;  %v556_v55 = vmax.f32 %v552_v18, 0.0 }
 0x11d   :  { %v640_v57 = vpack.c.bf16 %v556_v55, %v556_v55 }
 0x11f   :  { %577 = vst.msk [vmem:[%s1001_s3 + $0xc] sm:$0xf] %vm573_vm1, %v640_v57 }

// kernel: cnn_cifar_v2_forward.7
= control target key start
LH: loop header
LB: loop body
LE: loop exit
PB: predicated region body
PF: predicated region fallthrough
CT: control target
= control target key end

     0   :  { %v287_v36 = vlaneseq  ;;  %v3244_v37 = vmov 1966171168   ;;  %s4238_s0 = inlined_call_operand.vmem [shape: bf16[2,1024], index: 0, kind: input, shape index: {}]   ;;  %s4239_s1 = inlined_call_operand.vmem [shape: bf16[1024,512], index: 1, kind: input, shape index: {}]   ;;  %s4240_s2 = inlined_call_operand.vmem [shape: f32[1,512], index: 2, kind: input, shape index: {}]   ;;  %s4241_s3 = inlined_call_operand.vmem [shape: bf16[512,64], index: 3, kind: input, shape index: {}]   ;;  %s4242_s4 = inlined_call_operand.vmem [shape: f32[1,64], index: 4, kind: input, shape index: {}]   ;;  %s4243_s5 = inlined_call_operand.vmem [shape: bf16[64,10], index: 5, kind: input, shape index: {}]   ;;  %s4244_s6 = inlined_call_operand.vmem [shape: f32[1,10], index: 6, kind: input, shape index: {}]   ;;  %s4245_s7 = inlined_call_operand.hbm [shape: f32[2,10], index: 7, kind: output, shape index: {}]  }
   0x1   :  { %v2797_v0 = vld [vmem:[%s4239_s1 + $0xe4] ss:$16 sps:$4 sm:$0xff]   ;;  %v2801_v2 = vld [vmem:[%s4239_s1 + $0xe0] ss:$16 sps:$4 sm:$0xff]   ;;  %v310_v38 = vunpack.c.l.s4 %v3244_v37 }
   0x2   :  { %v2799_v1 = vld [vmem:[%s4239_s1 + $0x2e4] ss:$16 sps:$4 sm:$0xff]   ;;  %1645 = vmatprep.subr.bf16.mxu0 %v2797_v0  ;;  %v2802_v3 = vld [vmem:[%s4239_s1 + $0x2e0] ss:$16 sps:$4 sm:$0xff]   ;;  %v3405_v42 = vshrl.u32 %v287_v36, 7 }
   0x3   :  { %1686 = vmatprep.subr.bf16.mxu1 %v2799_v1  ;;  %v2803_v4 = vld [vmem:[%s4239_s1 + $0xc4] ss:$16 sps:$4 sm:$0xff]   ;;  %1646 = vmatpush1.bf16.msra.mxu0 %v2801_v2  ;;  %v2807_v6 = vld [vmem:[%s4239_s1 + $0xc0] ss:$16 sps:$4 sm:$0xff]   ;;  %v311_v43 = vunpack.c.0.s8 %v310_v38 }
   0x4   :  { %1687 = vmatpush1.bf16.msra.mxu1 %v2802_v3  ;;  %v2805_v5 = vld [vmem:[%s4239_s1 + $0x2c4] ss:$16 sps:$4 sm:$0xff]   ;;  %1647 = vmatprep.subr.bf16.mxu0 %v2803_v4  ;;  %v2808_v7 = vld [vmem:[%s4239_s1 + $0x2c0] ss:$16 sps:$4 sm:$0xff]  }
   0x5   :  { %1688 = vmatprep.subr.bf16.mxu1 %v2805_v5  ;;  %v2809_v8 = vld [vmem:[%s4239_s1 + $0xa4] ss:$16 sps:$4 sm:$0xff]   ;;  %v2813_v10 = vld [vmem:[%s4239_s1 + $0xa0] ss:$16 sps:$4 sm:$0xff]   ;;  %v314_v49 = vsub.s32 %v311_v43, %v3405_v42 }
   0x6   :  { %v2811_v9 = vld [vmem:[%s4239_s1 + $0x2a4] ss:$16 sps:$4 sm:$0xff]   ;;  %v2814_v11 = vld [vmem:[%s4239_s1 + $0x2a0] ss:$16 sps:$4 sm:$0xff]  }
   0x7   :  { %1648 = vmatpush1.bf16.msra.mxu0 %v2807_v6  ;;  %v2815_v12 = vld [vmem:[%s4239_s1 + $0x84] ss:$16 sps:$4 sm:$0xff]   ;;  %v2819_v14 = vld [vmem:[%s4239_s1 + $0x80] ss:$16 sps:$4 sm:$0xff]  }
   0x8   :  { %1689 = vmatpush1.bf16.msra.mxu1 %v2808_v7  ;;  %1649 = vmatprep.subr.bf16.mxu0 %v2809_v8  ;;  %v2817_v13 = vld [vmem:[%s4239_s1 + $0x284] ss:$16 sps:$4 sm:$0xff]   ;;  %v2820_v15 = vld [vmem:[%s4239_s1 + $0x280] ss:$16 sps:$4 sm:$0xff]  }
   0x9   :  { %1690 = vmatprep.subr.bf16.mxu1 %v2811_v9  ;;  %v2821_v16 = vld [vmem:[%s4239_s1 + $0x64] ss:$16 sps:$4 sm:$0xff]   ;;  %v2825_v18 = vld [vmem:[%s4239_s1 + $0x60] ss:$16 sps:$4 sm:$0xff]  }
   0xa   :  { %v2823_v17 = vld [vmem:[%s4239_s1 + $0x264] ss:$16 sps:$4 sm:$0xff]   ;;  %v2826_v19 = vld [vmem:[%s4239_s1 + $0x260] ss:$16 sps:$4 sm:$0xff]  }
   0xb   :  { %1650 = vmatpush1.bf16.msra.mxu0 %v2813_v10  ;;  %v2827_v20 = vld [vmem:[%s4239_s1 + $0x44] ss:$16 sps:$4 sm:$0xff]   ;;  %v2831_v22 = vld [vmem:[%s4239_s1 + $0x40] ss:$16 sps:$4 sm:$0xff]  }
   0xc   :  { %1691 = vmatpush1.bf16.msra.mxu1 %v2814_v11  ;;  %1651 = vmatprep.subr.bf16.mxu0 %v2815_v12  ;;  %v2829_v21 = vld [vmem:[%s4239_s1 + $0x244] ss:$16 sps:$4 sm:$0xff]   ;;  %v2832_v23 = vld [vmem:[%s4239_s1 + $0x240] ss:$16 sps:$4 sm:$0xff]  }
   0xd   :  { %1692 = vmatprep.subr.bf16.mxu1 %v2817_v13  ;;  %v2833_v24 = vld [vmem:[%s4239_s1 + $0x24] ss:$16 sps:$4 sm:$0xff]   ;;  %v2837_v26 = vld [vmem:[%s4239_s1 + $0x20] ss:$16 sps:$4 sm:$0xff]  }
   0xe   :  { %v2835_v25 = vld [vmem:[%s4239_s1 + $0x224] ss:$16 sps:$4 sm:$0xff]   ;;  %v2838_v27 = vld [vmem:[%s4239_s1 + $0x220] ss:$16 sps:$4 sm:$0xff]  }
   0xf   :  { %1652 = vmatpush1.bf16.msra.mxu0 %v2819_v14  ;;  %v2839_v28 = vld [vmem:[%s4239_s1 + $0x4] ss:$16 sps:$4 sm:$0xff]   ;;  %v2843_v30 = vld [vmem:[%s4239_s1] ss:$16 sps:$4 sm:$0xff]  }
  0x10   :  { %1693 = vmatpush1.bf16.msra.mxu1 %v2820_v15  ;;  %1653 = vmatprep.subr.bf16.mxu0 %v2821_v16  ;;  %v2841_v29 = vld [vmem:[%s4239_s1 + $0x204] ss:$16 sps:$4 sm:$0xff]   ;;  %v2844_v31 = vld [vmem:[%s4239_s1 + $0x200] ss:$16 sps:$4 sm:$0xff]  }
  0x11   :  { %1694 = vmatprep.subr.bf16.mxu1 %v2823_v17  ;;  %v2845_v32 = vld [vmem:[%s4239_s1 + $0x1e4] ss:$16 sps:$4 sm:$0xff]   ;;  %v2849_v34 = vld [vmem:[%s4239_s1 + $0x1e0] ss:$16 sps:$4 sm:$0xff]  }
  0x12   :  { %v2847_v33 = vld [vmem:[%s4239_s1 + $0x3e4] ss:$16 sps:$4 sm:$0xff]   ;;  %v2850_v35 = vld [vmem:[%s4239_s1 + $0x3e0] ss:$16 sps:$4 sm:$0xff]  }
  0x13   :  { %1654 = vmatpush1.bf16.msra.mxu0 %v2825_v18  ;;  %v2851_v39 = vld [vmem:[%s4239_s1 + $0x1c4] ss:$16 sps:$4 sm:$0xff]   ;;  %v2855_v41 = vld [vmem:[%s4239_s1 + $0x1c0] ss:$16 sps:$4 sm:$0xff]  }
  0x14   :  { %1695 = vmatpush1.bf16.msra.mxu1 %v2826_v19  ;;  %1655 = vmatprep.subr.bf16.mxu0 %v2827_v20  ;;  %v2853_v40 = vld [vmem:[%s4239_s1 + $0x3c4] ss:$16 sps:$4 sm:$0xff]   ;;  %v2856_v44 = vld [vmem:[%s4239_s1 + $0x3c0] ss:$16 sps:$4 sm:$0xff]  }
  0x15   :  { %1696 = vmatprep.subr.bf16.mxu1 %v2829_v21  ;;  %v2857_v45 = vld [vmem:[%s4239_s1 + $0x1a4] ss:$16 sps:$4 sm:$0xff]   ;;  %v2861_v47 = vld [vmem:[%s4239_s1 + $0x1a0] ss:$16 sps:$4 sm:$0xff]  }
  0x16   :  { %v2859_v46 = vld [vmem:[%s4239_s1 + $0x3a4] ss:$16 sps:$4 sm:$0xff]   ;;  %v2862_v48 = vld [vmem:[%s4239_s1 + $0x3a0] ss:$16 sps:$4 sm:$0xff]  }
  0x17   :  { %1656 = vmatpush1.bf16.msra.mxu0 %v2831_v22  ;;  %v2863_v50 = vld [vmem:[%s4239_s1 + $0x184] ss:$16 sps:$4 sm:$0xff]   ;;  %v2867_v53 = vld [vmem:[%s4239_s1 + $0x180] ss:$16 sps:$4 sm:$0xff]  }
  0x18   :  { %1697 = vmatpush1.bf16.msra.mxu1 %v2832_v23  ;;  %1657 = vmatprep.subr.bf16.mxu0 %v2833_v24  ;;  %v2865_v51 = vld [vmem:[%s4239_s1 + $0x384] ss:$16 sps:$4 sm:$0xff]   ;;  %v2868_v56 = vld [vmem:[%s4239_s1 + $0x380] ss:$16 sps:$4 sm:$0xff]  }
  0x19   :  { %1698 = vmatprep.subr.bf16.mxu1 %v2835_v25  ;;  %v28_v52 = vld [vmem:[%s4238_s0] sm:$0xff] }
  0x1a   :  { %v315_v54 = vrot.slane %v28_v52, %v314_v49  ;;  %v308_v55 = vcombine.high %v28_v52, %v28_v52  ;;  %v2869_v57 = vld [vmem:[%s4239_s1 + $0x164] ss:$16 sps:$4 sm:$0xff]   ;;  %v2873_v61 = vld [vmem:[%s4239_s1 + $0x160] ss:$16 sps:$4 sm:$0xff]  }
  0x1b   :  { %1658 = vmatpush1.bf16.msra.mxu0 %v2837_v26  ;;  %v2871_v58 = vld [vmem:[%s4239_s1 + $0x364] ss:$16 sps:$4 sm:$0xff]   ;;  %v2874_v0 = vld [vmem:[%s4239_s1 + $0x360] ss:$16 sps:$4 sm:$0xff]  }
  0x1c   :  { %1699 = vmatpush1.bf16.msra.mxu1 %v2838_v27  ;;  %1659 = vmatprep.subr.bf16.mxu0 %v2839_v28  ;;  %v323_v59 = vcombine.high %v315_v54, %v315_v54  ;;  %v322_v60 = vrot.slane %v308_v55, %v314_v49  ;;  %v2875_v1 = vld [vmem:[%s4239_s1 + $0x144] ss:$16 sps:$4 sm:$0xff]   ;;  %v2879_v4 = vld [vmem:[%s4239_s1 + $0x140] ss:$16 sps:$4 sm:$0xff]   ;;  %v3493_v14 = vrot.slane %v315_v54, %v314_v49 }
  0x1d   :  { %1700 = vmatprep.subr.bf16.mxu1 %v2841_v29  ;;  %v2877_v2 = vld [vmem:[%s4239_s1 + $0x344] ss:$16 sps:$4 sm:$0xff]   ;;  %v2880_v5 = vld [vmem:[%s4239_s1 + $0x340] ss:$16 sps:$4 sm:$0xff]  }
  0x1e   :  { %v3447_v62 = vrot.slane %v323_v59, %v314_v49  ;;  %v3449_v63 = vrot.slane %v322_v60, %v314_v49  ;;  %v2881_v6 = vld [vmem:[%s4239_s1 + $0x124] ss:$16 sps:$4 sm:$0xff]   ;;  %v2885_v8 = vld [vmem:[%s4239_s1 + $0x120] ss:$16 sps:$4 sm:$0xff]   ;;  %v324_v12 = vcombine.high %v322_v60, %v322_v60  ;;  %v3508_v19 = vcombine.high %v3493_v14, %v3493_v14 }
  0x1f   :  { %1660 = vmatpush1.bf16.msra.mxu0 %v2843_v30  ;;  %v2883_v7 = vld [vmem:[%s4239_s1 + $0x324] ss:$16 sps:$4 sm:$0xff]   ;;  %v2886_v9 = vld [vmem:[%s4239_s1 + $0x320] ss:$16 sps:$4 sm:$0xff]  }
  0x20   :  { %1701 = vmatpush1.bf16.msra.mxu1 %v2844_v31  ;;  %1661 = vmatprep.subr.bf16.mxu0 %v2845_v32  ;;  %v3462_v3 = vcombine.high %v3447_v62, %v3447_v62  ;;  %v2887_v10 = vld [vmem:[%s4239_s1 + $0x104] ss:$16 sps:$4 sm:$0xff]   ;;  %v2891_v13 = vld [vmem:[%s4239_s1 + $0x100] ss:$16 sps:$4 sm:$0xff]   ;;  %v3504_v18 = vrot.slane %v324_v12, %v314_v49 }
  0x21   :  { %1702 = vmatprep.subr.bf16.mxu1 %v2847_v33  ;;  %1677 = vmatprep.mubr.bf16.mxu0 %v3447_v62  ;;  %v2889_v11 = vld [vmem:[%s4239_s1 + $0x304] ss:$16 sps:$4 sm:$0xff]   ;;  %v2892_v15 = vld [vmem:[%s4239_s1 + $0x300] ss:$16 sps:$4 sm:$0xff]  }
  0x22   :  { %1718 = vmatprep.mubr.bf16.mxu1 %v3462_v3  ;;  %v2895_v16 = vld [vmem:[%s4239_s1 + $0x4e4] ss:$16 sps:$4 sm:$0xff]   ;;  %v2893_v20 = vld [vmem:[%s4239_s1 + $0x4e0] ss:$16 sps:$4 sm:$0xff]   ;;  %v3524_v24 = vcombine.high %v3504_v18, %v3504_v18 }
  0x23   :  { %1662 = vmatpush2.bf16.msra.mxu0 %v2849_v34  ;;  %v2898_v17 = vld [vmem:[%s4239_s1 + $0x6e4] ss:$16 sps:$4 sm:$0xff]   ;;  %v2896_v21 = vld [vmem:[%s4239_s1 + $0x6e0] ss:$16 sps:$4 sm:$0xff]  }
  0x24   :  { %1703 = vmatpush2.bf16.msra.mxu1 %v2850_v35  ;;  %1663 = vmatprep.subr.bf16.mxu0 %v2851_v39  ;;  %v2901_v22 = vld [vmem:[%s4239_s1 + $0x4c4] ss:$16 sps:$4 sm:$0xff]   ;;  %v2899_v25 = vld [vmem:[%s4239_s1 + $0x4c0] ss:$16 sps:$4 sm:$0xff]  }
  0x25   :  { %1704 = vmatprep.subr.bf16.mxu1 %v2853_v40  ;;  %v2904_v23 = vld [vmem:[%s4239_s1 + $0x6c4] ss:$16 sps:$4 sm:$0xff]   ;;  %v2902_v26 = vld [vmem:[%s4239_s1 + $0x6c0] ss:$16 sps:$4 sm:$0xff]  }
  0x26   :  { %v2907_v27 = vld [vmem:[%s4239_s1 + $0x4a4] ss:$16 sps:$4 sm:$0xff]   ;;  %v2905_v29 = vld [vmem:[%s4239_s1 + $0x4a0] ss:$16 sps:$4 sm:$0xff]  }
  0x27   :  { %1664 = vmatpush2.bf16.msra.mxu0 %v2855_v41  ;;  %v2910_v28 = vld [vmem:[%s4239_s1 + $0x6a4] ss:$16 sps:$4 sm:$0xff]   ;;  %v2908_v30 = vld [vmem:[%s4239_s1 + $0x6a0] ss:$16 sps:$4 sm:$0xff]  }
  0x28   :  { %1705 = vmatpush2.bf16.msra.mxu1 %v2856_v44  ;;  %1665 = vmatprep.subr.bf16.mxu0 %v2857_v45  ;;  %v2913_v31 = vld [vmem:[%s4239_s1 + $0x484] ss:$16 sps:$4 sm:$0xff]   ;;  %v2911_v33 = vld [vmem:[%s4239_s1 + $0x480] ss:$16 sps:$4 sm:$0xff]  }
  0x29   :  { %1706 = vmatprep.subr.bf16.mxu1 %v2859_v46  ;;  %v2916_v32 = vld [vmem:[%s4239_s1 + $0x684] ss:$16 sps:$4 sm:$0xff]   ;;  %v2914_v34 = vld [vmem:[%s4239_s1 + $0x680] ss:$16 sps:$4 sm:$0xff]  }
  0x2a   :  { %v2919_v35 = vld [vmem:[%s4239_s1 + $0x464] ss:$16 sps:$4 sm:$0xff]   ;;  %v2917_v37 = vld [vmem:[%s4239_s1 + $0x460] ss:$16 sps:$4 sm:$0xff]  }
  0x2b   :  { %1666 = vmatpush2.bf16.msra.mxu0 %v2861_v47  ;;  %v2922_v36 = vld [vmem:[%s4239_s1 + $0x664] ss:$16 sps:$4 sm:$0xff]   ;;  %v2920_v38 = vld [vmem:[%s4239_s1 + $0x660] ss:$16 sps:$4 sm:$0xff]  }
  0x2c   :  { %1707 = vmatpush2.bf16.msra.mxu1 %v2862_v48  ;;  %1667 = vmatprep.subr.bf16.mxu0 %v2863_v50  ;;  %v2925_v39 = vld [vmem:[%s4239_s1 + $0x444] ss:$16 sps:$4 sm:$0xff]   ;;  %v2923_v41 = vld [vmem:[%s4239_s1 + $0x440] ss:$16 sps:$4 sm:$0xff]  }
  0x2d   :  { %1708 = vmatprep.subr.bf16.mxu1 %v2865_v51  ;;  %v2928_v40 = vld [vmem:[%s4239_s1 + $0x644] ss:$16 sps:$4 sm:$0xff]   ;;  %v2926_v43 = vld [vmem:[%s4239_s1 + $0x640] ss:$16 sps:$4 sm:$0xff]  }
  0x2e   :  { %v2931_v44 = vld [vmem:[%s4239_s1 + $0x424] ss:$16 sps:$4 sm:$0xff]   ;;  %v2929_v46 = vld [vmem:[%s4239_s1 + $0x420] ss:$16 sps:$4 sm:$0xff]  }
  0x2f   :  { %1668 = vmatpush2.bf16.msra.mxu0 %v2867_v53  ;;  %v2934_v45 = vld [vmem:[%s4239_s1 + $0x624] ss:$16 sps:$4 sm:$0xff]   ;;  %v2932_v47 = vld [vmem:[%s4239_s1 + $0x620] ss:$16 sps:$4 sm:$0xff]  }
  0x30   :  { %1709 = vmatpush2.bf16.msra.mxu1 %v2868_v56  ;;  %1669 = vmatprep.subr.bf16.mxu0 %v2869_v57  ;;  %v2937_v48 = vld [vmem:[%s4239_s1 + $0x404] ss:$16 sps:$4 sm:$0xff]   ;;  %v2935_v50 = vld [vmem:[%s4239_s1 + $0x400] ss:$16 sps:$4 sm:$0xff]  }
  0x31   :  { %1710 = vmatprep.subr.bf16.mxu1 %v2871_v58  ;;  %v2940_v49 = vld [vmem:[%s4239_s1 + $0x604] ss:$16 sps:$4 sm:$0xff]   ;;  %v2938_v51 = vld [vmem:[%s4239_s1 + $0x600] ss:$16 sps:$4 sm:$0xff]  }
  0x32   :  { %v2943_v52 = vld [vmem:[%s4239_s1 + $0x5e4] ss:$16 sps:$4 sm:$0xff]   ;;  %v2941_v54 = vld [vmem:[%s4239_s1 + $0x5e0] ss:$16 sps:$4 sm:$0xff]  }
  0x33   :  { %1670 = vmatpush2.bf16.msra.mxu0 %v2873_v61  ;;  %v2946_v53 = vld [vmem:[%s4239_s1 + $0x7e4] ss:$16 sps:$4 sm:$0xff]   ;;  %v2944_v55 = vld [vmem:[%s4239_s1 + $0x7e0] ss:$16 sps:$4 sm:$0xff]  }
  0x34   :  { %1711 = vmatpush2.bf16.msra.mxu1 %v2874_v0  ;;  %1671 = vmatprep.subr.bf16.mxu0 %v2875_v1  ;;  %v2949_v56 = vld [vmem:[%s4239_s1 + $0x5c4] ss:$16 sps:$4 sm:$0xff]   ;;  %v2947_v58 = vld [vmem:[%s4239_s1 + $0x5c0] ss:$16 sps:$4 sm:$0xff]  }
  0x35   :  { %1712 = vmatprep.subr.bf16.mxu1 %v2877_v2  ;;  %v2952_v57 = vld [vmem:[%s4239_s1 + $0x7c4] ss:$16 sps:$4 sm:$0xff]   ;;  %v2950_v59 = vld [vmem:[%s4239_s1 + $0x7c0] ss:$16 sps:$4 sm:$0xff]  }
  0x36   :  { %v2955_v60 = vld [vmem:[%s4239_s1 + $0x5a4] ss:$16 sps:$4 sm:$0xff]   ;;  %v2953_v0 = vld [vmem:[%s4239_s1 + $0x5a0] ss:$16 sps:$4 sm:$0xff]  }
  0x37   :  { %1672 = vmatpush2.bf16.msra.mxu0 %v2879_v4  ;;  %v2958_v61 = vld [vmem:[%s4239_s1 + $0x7a4] ss:$16 sps:$4 sm:$0xff]   ;;  %v2956_v1 = vld [vmem:[%s4239_s1 + $0x7a0] ss:$16 sps:$4 sm:$0xff]  }
  0x38   :  { %1713 = vmatpush2.bf16.msra.mxu1 %v2880_v5  ;;  %1673 = vmatprep.subr.bf16.mxu0 %v2881_v6  ;;  %v2961_v2 = vld [vmem:[%s4239_s1 + $0x584] ss:$16 sps:$4 sm:$0xff]   ;;  %v2959_v5 = vld [vmem:[%s4239_s1 + $0x580] ss:$16 sps:$4 sm:$0xff]  }
  0x39   :  { %1714 = vmatprep.subr.bf16.mxu1 %v2883_v7  ;;  %v2964_v4 = vld [vmem:[%s4239_s1 + $0x784] ss:$16 sps:$4 sm:$0xff]   ;;  %v2962_v6 = vld [vmem:[%s4239_s1 + $0x780] ss:$16 sps:$4 sm:$0xff]  }
  0x3a   :  { %v2967_v7 = vld [vmem:[%s4239_s1 + $0x564] ss:$16 sps:$4 sm:$0xff]  }
  0x3b   :  { %1674 = vmatpush2.bf16.msra.mxu0 %v2885_v8  ;;  %v2970_v8 = vld [vmem:[%s4239_s1 + $0x764] ss:$16 sps:$4 sm:$0xff]  }
  0x3c   :  { %1715 = vmatpush2.bf16.msra.mxu1 %v2886_v9  ;;  %1675 = vmatprep.subr.bf16.mxu0 %v2887_v10  ;;  %v2965_v9 = vld [vmem:[%s4239_s1 + $0x560] ss:$16 sps:$4 sm:$0xff]   ;;  %v2976_v12 = vld [vmem:[%s4239_s1 + $0x744] ss:$16 sps:$4 sm:$0xff]  }
  0x3d   :  { %1716 = vmatprep.subr.bf16.mxu1 %v2889_v11  ;;  %v2968_v10 = vld [vmem:[%s4239_s1 + $0x760] ss:$16 sps:$4 sm:$0xff]   ;;  %v2973_v11 = vld [vmem:[%s4239_s1 + $0x544] ss:$16 sps:$4 sm:$0xff]  }
  0x3f   :  { %1676 = vmatpush2.bf16.msra.mxu0 %v2891_v13  ;;  %v2971_v13 = vld [vmem:[%s4239_s1 + $0x540] ss:$16 sps:$4 sm:$0xff]  }
  0x40   :  { %1717 = vmatpush2.bf16.msra.mxu1 %v2892_v15  ;;  %1727 = vmatprep.subr.bf16.mxu0 %v2895_v16  ;;  %v2974_v15 = vld [vmem:[%s4239_s1 + $0x740] ss:$16 sps:$4 sm:$0xff]   ;;  %v2979_v16 = vld [vmem:[%s4239_s1 + $0x524] ss:$16 sps:$4 sm:$0xff]  }
  0x41   :  { %1768 = vmatprep.subr.bf16.mxu1 %v2898_v17  ;;  %v2982_v17 = vld [vmem:[%s4239_s1 + $0x724] ss:$16 sps:$4 sm:$0xff]  }
  0x42   :  { %1678 = vmatmul.mubr.bf16.vlgmr.msra.gmra.mxu0 %v3493_v14 }
  0x43   :  { %1719 = vmatmul.mubr.bf16.vlgmr.msra.gmra.mxu1 %v3508_v19  ;;  %1728 = vmatpush1.bf16.msra.mxu0 %v2893_v20  ;;  %v2977_v20 = vld [vmem:[%s4239_s1 + $0x520] ss:$16 sps:$4 sm:$0xff]  }
  0x44   :  { %1769 = vmatpush1.bf16.msra.mxu1 %v2896_v21  ;;  %1729 = vmatprep.subr.bf16.mxu0 %v2901_v22  ;;  %v2980_v21 = vld [vmem:[%s4239_s1 + $0x720] ss:$16 sps:$4 sm:$0xff]   ;;  %v2985_v22 = vld [vmem:[%s4239_s1 + $0x504] ss:$16 sps:$4 sm:$0xff]  }
  0x45   :  { %1770 = vmatprep.subr.bf16.mxu1 %v2904_v23  ;;  %1759 = vmatprep.mubr.bf16.mxu0 %v3504_v18  ;;  %v2988_v23 = vld [vmem:[%s4239_s1 + $0x704] ss:$16 sps:$4 sm:$0xff]  }
  0x46   :  { %1800 = vmatprep.mubr.bf16.mxu1 %v3524_v24 }
  0x47   :  { %1730 = vmatpush1.bf16.msra.mxu0 %v2899_v25  ;;  %v2983_v25 = vld [vmem:[%s4239_s1 + $0x500] ss:$16 sps:$4 sm:$0xff]  }
  0x48   :  { %1771 = vmatpush1.bf16.msra.mxu1 %v2902_v26  ;;  %1731 = vmatprep.subr.bf16.mxu0 %v2907_v27  ;;  %v2986_v26 = vld [vmem:[%s4239_s1 + $0x700] ss:$16 sps:$4 sm:$0xff]   ;;  %v2992_v27 = vld [vmem:[%s4239_s1 + $0xec] ss:$16 sps:$4 sm:$0xff]  }
  0x49   :  { %1772 = vmatprep.subr.bf16.mxu1 %v2910_v28  ;;  %v2995_v28 = vld [vmem:[%s4239_s1 + $0x2ec] ss:$16 sps:$4 sm:$0xff]  }
  0x4b   :  { %1732 = vmatpush1.bf16.msra.mxu0 %v2905_v29  ;;  %v3712_v29 = vcombine.high %v3449_v63, %v3449_v63 }
  0x4c   :  { %1773 = vmatpush1.bf16.msra.mxu1 %v2908_v30  ;;  %1733 = vmatprep.subr.bf16.mxu0 %v2913_v31  ;;  %v2990_v30 = vld [vmem:[%s4239_s1 + $0xe8] ss:$16 sps:$4 sm:$0xff]  }
  0x4d   :  { %1774 = vmatprep.subr.bf16.mxu1 %v2916_v32  ;;  %v2993_v31 = vld [vmem:[%s4239_s1 + $0x2e8] ss:$16 sps:$4 sm:$0xff]   ;;  %v2998_v32 = vld [vmem:[%s4239_s1 + $0xcc] ss:$16 sps:$4 sm:$0xff]  }
  0x4f   :  { %1734 = vmatpush1.bf16.msra.mxu0 %v2911_v33  ;;  %v3001_v33 = vld [vmem:[%s4239_s1 + $0x2cc] ss:$16 sps:$4 sm:$0xff]  }
  0x50   :  { %1775 = vmatpush1.bf16.msra.mxu1 %v2914_v34  ;;  %1735 = vmatprep.subr.bf16.mxu0 %v2919_v35  ;;  %v2996_v34 = vld [vmem:[%s4239_s1 + $0xc8] ss:$16 sps:$4 sm:$0xff]  }
  0x51   :  { %1776 = vmatprep.subr.bf16.mxu1 %v2922_v36  ;;  %v2999_v35 = vld [vmem:[%s4239_s1 + $0x2c8] ss:$16 sps:$4 sm:$0xff]   ;;  %v3004_v36 = vld [vmem:[%s4239_s1 + $0xac] ss:$16 sps:$4 sm:$0xff]  }
  0x53   :  { %1736 = vmatpush1.bf16.msra.mxu0 %v2917_v37  ;;  %v3007_v37 = vld [vmem:[%s4239_s1 + $0x2ac] ss:$16 sps:$4 sm:$0xff]  }
  0x54   :  { %1777 = vmatpush1.bf16.msra.mxu1 %v2920_v38  ;;  %1737 = vmatprep.subr.bf16.mxu0 %v2925_v39  ;;  %v3002_v38 = vld [vmem:[%s4239_s1 + $0xa8] ss:$16 sps:$4 sm:$0xff]  }
  0x55   :  { %1778 = vmatprep.subr.bf16.mxu1 %v2928_v40  ;;  %v3005_v39 = vld [vmem:[%s4239_s1 + $0x2a8] ss:$16 sps:$4 sm:$0xff]   ;;  %v3010_v40 = vld [vmem:[%s4239_s1 + $0x8c] ss:$16 sps:$4 sm:$0xff]  }
  0x57   :  { %1738 = vmatpush1.bf16.msra.mxu0 %v2923_v41  ;;  %v3011_v41 = vld [vmem:[%s4239_s1 + $0x288] ss:$16 sps:$4 sm:$0xff]  }
  0x58   :  { %1779 = vmatpush1.bf16.msra.mxu1 %v2926_v43  ;;  %1739 = vmatprep.subr.bf16.mxu0 %v2931_v44  ;;  %v3016_v43 = vld [vmem:[%s4239_s1 + $0x6c] ss:$16 sps:$4 sm:$0xff]  }
  0x59   :  { %1780 = vmatprep.subr.bf16.mxu1 %v2934_v45  ;;  %v3019_v44 = vld [vmem:[%s4239_s1 + $0x26c] ss:$16 sps:$4 sm:$0xff]   ;;  %v3014_v45 = vld [vmem:[%s4239_s1 + $0x68] ss:$16 sps:$4 sm:$0xff]  }
  0x5b   :  { %1740 = vmatpush1.bf16.msra.mxu0 %v2929_v46  ;;  %v3017_v46 = vld [vmem:[%s4239_s1 + $0x268] ss:$16 sps:$4 sm:$0xff]  }
  0x5c   :  { %1781 = vmatpush1.bf16.msra.mxu1 %v2932_v47  ;;  %1741 = vmatprep.subr.bf16.mxu0 %v2937_v48  ;;  %v3022_v47 = vld [vmem:[%s4239_s1 + $0x4c] ss:$16 sps:$4 sm:$0xff]  }
  0x5d   :  { %1782 = vmatprep.subr.bf16.mxu1 %v2940_v49  ;;  %v3025_v48 = vld [vmem:[%s4239_s1 + $0x24c] ss:$16 sps:$4 sm:$0xff]   ;;  %v3020_v49 = vld [vmem:[%s4239_s1 + $0x48] ss:$16 sps:$4 sm:$0xff]  }
  0x5f   :  { %1742 = vmatpush1.bf16.msra.mxu0 %v2935_v50  ;;  %v3023_v50 = vld [vmem:[%s4239_s1 + $0x248] ss:$16 sps:$4 sm:$0xff]  }
  0x60   :  { %1783 = vmatpush1.bf16.msra.mxu1 %v2938_v51  ;;  %1743 = vmatprep.subr.bf16.mxu0 %v2943_v52  ;;  %v3028_v51 = vld [vmem:[%s4239_s1 + $0x2c] ss:$16 sps:$4 sm:$0xff]  }
  0x61   :  { %1784 = vmatprep.subr.bf16.mxu1 %v2946_v53  ;;  %v3031_v52 = vld [vmem:[%s4239_s1 + $0x22c] ss:$16 sps:$4 sm:$0xff]   ;;  %v3026_v53 = vld [vmem:[%s4239_s1 + $0x28] ss:$16 sps:$4 sm:$0xff]  }
  0x63   :  { %1744 = vmatpush2.bf16.msra.mxu0 %v2941_v54  ;;  %v3029_v54 = vld [vmem:[%s4239_s1 + $0x228] ss:$16 sps:$4 sm:$0xff]  }
  0x64   :  { %1785 = vmatpush2.bf16.msra.mxu1 %v2944_v55  ;;  %1745 = vmatprep.subr.bf16.mxu0 %v2949_v56  ;;  %v3034_v55 = vld [vmem:[%s4239_s1 + $0xc] ss:$16 sps:$4 sm:$0xff]  }
  0x65   :  { %1786 = vmatprep.subr.bf16.mxu1 %v2952_v57  ;;  %v3037_v56 = vld [vmem:[%s4239_s1 + $0x20c] ss:$16 sps:$4 sm:$0xff]   ;;  %v3032_v57 = vld [vmem:[%s4239_s1 + $0x8] ss:$16 sps:$4 sm:$0xff]  }
  0x67   :  { %1746 = vmatpush2.bf16.msra.mxu0 %v2947_v58  ;;  %v3035_v58 = vld [vmem:[%s4239_s1 + $0x208] ss:$16 sps:$4 sm:$0xff]  }
  0x68   :  { %1787 = vmatpush2.bf16.msra.mxu1 %v2950_v59  ;;  %1747 = vmatprep.subr.bf16.mxu0 %v2955_v60  ;;  %v3040_v59 = vld [vmem:[%s4239_s1 + $0x1ec] ss:$16 sps:$4 sm:$0xff]  }
  0x69   :  { %1788 = vmatprep.subr.bf16.mxu1 %v2958_v61  ;;  %v3043_v60 = vld [vmem:[%s4239_s1 + $0x3ec] ss:$16 sps:$4 sm:$0xff]   ;;  %v3038_v61 = vld [vmem:[%s4239_s1 + $0x1e8] ss:$16 sps:$4 sm:$0xff]  }
  0x6b   :  { %1748 = vmatpush2.bf16.msra.mxu0 %v2953_v0  ;;  %v3041_v0 = vld [vmem:[%s4239_s1 + $0x3e8] ss:$16 sps:$4 sm:$0xff]  }
  0x6c   :  { %1789 = vmatpush2.bf16.msra.mxu1 %v2956_v1  ;;  %1749 = vmatprep.subr.bf16.mxu0 %v2961_v2  ;;  %v3046_v1 = vld [vmem:[%s4239_s1 + $0x1cc] ss:$16 sps:$4 sm:$0xff]  }
  0x6d   :  { %1790 = vmatprep.subr.bf16.mxu1 %v2964_v4  ;;  %v3049_v2 = vld [vmem:[%s4239_s1 + $0x3cc] ss:$16 sps:$4 sm:$0xff]   ;;  %v3044_v4 = vld [vmem:[%s4239_s1 + $0x1c8] ss:$16 sps:$4 sm:$0xff]  }
  0x6f   :  { %1750 = vmatpush2.bf16.msra.mxu0 %v2959_v5  ;;  %v3047_v5 = vld [vmem:[%s4239_s1 + $0x3c8] ss:$16 sps:$4 sm:$0xff]  }
  0x70   :  { %1791 = vmatpush2.bf16.msra.mxu1 %v2962_v6  ;;  %1751 = vmatprep.subr.bf16.mxu0 %v2967_v7  ;;  %v3052_v6 = vld [vmem:[%s4239_s1 + $0x1ac] ss:$16 sps:$4 sm:$0xff]  }
  0x71   :  { %1792 = vmatprep.subr.bf16.mxu1 %v2970_v8  ;;  %v3055_v7 = vld [vmem:[%s4239_s1 + $0x3ac] ss:$16 sps:$4 sm:$0xff]   ;;  %v3050_v8 = vld [vmem:[%s4239_s1 + $0x1a8] ss:$16 sps:$4 sm:$0xff]  }
  0x73   :  { %1752 = vmatpush2.bf16.msra.mxu0 %v2965_v9  ;;  %v3053_v9 = vld [vmem:[%s4239_s1 + $0x3a8] ss:$16 sps:$4 sm:$0xff]  }
  0x74   :  { %1793 = vmatpush2.bf16.msra.mxu1 %v2968_v10  ;;  %1753 = vmatprep.subr.bf16.mxu0 %v2973_v11  ;;  %v3058_v10 = vld [vmem:[%s4239_s1 + $0x18c] ss:$16 sps:$4 sm:$0xff]  }
  0x75   :  { %1794 = vmatprep.subr.bf16.mxu1 %v2976_v12  ;;  %v3061_v11 = vld [vmem:[%s4239_s1 + $0x38c] ss:$16 sps:$4 sm:$0xff]   ;;  %v3056_v12 = vld [vmem:[%s4239_s1 + $0x188] ss:$16 sps:$4 sm:$0xff]  }
  0x77   :  { %1754 = vmatpush2.bf16.msra.mxu0 %v2971_v13  ;;  %v3059_v13 = vld [vmem:[%s4239_s1 + $0x388] ss:$16 sps:$4 sm:$0xff]  }
  0x78   :  { %1795 = vmatpush2.bf16.msra.mxu1 %v2974_v15  ;;  %1755 = vmatprep.subr.bf16.mxu0 %v2979_v16  ;;  %v3064_v15 = vld [vmem:[%s4239_s1 + $0x16c] ss:$16 sps:$4 sm:$0xff]  }
  0x79   :  { %1796 = vmatprep.subr.bf16.mxu1 %v2982_v17  ;;  %v3067_v16 = vld [vmem:[%s4239_s1 + $0x36c] ss:$16 sps:$4 sm:$0xff]   ;;  %v3062_v17 = vld [vmem:[%s4239_s1 + $0x168] ss:$16 sps:$4 sm:$0xff]  }
  0x7b   :  { %1756 = vmatpush2.bf16.msra.mxu0 %v2977_v20  ;;  %v3065_v20 = vld [vmem:[%s4239_s1 + $0x368] ss:$16 sps:$4 sm:$0xff]  }
  0x7c   :  { %1797 = vmatpush2.bf16.msra.mxu1 %v2980_v21  ;;  %1757 = vmatprep.subr.bf16.mxu0 %v2985_v22  ;;  %v3070_v21 = vld [vmem:[%s4239_s1 + $0x14c] ss:$16 sps:$4 sm:$0xff]  }
  0x7d   :  { %1798 = vmatprep.subr.bf16.mxu1 %v2988_v23  ;;  %v3073_v22 = vld [vmem:[%s4239_s1 + $0x34c] ss:$16 sps:$4 sm:$0xff]   ;;  %v3068_v23 = vld [vmem:[%s4239_s1 + $0x148] ss:$16 sps:$4 sm:$0xff]  }
  0x7f   :  { %1758 = vmatpush2.bf16.msra.mxu0 %v2983_v25  ;;  %v3071_v25 = vld [vmem:[%s4239_s1 + $0x348] ss:$16 sps:$4 sm:$0xff]  }
  0x80   :  { %1799 = vmatpush2.bf16.msra.mxu1 %v2986_v26  ;;  %1809 = vmatprep.subr.bf16.mxu0 %v2992_v27  ;;  %v3076_v26 = vld [vmem:[%s4239_s1 + $0x12c] ss:$16 sps:$4 sm:$0xff]  }
  0x81   :  { %1850 = vmatprep.subr.bf16.mxu1 %v2995_v28  ;;  %v3079_v27 = vld [vmem:[%s4239_s1 + $0x32c] ss:$16 sps:$4 sm:$0xff]   ;;  %v3074_v28 = vld [vmem:[%s4239_s1 + $0x128] ss:$16 sps:$4 sm:$0xff]  }
  0x82   :  { %1760 = vmatmul.mubr.bf16.vlgmr.msra.gmra.mxu0 %v3449_v63 }
  0x83   :  { %1801 = vmatmul.mubr.bf16.vlgmr.msra.gmra.mxu1 %v3712_v29  ;;  %1810 = vmatpush1.bf16.msra.mxu0 %v2990_v30  ;;  %v3077_v30 = vld [vmem:[%s4239_s1 + $0x328] ss:$16 sps:$4 sm:$0xff]  }
  0x84   :  { %1851 = vmatpush1.bf16.msra.mxu1 %v2993_v31  ;;  %1811 = vmatprep.subr.bf16.mxu0 %v2998_v32  ;;  %v3082_v31 = vld [vmem:[%s4239_s1 + $0x10c] ss:$16 sps:$4 sm:$0xff]  }
  0x85   :  { %1852 = vmatprep.subr.bf16.mxu1 %v3001_v33  ;;  %1841 = vmatprep.mubr.bf16.mxu0 %v3447_v62  ;;  %v3013_v62 = vld [vmem:[%s4239_s1 + $0x28c] ss:$16 sps:$4 sm:$0xff]   ;;  %v3080_v33 = vld [vmem:[%s4239_s1 + $0x108] ss:$16 sps:$4 sm:$0xff]  }
  0x86   :  { %1882 = vmatprep.mubr.bf16.mxu1 %v3462_v3  ;;  %v3008_v3 = vld [vmem:[%s4239_s1 + $0x88] ss:$16 sps:$4 sm:$0xff]   ;;  %v3085_v32 = vld [vmem:[%s4239_s1 + $0x30c] ss:$16 sps:$4 sm:$0xff]  }
  0x87   :  { %1812 = vmatpush1.bf16.msra.mxu0 %v2996_v34  ;;  %v3083_v34 = vld [vmem:[%s4239_s1 + $0x308] ss:$16 sps:$4 sm:$0xff]  }
  0x88   :  { %1853 = vmatpush1.bf16.msra.mxu1 %v2999_v35  ;;  %1813 = vmatprep.subr.bf16.mxu0 %v3004_v36  ;;  %v3088_v35 = vld [vmem:[%s4239_s1 + $0x4ec] ss:$16 sps:$4 sm:$0xff]  }
  0x89   :  { %1854 = vmatprep.subr.bf16.mxu1 %v3007_v37  ;;  %v3091_v36 = vld [vmem:[%s4239_s1 + $0x6ec] ss:$16 sps:$4 sm:$0xff]   ;;  %v3086_v37 = vld [vmem:[%s4239_s1 + $0x4e8] ss:$16 sps:$4 sm:$0xff]  }
  0x8b   :  { %1814 = vmatpush1.bf16.msra.mxu0 %v3002_v38  ;;  %v3089_v38 = vld [vmem:[%s4239_s1 + $0x6e8] ss:$16 sps:$4 sm:$0xff]  }
  0x8c   :  { %1855 = vmatpush1.bf16.msra.mxu1 %v3005_v39  ;;  %1815 = vmatprep.subr.bf16.mxu0 %v3010_v40  ;;  %v3094_v39 = vld [vmem:[%s4239_s1 + $0x4cc] ss:$16 sps:$4 sm:$0xff]  }
  0x8d   :  { %1856 = vmatprep.subr.bf16.mxu1 %v3013_v62  ;;  %v3097_v40 = vld [vmem:[%s4239_s1 + $0x6cc] ss:$16 sps:$4 sm:$0xff]   ;;  %v3092_v62 = vld [vmem:[%s4239_s1 + $0x4c8] ss:$16 sps:$4 sm:$0xff]  }
  0x8f   :  { %1816 = vmatpush1.bf16.msra.mxu0 %v3008_v3  ;;  %v3095_v3 = vld [vmem:[%s4239_s1 + $0x6c8] ss:$16 sps:$4 sm:$0xff]  }
  0x90   :  { %1857 = vmatpush1.bf16.msra.mxu1 %v3011_v41  ;;  %1817 = vmatprep.subr.bf16.mxu0 %v3016_v43  ;;  %v3100_v41 = vld [vmem:[%s4239_s1 + $0x4ac] ss:$16 sps:$4 sm:$0xff]  }
  0x91   :  { %1858 = vmatprep.subr.bf16.mxu1 %v3019_v44  ;;  %v3103_v43 = vld [vmem:[%s4239_s1 + $0x6ac] ss:$16 sps:$4 sm:$0xff]  }
  0x93   :  { %1818 = vmatpush1.bf16.msra.mxu0 %v3014_v45 }
  0x94   :  { %1859 = vmatpush1.bf16.msra.mxu1 %v3017_v46  ;;  %1819 = vmatprep.subr.bf16.mxu0 %v3022_v47 }
  0x95   :  { %1860 = vmatprep.subr.bf16.mxu1 %v3025_v48 }
  0x97   :  { %1820 = vmatpush1.bf16.msra.mxu0 %v3020_v49 }
  0x98   :  { %1861 = vmatpush1.bf16.msra.mxu1 %v3023_v50  ;;  %1821 = vmatprep.subr.bf16.mxu0 %v3028_v51 }
  0x99   :  { %1862 = vmatprep.subr.bf16.mxu1 %v3031_v52 }
  0x9b   :  { %1822 = vmatpush1.bf16.msra.mxu0 %v3026_v53 }
  0x9c   :  { %1863 = vmatpush1.bf16.msra.mxu1 %v3029_v54  ;;  %1823 = vmatprep.subr.bf16.mxu0 %v3034_v55 }
  0x9d   :  { %1864 = vmatprep.subr.bf16.mxu1 %v3037_v56 }
  0x9f   :  { %1824 = vmatpush1.bf16.msra.mxu0 %v3032_v57 }
  0xa0   :  { %1865 = vmatpush1.bf16.msra.mxu1 %v3035_v58  ;;  %1825 = vmatprep.subr.bf16.mxu0 %v3040_v59 }
  0xa1   :  { %1866 = vmatprep.subr.bf16.mxu1 %v3043_v60 }
  0xa3   :  { %1826 = vmatpush2.bf16.msra.mxu0 %v3038_v61 }
  0xa4   :  { %1867 = vmatpush2.bf16.msra.mxu1 %v3041_v0  ;;  %1827 = vmatprep.subr.bf16.mxu0 %v3046_v1 }
  0xa5   :  { %1868 = vmatprep.subr.bf16.mxu1 %v3049_v2 }
  0xa7   :  { %1828 = vmatpush2.bf16.msra.mxu0 %v3044_v4 }
  0xa8   :  { %1869 = vmatpush2.bf16.msra.mxu1 %v3047_v5  ;;  %1829 = vmatprep.subr.bf16.mxu0 %v3052_v6 }
  0xa9   :  { %1870 = vmatprep.subr.bf16.mxu1 %v3055_v7 }
  0xab   :  { %1830 = vmatpush2.bf16.msra.mxu0 %v3050_v8 }
  0xac   :  { %1871 = vmatpush2.bf16.msra.mxu1 %v3053_v9  ;;  %1831 = vmatprep.subr.bf16.mxu0 %v3058_v10 }
  0xad   :  { %1872 = vmatprep.subr.bf16.mxu1 %v3061_v11 }
  0xaf   :  { %1832 = vmatpush2.bf16.msra.mxu0 %v3056_v12 }
  0xb0   :  { %1873 = vmatpush2.bf16.msra.mxu1 %v3059_v13  ;;  %1833 = vmatprep.subr.bf16.mxu0 %v3064_v15 }
  0xb1   :  { %1874 = vmatprep.subr.bf16.mxu1 %v3067_v16 }
  0xb3   :  { %1834 = vmatpush2.bf16.msra.mxu0 %v3062_v17 }
  0xb4   :  { %1875 = vmatpush2.bf16.msra.mxu1 %v3065_v20  ;;  %1835 = vmatprep.subr.bf16.mxu0 %v3070_v21 }
  0xb5   :  { %1876 = vmatprep.subr.bf16.mxu1 %v3073_v22 }
  0xb7   :  { %1836 = vmatpush2.bf16.msra.mxu0 %v3068_v23 }
  0xb8   :  { %1877 = vmatpush2.bf16.msra.mxu1 %v3071_v25  ;;  %1837 = vmatprep.subr.bf16.mxu0 %v3076_v26 }
  0xb9   :  { %1878 = vmatprep.subr.bf16.mxu1 %v3079_v27 }
  0xbb   :  { %1838 = vmatpush2.bf16.msra.mxu0 %v3074_v28 }
  0xbc   :  { %1879 = vmatpush2.bf16.msra.mxu1 %v3077_v30  ;;  %1839 = vmatprep.subr.bf16.mxu0 %v3082_v31 }
  0xbd   :  { %1880 = vmatprep.subr.bf16.mxu1 %v3085_v32 }
  0xbf   :  { %1840 = vmatpush2.bf16.msra.mxu0 %v3080_v33 }
  0xc0   :  { %1881 = vmatpush2.bf16.msra.mxu1 %v3083_v34  ;;  %1891 = vmatprep.subr.bf16.mxu0 %v3088_v35 }
  0xc1   :  { %1932 = vmatprep.subr.bf16.mxu1 %v3091_v36 }
  0xc2   :  { %1842 = vmatmul.mubr.bf16.vlgmr.msra.gmra.mxu0 %v3493_v14  ;;  %v3098_v14 = vld [vmem:[%s4239_s1 + $0x4a8] ss:$16 sps:$4 sm:$0xff]  }
  0xc3   :  { %1883 = vmatmul.mubr.bf16.vlgmr.msra.gmra.mxu1 %v3508_v19  ;;  %1892 = vmatpush1.bf16.msra.mxu0 %v3086_v37  ;;  %v3101_v19 = vld [vmem:[%s4239_s1 + $0x6a8] ss:$16 sps:$4 sm:$0xff]  }
  0xc4   :  { %1933 = vmatpush1.bf16.msra.mxu1 %v3089_v38  ;;  %1893 = vmatprep.subr.bf16.mxu0 %v3094_v39 }
  0xc5   :  { %1934 = vmatprep.subr.bf16.mxu1 %v3097_v40  ;;  %1923 = vmatprep.mubr.bf16.mxu0 %v3504_v18 }
  0xc6   :  { %1964 = vmatprep.mubr.bf16.mxu1 %v3524_v24 }
  0xc7   :  { %1894 = vmatpush1.bf16.msra.mxu0 %v3092_v62 }
  0xc8   :  { %1935 = vmatpush1.bf16.msra.mxu1 %v3095_v3 }
  0xc9   :  { %12 = vsyncpa [#allocation3], 0  ;;  %1895 = vmatprep.subr.bf16.mxu0 %v3100_v41  ;;  %1936 = vmatprep.subr.bf16.mxu1 %v3103_v43  ;;  %v3106_v44 = vld [vmem:[%s4239_s1 + $0x48c] ss:$16 sps:$4 sm:$0xff]   ;;  %v3104_v24 = vld [vmem:[%s4239_s1 + $0x488] ss:$16 sps:$4 sm:$0xff]  }
  0xca   :  { %v3109_v18 = vld [vmem:[%s4239_s1 + $0x68c] ss:$16 sps:$4 sm:$0xff]   ;;  %v3107_v45 = vld [vmem:[%s4239_s1 + $0x688] ss:$16 sps:$4 sm:$0xff]   ;;  %v3184_v40 = vld [vmem:[%s4241_s3 + $0x70] sm:$0xff]   ;;  %vm3246_vm0 = vmmov 0  }
  0xcb   :  { %1896 = vmatpush1.bf16.msra.mxu0 %v3098_v14  ;;  %v3112_v46 = vld [vmem:[%s4239_s1 + $0x46c] ss:$16 sps:$4 sm:$0xff]   ;;  %v3110_v48 = vld [vmem:[%s4239_s1 + $0x468] ss:$16 sps:$4 sm:$0xff]   ;;  %v3185_v41 = vld [vmem:[%s4241_s3 + $0x30] sm:$0xff]   ;;  %vm2365_vm1 = vcmask 523264  }
  0xcc   :  { %1937 = vmatpush1.bf16.msra.mxu1 %v3101_v19  ;;  %1897 = vmatprep.subr.bf16.mxu0 %v3106_v44  ;;  %v3115_v47 = vld [vmem:[%s4239_s1 + $0x66c] ss:$16 sps:$4 sm:$0xff]   ;;  %v3113_v49 = vld [vmem:[%s4239_s1 + $0x668] ss:$16 sps:$4 sm:$0xff]   ;;  %vm2409_vm2 = vcmask 74752  }
  0xcd   :  { %1938 = vmatprep.subr.bf16.mxu1 %v3109_v18  ;;  %v3118_v50 = vld [vmem:[%s4239_s1 + $0x44c] ss:$16 sps:$4 sm:$0xff]   ;;  %v3116_v52 = vld [vmem:[%s4239_s1 + $0x448] ss:$16 sps:$4 sm:$0xff]  }
  0xce   :  { %v3121_v51 = vld [vmem:[%s4239_s1 + $0x64c] ss:$16 sps:$4 sm:$0xff]   ;;  %v3119_v53 = vld [vmem:[%s4239_s1 + $0x648] ss:$16 sps:$4 sm:$0xff]  }
  0xcf   :  { %1898 = vmatpush1.bf16.msra.mxu0 %v3104_v24  ;;  %v3124_v54 = vld [vmem:[%s4239_s1 + $0x42c] ss:$16 sps:$4 sm:$0xff]   ;;  %v3122_v56 = vld [vmem:[%s4239_s1 + $0x428] ss:$16 sps:$4 sm:$0xff]  }
  0xd0   :  { %1939 = vmatpush1.bf16.msra.mxu1 %v3107_v45  ;;  %1899 = vmatprep.subr.bf16.mxu0 %v3112_v46  ;;  %v3127_v55 = vld [vmem:[%s4239_s1 + $0x62c] ss:$16 sps:$4 sm:$0xff]   ;;  %v3125_v57 = vld [vmem:[%s4239_s1 + $0x628] ss:$16 sps:$4 sm:$0xff]  }
  0xd1   :  { %1940 = vmatprep.subr.bf16.mxu1 %v3115_v47  ;;  %v3130_v58 = vld [vmem:[%s4239_s1 + $0x40c] ss:$16 sps:$4 sm:$0xff]   ;;  %v3128_v60 = vld [vmem:[%s4239_s1 + $0x408] ss:$16 sps:$4 sm:$0xff]  }
  0xd2   :  { %v3133_v59 = vld [vmem:[%s4239_s1 + $0x60c] ss:$16 sps:$4 sm:$0xff]   ;;  %v3131_v61 = vld [vmem:[%s4239_s1 + $0x608] ss:$16 sps:$4 sm:$0xff]  }
  0xd3   :  { %1900 = vmatpush1.bf16.msra.mxu0 %v3110_v48  ;;  %v3136_v0 = vld [vmem:[%s4239_s1 + $0x5ec] ss:$16 sps:$4 sm:$0xff]   ;;  %v3134_v2 = vld [vmem:[%s4239_s1 + $0x5e8] ss:$16 sps:$4 sm:$0xff]   ;;  %v3200_v48 = vld [vmem:[%s4241_s3 + $0xf0] sm:$0xff]  }
  0xd4   :  { %1941 = vmatpush1.bf16.msra.mxu1 %v3113_v49  ;;  %1901 = vmatprep.subr.bf16.mxu0 %v3118_v50  ;;  %v3139_v1 = vld [vmem:[%s4239_s1 + $0x7ec] ss:$16 sps:$4 sm:$0xff]   ;;  %v3137_v4 = vld [vmem:[%s4239_s1 + $0x7e8] ss:$16 sps:$4 sm:$0xff]   ;;  %v3189_v49 = vld [vmem:[%s4241_s3 + $0x20] sm:$0xff]  }
  0xd5   :  { %1942 = vmatprep.subr.bf16.mxu1 %v3121_v51  ;;  %v3142_v5 = vld [vmem:[%s4239_s1 + $0x5cc] ss:$16 sps:$4 sm:$0xff]   ;;  %v3140_v7 = vld [vmem:[%s4239_s1 + $0x5c8] ss:$16 sps:$4 sm:$0xff]   ;;  %v3201_v50 = vld [vmem:[%s4241_s3 + $0xb0] sm:$0xff]  }
  0xd6   :  { %v3145_v6 = vld [vmem:[%s4239_s1 + $0x7cc] ss:$16 sps:$4 sm:$0xff]   ;;  %v3143_v8 = vld [vmem:[%s4239_s1 + $0x7c8] ss:$16 sps:$4 sm:$0xff]  }
  0xd7   :  { %1902 = vmatpush1.bf16.msra.mxu0 %v3116_v52  ;;  %v3148_v9 = vld [vmem:[%s4239_s1 + $0x5ac] ss:$16 sps:$4 sm:$0xff]   ;;  %v3146_v11 = vld [vmem:[%s4239_s1 + $0x5a8] ss:$16 sps:$4 sm:$0xff]  }
  0xd8   :  { %1943 = vmatpush1.bf16.msra.mxu1 %v3119_v53  ;;  %1903 = vmatprep.subr.bf16.mxu0 %v3124_v54  ;;  %v3151_v10 = vld [vmem:[%s4239_s1 + $0x7ac] ss:$16 sps:$4 sm:$0xff]   ;;  %v3149_v12 = vld [vmem:[%s4239_s1 + $0x7a8] ss:$16 sps:$4 sm:$0xff]  }
  0xd9   :  { %1944 = vmatprep.subr.bf16.mxu1 %v3127_v55  ;;  %v3154_v13 = vld [vmem:[%s4239_s1 + $0x58c] ss:$16 sps:$4 sm:$0xff]   ;;  %v3152_v16 = vld [vmem:[%s4239_s1 + $0x588] ss:$16 sps:$4 sm:$0xff]   ;;  %v3192_v55 = vld [vmem:[%s4241_s3 + $0x50] sm:$0xff]  }
  0xda   :  { %v3157_v15 = vld [vmem:[%s4239_s1 + $0x78c] ss:$16 sps:$4 sm:$0xff]   ;;  %v3155_v17 = vld [vmem:[%s4239_s1 + $0x788] ss:$16 sps:$4 sm:$0xff]  }
  0xdb   :  { %1904 = vmatpush1.bf16.msra.mxu0 %v3122_v56  ;;  %v3160_v20 = vld [vmem:[%s4239_s1 + $0x56c] ss:$16 sps:$4 sm:$0xff]   ;;  %v3158_v22 = vld [vmem:[%s4239_s1 + $0x568] ss:$16 sps:$4 sm:$0xff]   ;;  %v3204_v56 = vld [vmem:[%s4241_s3 + $0xe0] sm:$0xff]  }
  0xdc   :  { %1945 = vmatpush1.bf16.msra.mxu1 %v3125_v57  ;;  %1905 = vmatprep.subr.bf16.mxu0 %v3130_v58  ;;  %v3163_v21 = vld [vmem:[%s4239_s1 + $0x76c] ss:$16 sps:$4 sm:$0xff]   ;;  %v3161_v23 = vld [vmem:[%s4239_s1 + $0x768] ss:$16 sps:$4 sm:$0xff]   ;;  %v3193_v57 = vld [vmem:[%s4241_s3 + $0x10] sm:$0xff]  }
  0xdd   :  { %1946 = vmatprep.subr.bf16.mxu1 %v3133_v59  ;;  %v3166_v25 = vld [vmem:[%s4239_s1 + $0x54c] ss:$16 sps:$4 sm:$0xff]   ;;  %v3164_v27 = vld [vmem:[%s4239_s1 + $0x548] ss:$16 sps:$4 sm:$0xff]   ;;  %v3205_v58 = vld [vmem:[%s4241_s3 + $0xa0] sm:$0xff]  }
  0xde   :  { %v3169_v26 = vld [vmem:[%s4239_s1 + $0x74c] ss:$16 sps:$4 sm:$0xff]   ;;  %v3167_v28 = vld [vmem:[%s4239_s1 + $0x748] ss:$16 sps:$4 sm:$0xff]  }
  0xdf   :  { %1906 = vmatpush1.bf16.msra.mxu0 %v3128_v60  ;;  %v3172_v30 = vld [vmem:[%s4239_s1 + $0x52c] ss:$16 sps:$4 sm:$0xff]   ;;  %v3170_v32 = vld [vmem:[%s4239_s1 + $0x528] ss:$16 sps:$4 sm:$0xff]  }
  0xe0   :  { %1947 = vmatpush1.bf16.msra.mxu1 %v3131_v61  ;;  %1907 = vmatprep.subr.bf16.mxu0 %v3136_v0  ;;  %v3175_v31 = vld [vmem:[%s4239_s1 + $0x72c] ss:$16 sps:$4 sm:$0xff]   ;;  %v3173_v33 = vld [vmem:[%s4239_s1 + $0x728] ss:$16 sps:$4 sm:$0xff]  }
  0xe1   :  { %1948 = vmatprep.subr.bf16.mxu1 %v3139_v1  ;;  %v3178_v34 = vld [vmem:[%s4239_s1 + $0x50c] ss:$16 sps:$4 sm:$0xff]   ;;  %v3176_v36 = vld [vmem:[%s4239_s1 + $0x508] ss:$16 sps:$4 sm:$0xff]   ;;  %v3196_v1 = vld [vmem:[%s4241_s3 + $0x40] sm:$0xff]  }
  0xe2   :  { %v3181_v35 = vld [vmem:[%s4239_s1 + $0x70c] ss:$16 sps:$4 sm:$0xff]   ;;  %v3179_v37 = vld [vmem:[%s4239_s1 + $0x708] ss:$16 sps:$4 sm:$0xff]  }
  0xe3   :  { %1908 = vmatpush2.bf16.msra.mxu0 %v3134_v2  ;;  %v3182_v38 = vld [vmem:[%s4241_s3 + $0x78] sm:$0xff]   ;;  %v3186_v19 = vld [vmem:[%s4241_s3 + $0x68] sm:$0xff]   ;;  %v3197_v2 = vld [vmem:[%s4241_s3] sm:$0xff]  }
  0xe4   :  { %1949 = vmatpush2.bf16.msra.mxu1 %v3137_v4  ;;  %1909 = vmatprep.subr.bf16.mxu0 %v3142_v5  ;;  %v3183_v39 = vld [vmem:[%s4241_s3 + $0x38] sm:$0xff]   ;;  %v3202_v52 = vld [vmem:[%s4241_s3 + $0xe8] sm:$0xff]   ;;  %v289_v4 = vsub.s32 0, %v3405_v42  ;;  %v285_v5 = vld [vmem:[%s4240_s2] sm:$0xf] }
  0xe5   :  { %1950 = vmatprep.subr.bf16.mxu1 %v3145_v6  ;;  %v3198_v46 = vld [vmem:[%s4241_s3 + $0xf8] sm:$0xff]   ;;  %v3203_v54 = vld [vmem:[%s4241_s3 + $0xa8] sm:$0xff]   ;;  %v293_v6 = vsub.s32 1, %v3405_v42 }
  0xe6   :  { %v3199_v47 = vld [vmem:[%s4241_s3 + $0xb8] sm:$0xff]   ;;  %v3194_v59 = vld [vmem:[%s4241_s3 + $0x48] sm:$0xff]  }
  0xe7   :  { %1910 = vmatpush2.bf16.msra.mxu0 %v3140_v7  ;;  %v3190_v51 = vld [vmem:[%s4241_s3 + $0x58] sm:$0xff]   ;;  %v3195_v61 = vld [vmem:[%s4241_s3 + $0x8] sm:$0xff]   ;;  %v290_v7 = vrot.slane %v285_v5, %v289_v4 }
  0xe8   :  { %1951 = vmatpush2.bf16.msra.mxu1 %v3143_v8  ;;  %1911 = vmatprep.subr.bf16.mxu0 %v3148_v9  ;;  %v3191_v53 = vld [vmem:[%s4241_s3 + $0x18] sm:$0xff]   ;;  %v294_v8 = vrot.slane %v285_v5, %v293_v6 }
  0xe9   :  { %1952 = vmatprep.subr.bf16.mxu1 %v3151_v10  ;;  %v3206_v60 = vld [vmem:[%s4241_s3 + $0xd8] sm:$0xff]  }
  0xea   :  { %v3207_v0 = vld [vmem:[%s4241_s3 + $0x98] sm:$0xff]  }
  0xeb   :  { %1912 = vmatpush2.bf16.msra.mxu0 %v3146_v11  ;;  %v3208_v11 = vld [vmem:[%s4241_s3 + $0xd0] sm:$0xff]  }
  0xec   :  { %1953 = vmatpush2.bf16.msra.mxu1 %v3149_v12  ;;  %1913 = vmatprep.subr.bf16.mxu0 %v3154_v13  ;;  %v3209_v13 = vld [vmem:[%s4241_s3 + $0x90] sm:$0xff]  }
  0xed   :  { %1954 = vmatprep.subr.bf16.mxu1 %v3157_v15 }
  0xef   :  { %1914 = vmatpush2.bf16.msra.mxu0 %v3152_v16 }
  0xf0   :  { %1955 = vmatpush2.bf16.msra.mxu1 %v3155_v17  ;;  %1915 = vmatprep.subr.bf16.mxu0 %v3160_v20 }
  0xf1   :  { %1956 = vmatprep.subr.bf16.mxu1 %v3163_v21 }
  0xf3   :  { %1916 = vmatpush2.bf16.msra.mxu0 %v3158_v22 }
  0xf4   :  { %1957 = vmatpush2.bf16.msra.mxu1 %v3161_v23  ;;  %1917 = vmatprep.subr.bf16.mxu0 %v3166_v25  ;;  %v3210_v23 = vld [vmem:[%s4241_s3 + $0xc8] sm:$0xff]  }
  0xf5   :  { %1958 = vmatprep.subr.bf16.mxu1 %v3169_v26 }
  0xf7   :  { %1918 = vmatpush2.bf16.msra.mxu0 %v3164_v27  ;;  %v3211_v27 = vld [vmem:[%s4241_s3 + $0x88] sm:$0xff]  }
  0xf8   :  { %1959 = vmatpush2.bf16.msra.mxu1 %v3167_v28  ;;  %1919 = vmatprep.subr.bf16.mxu0 %v3172_v30 }
  0xf9   :  { %1960 = vmatprep.subr.bf16.mxu1 %v3175_v31 }
  0xfb   :  { %1920 = vmatpush2.bf16.msra.mxu0 %v3170_v32 }
  0xfc   :  { %1961 = vmatpush2.bf16.msra.mxu1 %v3173_v33  ;;  %1921 = vmatprep.subr.bf16.mxu0 %v3178_v34 }
  0xfd   :  { %1962 = vmatprep.subr.bf16.mxu1 %v3181_v35  ;;  %v3212_v35 = vld [vmem:[%s4241_s3 + $0xc0] sm:$0xff]  }
  0xff   :  { %1922 = vmatpush2.bf16.msra.mxu0 %v3176_v36 }
 0x100   :  { %1963 = vmatpush2.bf16.msra.mxu1 %v3179_v37  ;;  %2732 = vmatprep.subr.bf16.mxu0 %v3182_v38  ;;  %v3213_v37 = vld [vmem:[%s4241_s3 + $0x80] sm:$0xff]  }
 0x101   :  { %2754 = vmatprep.subr.bf16.mxu1 %v3198_v46 }
 0x102   :  { %v4109_v62 = vpop.f32.mrf.mxu0  ;;  %1924 = vmatmul.mubr.bf16.vlgmr.msra.gmra.mxu0 %v3449_v63  ;;  %v3187_v63 = vld [vmem:[%s4241_s3 + $0x28] sm:$0xff]  }
 0x103   :  { %v4111_v3 = vpop.f32.mrf.mxu1  ;;  %1965 = vmatmul.mubr.bf16.vlgmr.msra.gmra.mxu1 %v3712_v29  ;;  %2733 = vmatpush3.bf16.msra.mxu0 %v3183_v39  ;;  %v3188_v29 = vld [vmem:[%s4241_s3 + $0x60] sm:$0xff]   ;;  %v1680_v9 = vadd.f32 %v4109_v62, %v290_v7 }
 0x104   :  { %v1681_v43 = vpop.f32.mrf.mxu0  ;;  %2734 = vmatprep.subr.bf16.mxu0 %v3184_v40  ;;  %2755 = vmatpush3.bf16.msra.mxu1 %v3199_v47 }
 0x105   :  { %v4118_v14 = vpop.f32.mrf.mxu1  ;;  %2756 = vmatprep.subr.bf16.mxu1 %v3200_v48  ;;  %v1682_v10 = vadd.f32 %v1681_v43, %v294_v8  ;;  %v1721_v12 = vadd.f32 %v4111_v3, %v1680_v9  ;;  %v3216_v8 = vld [vmem:[%s4243_s5 + $0x8] sm:$0xff]  }
 0x106   :  { %v1683_v44 = vpop.f32.mrf.mxu0 }
 0x107   :  { %v1724_v18 = vpop.f32.mrf.mxu1  ;;  %2735 = vmatpush3.bf16.msra.mxu0 %v3185_v41  ;;  %v1723_v17 = vadd.f32 %v4118_v14, %v1682_v10 }
 0x108   :  { %v1684_v24 = vpop.f32.mrf.mxu0  ;;  %2736 = vmatprep.subr.bf16.mxu0 %v3186_v19  ;;  %2757 = vmatpush3.bf16.msra.mxu1 %v3201_v50  ;;  %v3214_v18 = vld [vmem:[%s4243_s5 + $0x18] sm:$0xff]  }
 0x109   :  { %v1725_v45 = vpop.f32.mrf.mxu1  ;;  %2758 = vmatprep.subr.bf16.mxu1 %v3202_v52  ;;  %v301_v24 = vsub.s32 3, %v3405_v42 }
 0x10b   :  { %2737 = vmatpush3.bf16.msra.mxu0 %v3187_v63  ;;  %v3245_v63 = vmov 0.0   ;;  %v302_v46 = vrot.slane %v285_v5, %v301_v24 }
 0x10c   :  { %2738 = vmatprep.subr.bf16.mxu0 %v3188_v29  ;;  %2759 = vmatpush3.bf16.msra.mxu1 %v3203_v54  ;;  %v297_v29 = vsub.s32 2, %v3405_v42 }
 0x10d   :  { %2760 = vmatprep.subr.bf16.mxu1 %v3204_v56 }
 0x10e   :  { %v298_v45 = vrot.slane %v285_v5, %v297_v29  ;;  %v3215_v5 = vld [vmem:[%s4243_s5 + $0x10] sm:$0xff]  }
 0x10f   :  { %2739 = vmatpush3.bf16.msra.mxu0 %v3189_v49 }
 0x110   :  { %2740 = vmatprep.subr.bf16.mxu0 %v3190_v51  ;;  %2761 = vmatpush3.bf16.msra.mxu1 %v3205_v58 }
 0x111   :  { %2762 = vmatprep.subr.bf16.mxu1 %v3206_v60 }
 0x113   :  { %2741 = vmatpush3.bf16.msra.mxu0 %v3191_v53 }
 0x114   :  { %2742 = vmatprep.subr.bf16.mxu0 %v3192_v55  ;;  %2763 = vmatpush3.bf16.msra.mxu1 %v3207_v0 }
 0x115   :  { %2764 = vmatprep.subr.bf16.mxu1 %v3208_v11 }
 0x117   :  { %2743 = vmatpush3.bf16.msra.mxu0 %v3193_v57 }
 0x118   :  { %2744 = vmatprep.subr.bf16.mxu0 %v3194_v59  ;;  %2765 = vmatpush3.bf16.msra.mxu1 %v3209_v13  ;;  %v2693_v13 = vld [vmem:[%s4242_s4] ss:$0 sm:$0xff]  ;;  %s3247_s4 = smov [#allocation2]  }
 0x119   :  { %2766 = vmatprep.subr.bf16.mxu1 %v3210_v23 }
 0x11b   :  { %2745 = vmatpush3.bf16.msra.mxu0 %v3195_v61 }
 0x11c   :  { %2746 = vmatprep.subr.bf16.mxu0 %v3196_v1  ;;  %2767 = vmatpush3.bf16.msra.mxu1 %v3211_v27  ;;  %v2726_v27 = vld [vmem:[%s4244_s6] ss:$0 sm:$0xff]  ;;  %s2429_s6 = sshll.u32 %s3247_s4, 4  ;;  %s2430_s6 = int_to_ptr.vmem [resolvable:$true] %s2429_s6 }
 0x11d   :  { %2768 = vmatprep.subr.bf16.mxu1 %v3212_v35  ;;  %s3222_s14 = scalar_lea.vmem %s2430_s6, 32  ;;  %p3227_p1 = scmp.lt.s32.totalorder %s2430_s6, %s2430_s6 }
 0x11e   :  { %p3223_p0 = scmp.ne.s32.totalorder %s2430_s6, %s3222_s14  ;;  %p3228_p2 = scmp.lt.s32.totalorder %s3222_s14, %s3222_s14 }
 0x11f   :  { %2747 = vmatpush3.bf16.msra.mxu0 %v3197_v2 }
 0x120   :  { %2769 = vmatpush3.bf16.msra.mxu1 %v3213_v37  ;;  %2781 = vmatprep.subr.bf16.mxu0 %v3245_v63  ;;  %p3229_p3 = por %p3228_p2, %p3227_p1 }
 0x122   :  { %p3230_p4 = pnand %p3229_p3, %p3223_p0 }
 0x142   :  { %v1761_v15 = vpop.f32.mrf.mxu0 }
 0x143   :  { %v1802_v16 = vpop.f32.mrf.mxu1  ;;  %v1762_v20 = vadd.f32 %v1761_v15, %v1721_v12  ;;  %v3217_v12 = vld [vmem:[%s4243_s5] sm:$0xff]  }
 0x144   :  { %v1763_v21 = vpop.f32.mrf.mxu0 }
 0x145   :  { %v1804_v22 = vpop.f32.mrf.mxu1  ;;  %v1803_v25 = vadd.f32 %v1802_v16, %v1762_v20  ;;  %v1764_v26 = vadd.f32 %v1763_v21, %v1723_v17 }
 0x146   :  { %v1765_v28 = vpop.f32.mrf.mxu0 }
 0x147   :  { %v1806_v30 = vpop.f32.mrf.mxu1  ;;  %v1805_v31 = vadd.f32 %v1804_v22, %v1764_v26  ;;  %v1973_v32 = vmax.f32 %v1803_v25, 0.0 }
 0x148   :  { %v1766_v33 = vpop.f32.mrf.mxu0 }
 0x149   :  { %v1807_v34 = vpop.f32.mrf.mxu1  ;;  %v1974_v36 = vmax.f32 %v1805_v31, 0.0  ;;  %v1977_v39 = vpack.c.bf16 %v1973_v32, %v1973_v32 }
 0x14b   :  { %v1978_v38 = vpack.c.bf16 %v1974_v36, %v1974_v36 }
 0x14d   :  { %2276 = vmatprep.mubr.bf16.mxu0 %v1978_v38 }
 0x14e   :  { %2277 = vmatmul.mubr.bf16.vlgmr.msra.gmra.mxu0 %v1977_v39 }
 0x14f   :  { %2782 = vmatpush3.bf16.msra.mxu0 %v3214_v18  ;;  %2789 = vmatprep.mubr.msk.bf16.mxu0 %vm3246_vm0, %v3245_v63 }
 0x150   :  { %2783 = vmatprep.subr.bf16.mxu0 %v3245_v63 }
 0x153   :  { %2784 = vmatpush3.bf16.msra.mxu0 %v3215_v5 }
 0x154   :  { %2785 = vmatprep.subr.bf16.mxu0 %v3245_v63 }
 0x157   :  { %2786 = vmatpush3.bf16.msra.mxu0 %v3216_v8 }
 0x158   :  { %2787 = vmatprep.subr.bf16.mxu0 %v3245_v63 }
 0x15b   :  { %2788 = vmatpush3.bf16.msra.mxu0 %v3217_v12 }
 0x182   :  { %v1843_v40 = vpop.f32.mrf.mxu0 }
 0x183   :  { %v1884_v62 = vpop.f32.mrf.mxu1  ;;  %v1844_v47 = vadd.f32 %v1843_v40, %v298_v45 }
 0x184   :  { %v1845_v3 = vpop.f32.mrf.mxu0 }
 0x185   :  { %v1886_v41 = vpop.f32.mrf.mxu1  ;;  %v1846_v48 = vadd.f32 %v1845_v3, %v302_v46  ;;  %v1885_v49 = vadd.f32 %v1884_v62, %v1844_v47 }
 0x186   :  { %v1847_v43 = vpop.f32.mrf.mxu0 }
 0x187   :  { %v1888_v14 = vpop.f32.mrf.mxu1  ;;  %v1887_v52 = vadd.f32 %v1886_v41, %v1846_v48 }
 0x188   :  { %v1848_v19 = vpop.f32.mrf.mxu0 }
 0x189   :  { %v1889_v44 = vpop.f32.mrf.mxu1 }
 0x1c2   :  { %v1925_v50 = vpop.f32.mrf.mxu0 }
 0x1c3   :  { %v1966_v51 = vpop.f32.mrf.mxu1  ;;  %v1926_v53 = vadd.f32 %v1925_v50, %v1885_v49 }
 0x1c4   :  { %v1927_v54 = vpop.f32.mrf.mxu0 }
 0x1c5   :  { %v1968_v55 = vpop.f32.mrf.mxu1  ;;  %v1967_v56 = vadd.f32 %v1966_v51, %v1926_v53  ;;  %v1928_v57 = vadd.f32 %v1927_v54, %v1887_v52 }
 0x1c6   :  { %v1929_v58 = vpop.f32.mrf.mxu0 }
 0x1c7   :  { %v1970_v59 = vpop.f32.mrf.mxu1  ;;  %v1969_v60 = vadd.f32 %v1968_v55, %v1928_v57  ;;  %v1975_v61 = vmax.f32 %v1967_v56, 0.0 }
 0x1c8   :  { %v1930_v0 = vpop.f32.mrf.mxu0 }
 0x1c9   :  { %v1971_v1 = vpop.f32.mrf.mxu1  ;;  %v1976_v42 = vmax.f32 %v1969_v60, 0.0  ;;  %v1979_v4 = vpack.c.bf16 %v1975_v61, %v1975_v61 }
 0x1cb   :  { %v1980_v2 = vpack.c.bf16 %v1976_v42, %v1976_v42 }
 0x1cd   :  { %2316 = vmatprep.mubr.bf16.mxu1 %v1980_v2 }
 0x1ce   :  { %2317 = vmatmul.mubr.bf16.vlgmr.msra.gmra.mxu1 %v1979_v4 }
 0x20e   :  { %v2748_v6 = vpop.f32.mrf.mxu0 }
 0x210   :  { %v2749_v7 = vpop.f32.mrf.mxu0 }
 0x211   :  { %v2750_v9 = vadd.f32 %v2749_v7, %v2748_v6 }
 0x212   :  { %v2751_v10 = vpop.f32.mrf.mxu0 }
 0x213   :  { %v2279_v17 = vadd.f32 %v2750_v9, %v2693_v13 }
 0x214   :  { %v2752_v11 = vpop.f32.mrf.mxu0 }
 0x28e   :  { %v2770_v15 = vpop.f32.mrf.mxu1 }
 0x290   :  { %v2771_v16 = vpop.f32.mrf.mxu1 }
 0x291   :  { %v2772_v20 = vadd.f32 %v2771_v16, %v2770_v15 }
 0x292   :  { %v2773_v21 = vpop.f32.mrf.mxu1 }
 0x293   :  { %v2319_v22 = vadd.f32 %v2772_v20, %v2279_v17 }
 0x294   :  { %v2774_v23 = vpop.f32.mrf.mxu1 }
 0x295   :  { %v2324_v25 = vmax.f32 %v2319_v22, 0.0 }
 0x297   :  { %v2325_v26 = vpack.c.bf16 %v2324_v25, %v2324_v25 }
 0x299   :  { %2790 = vmatmul.mubr.msk.bf16.vlgmr.msra.gmra.mxu0 %vm2365_vm1, %v2325_v26 }
 0x359   :  { %v2403_v28 = vpop.f32.mrf.mxu0 }
 0x35a   :  { %v2404_v30 = vadd.f32 %v2726_v27, %v2403_v28 }
 0x35b   :  { %v2791_v31 = vpop.f32.mrf.mxu0 }
 0x35c   :  { %v2410_v32 = vsel %vm2409_vm2, %v2404_v30, -inf }
 0x35d   :  { %2411 = vmax.xlane.f32.xlu0 %v2410_v32  ;;  %v2406_v33 = vpop.f32.mrf.mxu0 }
 0x35f   :  { %v2792_v34 = vpop.f32.mrf.mxu0 }
 0x3e6   :  { %v2412_v35 = vpop.xlane.xlu0 %2411 }
 0x3e7   :  { %v2413_v36 = vsub.f32 %v2404_v30, %v2412_v35 }
 0x3e9   :  { %v2414_v37 = vmul.f32 1.442695, %v2413_v36 }
 0x3eb   :  { %3218 = vpow2.f32 %v2414_v37 }
 0x3f8   :  { %v3219_v38 = vpop.eup %3218 }
 0x3f9   :  { %v2416_v39 = vsel %vm2409_vm2, %v3219_v38, 0.0 }
 0x3fa   :  { %2417 = vadd.xlane.f32.xlu0 %v2416_v39 }
 0x483   :  { %v2418_v40 = vpop.xlane.xlu0 %2417 }
 0x484   :  { %3220 = vlog2.f32 %v2418_v40 }
 0x491   :  { %v3221_v62 = vpop.eup %3220 }
 0x492   :  { %v2420_v3 = vmul.f32 0.6931472, %v3221_v62 }
 0x494   :  { %v2421_v41 = vsub.f32 %v2413_v36, %v2420_v3 }
 0x496   :  { %2422 = vst.msk [vmem:[#allocation2] sm:$0x3] %vm2409_vm2, %v2421_v41 }
 0x497   :  { %3233 = shalt.err (!%p3230_p4)
}
 0x498   :  { %2432 = dma.vmem_to_hbm [thread:$0]  %s2430_s6, 32, %s4245_s7, [#allocation3]  }
 0x499   :  { %3242 = dma.done.wait [#allocation3], 32  }
 0x49a   :  { %3243 = vsyncadd [#allocation3], 4294967264 }
 0x49b   :  { %2436 = vsyncpa [#allocation3], 1 }

</bundles_post_ra>
